<compile_context>
chip_gen: v6e
topology: v6e:2x2x1
jax: 0.10.0
libtpu: 0.0.40
codegen_flags: <defaults>
</compile_context>

<pallas_src>
import math
from functools import partial

import jax
import jax.numpy as jnp
from jax.experimental import pallas as pl
from jax.experimental.pallas import tpu as pltpu

LN_EPS = 1e-5  # PyTorch nn.LayerNorm default


def _bf16(v):
    return v.astype(jnp.bfloat16)


def _erf(x):
    # Abramowitz & Stegun 7.1.26 polynomial erf.  With the approx reciprocal below the
    # overall relative error is ~1e-3 (EUP vrcp), which is fine for the bf16
    # mixed-precision tolerance used here (do NOT rely on it at f32 tolerance).
    a1, a2, a3, a4, a5 = (0.254829592, -0.284496736, 1.421413741,
                          -1.453152027, 1.061405429)
    p = 0.3275911
    sgn = jnp.where(x >= 0.0, 1.0, -1.0)
    ax = jnp.abs(x)
    t = pl.reciprocal(1.0 + p * ax, approx=True)
    poly = ((((a5 * t + a4) * t + a3) * t + a2) * t + a1) * t
    return sgn * (1.0 - poly * jnp.exp(-ax * ax))


def _gelu_exact(x):
    return 0.5 * x * (1.0 + _erf(x * (1.0 / math.sqrt(2.0))))


def _layernorm(x, g, b):
    mu = jnp.mean(x, axis=-1, keepdims=True)
    var = jnp.mean((x - mu) ** 2, axis=-1, keepdims=True)
    return (x - mu) * jax.lax.rsqrt(var + LN_EPS) * g + b


def attention_block_kernel(num_heads,
                           xt_ref, xf_ref,
                           ln1_g, ln1_b,
                           wq, bq, wkv, bkv, wo, bo,
                           ln2_g, ln2_b, w1, b1, w2, b2,
                           o_ref,
                           k_ref, v_ref, ctx_ref):
    x_t = xt_ref[0]                        # (TQ, E) f32 -- this step's query rows
    TQ, E = x_t.shape
    dh = E // num_heads

    g1, be1 = ln1_g[...], ln1_b[...]

    # ---- K/V cache fill: once per batch element (q == 0), reused by every q tile ----
    @pl.when(pl.program_id(1) == 0)
    def _fill_kv():
        xn_f = _layernorm(xf_ref[0], g1, be1)                          # (S, E) f32
        kv = jnp.dot(_bf16(xn_f), wkv[...],
                     preferred_element_type=jnp.float32) + bkv[...]    # (S, 2E) f32
        kv_bf = _bf16(kv)    # cast immediately; no f32 full-sequence copy stays live
        # Head-major scatter (static slices, runs once per batch element).
        # Note: dh pads to the 128-lane width in VMEM; no waste once dh >= 128.
        for h in range(num_heads):
            k_ref[h] = kv_bf[:, h * dh:(h + 1) * dh]
            v_ref[h] = kv_bf[:, E + h * dh:E + (h + 1) * dh]

    # ---- LayerNorm 1 + Q projection for this tile only ----
    # wq / bq are pre-scaled by 1/sqrt(dh) at pack time -> no in-kernel score scaling.
    xn_t = _layernorm(x_t, g1, be1)
    q = jnp.dot(_bf16(xn_t), wq[...], preferred_element_type=jnp.float32) + bq[...]
    q_bf = _bf16(q)                                                    # (TQ, E)

    # ---- per-head attention; contexts staged into (TQ, E) for one K=E W_O matmul ----
    # num_heads is a static Python int, so this unrolls at trace time with static
    # slices.  (A rolled lax.fori_loop would need dynamic lane-offset stores, which
    # lower poorly for dh < 128; revisit for very large head counts.)
    for h in range(num_heads):
        s = jax.lax.dot_general(q_bf[:, h * dh:(h + 1) * dh], k_ref[h],
                                (((1,), (1,)), ((), ())),
                                preferred_element_type=jnp.float32)    # (TQ, S)
        s = s - jnp.max(s, axis=-1, keepdims=True)
        p = jnp.exp(s)                                                 # f32 on EUP
        inv_l = pl.reciprocal(jnp.sum(p, axis=-1, keepdims=True), approx=True)
        ctx = jnp.dot(_bf16(p), v_ref[h],
                      preferred_element_type=jnp.float32) * inv_l      # (TQ, dh)
        ctx_ref[:, h * dh:(h + 1) * dh] = _bf16(ctx)

    attn = jnp.dot(ctx_ref[...], wo[...],
                   preferred_element_type=jnp.float32) + bo[...]       # (TQ, E)
    # TODO(synk): attention-prob dropout / FF dropout are identity (eval mode).

    x1 = x_t + attn                        # residual 1

    # ---- LayerNorm 2 + feed-forward (exact erf-GELU) ----
    xn2 = _layernorm(x1, ln2_g[...], ln2_b[...])
    h1 = jnp.dot(_bf16(xn2), w1[...], preferred_element_type=jnp.float32) + b1[...]
    h1 = _gelu_exact(h1)
    # TODO(synk): on v7x, stream w1/w2 via an inner emit_pipeline (or store them fp8)
    # if FF weights + K/V caches exceed the 64 MiB VMEM budget at very large E/FF.
    ff = jnp.dot(_bf16(h1), w2[...], preferred_element_type=jnp.float32) + b2[...]

    o_ref[0] = x1 + ff                     # residual 2


def attention_block(x, kp, num_heads, tq=None):
    B, S, E = x.shape
    FF = kp["w1_t"].shape[1]
    assert E % num_heads == 0
    dh = E // num_heads

    # ---- generation-aware budgets (v5e/v6e: 128 MiB VMEM, v7x: 64 MiB) ----
    try:
        vmem_bytes = int(getattr(pltpu.get_tpu_info(), "vmem_capacity_bytes",
                                 64 * 1024 * 1024))
    except Exception:
        vmem_bytes = 64 * 1024 * 1024          # conservative (v7x-sized) fallback
    vmem_limit = min(vmem_bytes * 3 // 4, 100 * 1024 * 1024)   # leave compiler headroom
    tq_cap = 128 if vmem_bytes <= 64 * 1024 * 1024 else 256

    if tq is None:
        cap = min(S, tq_cap)
        tq = next((t for t in range(cap - cap % 8, 0, -8) if S % t == 0), S)
        # TODO(synk): mask a ragged tail tile instead of one giant TQ=S step when S has
        # no divisor that is a multiple of 8.
    TQ = tq
    n_qt = S // TQ

    param_order = ["ln1_g", "ln1_b", "wq_t", "bq", "wkv_t", "bkv",
                   "wo_t", "bo", "ln2_g", "ln2_b", "w1_t", "b1", "w2_t", "b2"]

    # CostEstimate: Q/KV/W_O projections + QK^T + PV + FF matmuls (K/V counted once per
    # batch); exp for softmax + GELU; x read as tile stream + one full-sequence fetch
    # per batch element + output write + parameters.
    flops = B * (8 * S * E * E + 4 * S * S * E + 4 * S * E * FF)
    transcendentals = B * (num_heads * S * S + S * FF)
    param_bytes = sum(int(kp[n].size) * kp[n].dtype.itemsize for n in param_order)
    bytes_accessed = 12 * B * S * E + param_bytes

    def run(single_buffer_weights):
        def const_spec(shape):
            nd = len(shape)
            idx = lambda b, q, _n=nd: (0,) * _n
            if single_buffer_weights:
                # Constant index_map -> never re-fetched; one buffer is enough.
                return pl.BlockSpec(shape, idx, pipeline_mode=pl.Buffered(1))
            return pl.BlockSpec(shape, idx)

        in_specs = [
            pl.BlockSpec((1, TQ, E), lambda b, q: (b, q, 0)),   # query-row tile of x
            pl.BlockSpec((1, S, E), lambda b, q: (b, 0, 0)),    # full sequence (K/V src)
        ]
        args = [x, x]
        for name in param_order:
            p = kp[name]
            in_specs.append(const_spec(p.shape))
            args.append(p)

        return pl.pallas_call(
            partial(attention_block_kernel, num_heads),
            out_shape=jax.ShapeDtypeStruct((B, S, E), jnp.float32),
            grid=(B, n_qt),
            in_specs=in_specs,
            out_specs=pl.BlockSpec((1, TQ, E), lambda b, q: (b, q, 0)),
            scratch_shapes=[
                pltpu.VMEM((num_heads, S, dh), jnp.bfloat16),   # K cache (head-major)
                pltpu.VMEM((num_heads, S, dh), jnp.bfloat16),   # V cache (head-major)
                pltpu.VMEM((TQ, E), jnp.bfloat16),              # per-head ctx staging
            ],
            compiler_params=pltpu.CompilerParams(
                # q carries the per-batch K/V caches -> must stay sequential.
                dimension_semantics=("parallel", "arbitrary"),
                vmem_limit_bytes=int(vmem_limit)),
            cost_estimate=pl.CostEstimate(
                flops=int(flops),
                transcendentals=int(transcendentals),
                bytes_accessed=int(bytes_accessed)),
        )(*args)

    if hasattr(pl, "Buffered"):
        try:
            return run(True)
        except Exception:
            pass   # older jax / lowering without single-buffer support: use defaults
    return run(False)


def init_params(key, embed_dim, ff_dim):
    """f32 parameters in PyTorch-equivalent (pre-transposed) layout."""
    E, F = embed_dim, ff_dim
    ks = jax.random.split(key, 8)
    s = 0.05
    in_proj_w = jax.random.normal(ks[0], (3 * E, E), jnp.float32) * s
    in_proj_b = jax.random.normal(ks[1], (3 * E,), jnp.float32) * s
    wo = jax.random.normal(ks[2], (E, E), jnp.float32) * s
    bo = jax.random.normal(ks[3], (E,), jnp.float32) * s
    w1 = jax.random.normal(ks[4], (F, E), jnp.float32) * s
    b1 = jax.random.normal(ks[5], (F,), jnp.float32) * s
    w2 = jax.random.normal(ks[6], (E, F), jnp.float32) * s
    b2 = jax.random.normal(ks[7], (E,), jnp.float32) * s
    return {
        "ln1_g": jnp.ones((1, E), jnp.float32),
        "ln1_b": jnp.zeros((1, E), jnp.float32),
        "wq_t": in_proj_w[:E].T, "bq": in_proj_b[:E].reshape(1, E),
        "wk_t": in_proj_w[E:2 * E].T, "bk": in_proj_b[E:2 * E].reshape(1, E),
        "wv_t": in_proj_w[2 * E:].T, "bv": in_proj_b[2 * E:].reshape(1, E),
        "wo_t": wo.T, "bo": bo.reshape(1, E),
        "ln2_g": jnp.ones((1, E), jnp.float32),
        "ln2_b": jnp.zeros((1, E), jnp.float32),
        "w1_t": w1.T, "b1": b1.reshape(1, F),
        "w2_t": w2.T, "b2": b2.reshape(1, E),
    }


def pack_kernel_params(p, num_heads):
    """Kernel-layout params: K/V projection fused, wq/bq pre-scaled by 1/sqrt(dh),
    matmul weights bf16, biases / LN params f32."""
    E = p["wq_t"].shape[0]
    scale = 1.0 / math.sqrt(E // num_heads)
    bf = lambda a: a.astype(jnp.bfloat16)
    return {
        "ln1_g": p["ln1_g"], "ln1_b": p["ln1_b"],
        "wq_t": bf(p["wq_t"] * scale), "bq": p["bq"] * scale,
        "wkv_t": bf(jnp.concatenate([p["wk_t"], p["wv_t"]], axis=1)),
        "bkv": jnp.concatenate([p["bk"], p["bv"]], axis=1),
        "wo_t": bf(p["wo_t"]), "bo": p["bo"],
        "ln2_g": p["ln2_g"], "ln2_b": p["ln2_b"],
        "w1_t": bf(p["w1_t"]), "b1": p["b1"],
        "w2_t": bf(p["w2_t"]), "b2": p["b2"],
    }


def reference(x, p, num_heads):
    """Pure-JAX f32 reference of the PyTorch forward (eval mode)."""
    B, S, E = x.shape
    dh = E // num_heads

    def ln(v, g, b):
        mu = jnp.mean(v, axis=-1, keepdims=True)
        var = jnp.mean((v - mu) ** 2, axis=-1, keepdims=True)
        return (v - mu) * jax.lax.rsqrt(var + LN_EPS) * g + b

    xn = ln(x, p["ln1_g"], p["ln1_b"])
    q = xn @ p["wq_t"] + p["bq"]
    k = xn @ p["wk_t"] + p["bk"]
    v = xn @ p["wv_t"] + p["bv"]
    qh = q.reshape(B, S, num_heads, dh).transpose(0, 2, 1, 3)
    kh = k.reshape(B, S, num_heads, dh).transpose(0, 2, 1, 3)
    vh = v.reshape(B, S, num_heads, dh).transpose(0, 2, 1, 3)
    scores = jnp.einsum("bhqd,bhkd->bhqk", qh, kh) / math.sqrt(dh)
    probs = jax.nn.softmax(scores, axis=-1)
    o = jnp.einsum("bhqk,bhkd->bhqd", probs, vh).transpose(0, 2, 1, 3).reshape(B, S, E)
    attn = o @ p["wo_t"] + p["bo"]
    x1 = x + attn
    xn2 = ln(x1, p["ln2_g"], p["ln2_b"])
    h = jax.nn.gelu(xn2 @ p["w1_t"] + p["b1"], approximate=False)
    return x1 + h @ p["w2_t"] + p["b2"]


if __name__ == "__main__":
    B, S, E, H, FF = 2, 16, 32, 4, 64
    key = jax.random.PRNGKey(0)
    kx, kparam = jax.random.split(key)
    x = jax.random.normal(kx, (B, S, E), jnp.float32)
    params = init_params(kparam, E, FF)
    kparams = pack_kernel_params(params, H)

    # tq=8 forces two query tiles per batch element, exercising the cached-K/V reuse
    # path (q > 0) even at this tiny sequence length.
    out = attention_block(x, kparams, H, tq=8)
    out = jax.block_until_ready(out)

    ref = reference(x, params, H)
    assert out.shape == (B, S, E)
    max_err = float(jnp.max(jnp.abs(out - ref)))
    # bf16 MXU operands + approx reciprocals vs. a pure-f32 reference.
    if max_err < 3e-2:
        print("KERNEL_OK")
    else:
        print(f"MISMATCH max_abs_err={max_err}")
</pallas_src>

<mosaic_0001>
module attributes {stable_mosaic.version = 11 : i64} {
  func.func @attention_block_kernel(%arg0: i32, %arg1: i32, %arg2: memref<1x8x32xf32, #tpu.memory_space<vmem>>, %arg3: memref<1x16x32xf32, #tpu.memory_space<vmem>>, %arg4: memref<1x32xf32, #tpu.memory_space<vmem>>, %arg5: memref<1x32xf32, #tpu.memory_space<vmem>>, %arg6: memref<32x32xbf16, #tpu.memory_space<vmem>>, %arg7: memref<1x32xf32, #tpu.memory_space<vmem>>, %arg8: memref<32x64xbf16, #tpu.memory_space<vmem>>, %arg9: memref<1x64xf32, #tpu.memory_space<vmem>>, %arg10: memref<32x32xbf16, #tpu.memory_space<vmem>>, %arg11: memref<1x32xf32, #tpu.memory_space<vmem>>, %arg12: memref<1x32xf32, #tpu.memory_space<vmem>>, %arg13: memref<1x32xf32, #tpu.memory_space<vmem>>, %arg14: memref<32x64xbf16, #tpu.memory_space<vmem>>, %arg15: memref<1x64xf32, #tpu.memory_space<vmem>>, %arg16: memref<64x32xbf16, #tpu.memory_space<vmem>>, %arg17: memref<1x32xf32, #tpu.memory_space<vmem>>, %arg18: memref<1x8x32xf32, #tpu.memory_space<vmem>>, %arg19: memref<4x16x8xbf16, #tpu.memory_space<vmem>>, %arg20: memref<4x16x8xbf16, #tpu.memory_space<vmem>>, %arg21: memref<8x32xbf16, #tpu.memory_space<vmem>>) attributes {dimension_semantics = [#tpu.dimension_semantics<parallel>, #tpu.dimension_semantics<arbitrary>], iteration_bounds = array<i64: 2, 2>, scalar_prefetch = 0 : i64, scratch_operands = 3 : i64, tpu.core_type = #tpu.core_type<tc>, window_params = [{transform_indices = @transform_0, window_bounds = array<i64: 1, 8, 32>}, {transform_indices = @transform_1, window_bounds = array<i64: 1, 16, 32>}, {pipeline_mode = #tpu.pipeline_mode<synchronous>, transform_indices = @transform_2, window_bounds = array<i64: 1, 32>}, {pipeline_mode = #tpu.pipeline_mode<synchronous>, transform_indices = @transform_3, window_bounds = array<i64: 1, 32>}, {pipeline_mode = #tpu.pipeline_mode<synchronous>, transform_indices = @transform_4, window_bounds = array<i64: 32, 32>}, {pipeline_mode = #tpu.pipeline_mode<synchronous>, transform_indices = @transform_5, window_bounds = array<i64: 1, 32>}, {pipeline_mode = #tpu.pipeline_mode<synchronous>, transform_indices = @transform_6, window_bounds = array<i64: 32, 64>}, {pipeline_mode = #tpu.pipeline_mode<synchronous>, transform_indices = @transform_7, window_bounds = array<i64: 1, 64>}, {pipeline_mode = #tpu.pipeline_mode<synchronous>, transform_indices = @transform_8, window_bounds = array<i64: 32, 32>}, {pipeline_mode = #tpu.pipeline_mode<synchronous>, transform_indices = @transform_9, window_bounds = array<i64: 1, 32>}, {pipeline_mode = #tpu.pipeline_mode<synchronous>, transform_indices = @transform_10, window_bounds = array<i64: 1, 32>}, {pipeline_mode = #tpu.pipeline_mode<synchronous>, transform_indices = @transform_11, window_bounds = array<i64: 1, 32>}, {pipeline_mode = #tpu.pipeline_mode<synchronous>, transform_indices = @transform_12, window_bounds = array<i64: 32, 64>}, {pipeline_mode = #tpu.pipeline_mode<synchronous>, transform_indices = @transform_13, window_bounds = array<i64: 1, 64>}, {pipeline_mode = #tpu.pipeline_mode<synchronous>, transform_indices = @transform_14, window_bounds = array<i64: 64, 32>}, {pipeline_mode = #tpu.pipeline_mode<synchronous>, transform_indices = @transform_15, window_bounds = array<i64: 1, 32>}, {transform_indices = @transform_16, window_bounds = array<i64: 1, 8, 32>}]} {
    %c0 = arith.constant 0 : index
    %c0_0 = arith.constant 0 : index
    %c0_1 = arith.constant 0 : index
    %0 = vector.load %arg2[%c0, %c0_0, %c0_1] : memref<1x8x32xf32, #tpu.memory_space<vmem>>, vector<1x8x32xf32>
    %1 = vector.shape_cast %0 : vector<1x8x32xf32> to vector<8x32xf32>
    %c0_2 = arith.constant 0 : index
    %c0_3 = arith.constant 0 : index
    %2 = vector.load %arg4[%c0_2, %c0_3] : memref<1x32xf32, #tpu.memory_space<vmem>>, vector<1x32xf32>
    %c0_4 = arith.constant 0 : index
    %c0_5 = arith.constant 0 : index
    %3 = vector.load %arg5[%c0_4, %c0_5] : memref<1x32xf32, #tpu.memory_space<vmem>>, vector<1x32xf32>
    %c0_i32 = arith.constant 0 : i32
    %4 = arith.cmpi eq, %arg1, %c0_i32 : i32
    %5 = arith.extui %4 : i1 to i32
    %c0_i32_6 = arith.constant 0 : i32
    %6 = arith.cmpi ne, %5, %c0_i32_6 : i32
    scf.if %6 {
      %c0_102 = arith.constant 0 : index
      %c0_103 = arith.constant 0 : index
      %c0_104 = arith.constant 0 : index
      %203 = vector.load %arg3[%c0_102, %c0_103, %c0_104] : memref<1x16x32xf32, #tpu.memory_space<vmem>>, vector<1x16x32xf32>
      %204 = vector.shape_cast %203 : vector<1x16x32xf32> to vector<16x32xf32>
      %cst_105 = arith.constant dense<0.000000e+00> : vector<16xf32>
      %205 = vector.multi_reduction <add>, %204, %cst_105 [1] : vector<16x32xf32> to vector<16xf32>
      %206 = vector.shape_cast %205 : vector<16xf32> to vector<16x1xf32>
      %cst_106 = arith.constant 3.200000e+01 : f32
      %207 = vector.broadcast %cst_106 : f32 to vector<16x1xf32>
      %208 = arith.divf %206, %207 : vector<16x1xf32>
      %209 = vector.broadcast %208 : vector<16x1xf32> to vector<16x32xf32>
      %210 = arith.subf %204, %209 : vector<16x32xf32>
      %211 = arith.mulf %210, %210 : vector<16x32xf32>
      %cst_107 = arith.constant dense<0.000000e+00> : vector<16xf32>
      %212 = vector.multi_reduction <add>, %211, %cst_107 [1] : vector<16x32xf32> to vector<16xf32>
      %213 = vector.shape_cast %212 : vector<16xf32> to vector<16x1xf32>
      %cst_108 = arith.constant 3.200000e+01 : f32
      %214 = vector.broadcast %cst_108 : f32 to vector<16x1xf32>
      %215 = arith.divf %213, %214 : vector<16x1xf32>
      %216 = vector.broadcast %208 : vector<16x1xf32> to vector<16x32xf32>
      %217 = arith.subf %204, %216 : vector<16x32xf32>
      %cst_109 = arith.constant 9.99999974E-6 : f32
      %218 = vector.broadcast %cst_109 : f32 to vector<16x1xf32>
      %219 = arith.addf %215, %218 : vector<16x1xf32>
      %220 = math.rsqrt %219 : vector<16x1xf32>
      %221 = vector.broadcast %220 : vector<16x1xf32> to vector<16x32xf32>
      %222 = arith.mulf %217, %221 : vector<16x32xf32>
      %223 = vector.broadcast %2 : vector<1x32xf32> to vector<16x32xf32>
      %224 = arith.mulf %222, %223 : vector<16x32xf32>
      %225 = vector.broadcast %3 : vector<1x32xf32> to vector<16x32xf32>
      %226 = arith.addf %224, %225 : vector<16x32xf32>
      %227 = arith.truncf %226 : vector<16x32xf32> to vector<16x32xbf16>
      %c0_110 = arith.constant 0 : index
      %c0_111 = arith.constant 0 : index
      %228 = vector.load %arg8[%c0_110, %c0_111] : memref<32x64xbf16, #tpu.memory_space<vmem>>, vector<32x64xbf16>
      %cst_112 = arith.constant dense<0.000000e+00> : vector<16x64xf32>
      %229 = tpu.matmul %227, %228, %cst_112 {dimension_numbers = #tpu.dot_dimension_numbers<[1], [0], [0], [1], [0, 0, 1, 1], [], []>} : vector<16x32xbf16>, vector<32x64xbf16>, vector<16x64xf32> -> vector<16x64xf32>
      %c0_113 = arith.constant 0 : index
      %c0_114 = arith.constant 0 : index
      %230 = vector.load %arg9[%c0_113, %c0_114] : memref<1x64xf32, #tpu.memory_space<vmem>>, vector<1x64xf32>
      %231 = vector.broadcast %230 : vector<1x64xf32> to vector<16x64xf32>
      %232 = arith.addf %229, %231 : vector<16x64xf32>
      %233 = arith.truncf %232 : vector<16x64xf32> to vector<16x64xbf16>
      %234 = vector.extract_strided_slice %233 {offsets = [0, 0], sizes = [16, 8], strides = [1, 1]} : vector<16x64xbf16> to vector<16x8xbf16>
      %c0_115 = arith.constant 0 : index
      %c0_116 = arith.constant 0 : index
      %c0_117 = arith.constant 0 : index
      %235 = vector.load %arg19[%c0_115, %c0_116, %c0_117] : memref<4x16x8xbf16, #tpu.memory_space<vmem>>, vector<1x16x8xbf16>
      %236 = vector.shape_cast %235 : vector<1x16x8xbf16> to vector<16x8xbf16>
      %237 = vector.shape_cast %234 : vector<16x8xbf16> to vector<1x16x8xbf16>
      tpu.vector_store %arg19[%c0_115, %c0_116, %c0_117], %237 {strides = array<i32>} : memref<4x16x8xbf16, #tpu.memory_space<vmem>>, vector<1x16x8xbf16>,
      %238 = vector.extract_strided_slice %233 {offsets = [0, 32], sizes = [16, 8], strides = [1, 1]} : vector<16x64xbf16> to vector<16x8xbf16>
      %c0_118 = arith.constant 0 : index
      %c0_119 = arith.constant 0 : index
      %c0_120 = arith.constant 0 : index
      %239 = vector.load %arg20[%c0_118, %c0_119, %c0_120] : memref<4x16x8xbf16, #tpu.memory_space<vmem>>, vector<1x16x8xbf16>
      %240 = vector.shape_cast %239 : vector<1x16x8xbf16> to vector<16x8xbf16>
      %241 = vector.shape_cast %238 : vector<16x8xbf16> to vector<1x16x8xbf16>
      tpu.vector_store %arg20[%c0_118, %c0_119, %c0_120], %241 {strides = array<i32>} : memref<4x16x8xbf16, #tpu.memory_space<vmem>>, vector<1x16x8xbf16>,
      %242 = vector.extract_strided_slice %233 {offsets = [0, 8], sizes = [16, 8], strides = [1, 1]} : vector<16x64xbf16> to vector<16x8xbf16>
      %c1_121 = arith.constant 1 : index
      %c0_122 = arith.constant 0 : index
      %c0_123 = arith.constant 0 : index
      %243 = vector.load %arg19[%c1_121, %c0_122, %c0_123] : memref<4x16x8xbf16, #tpu.memory_space<vmem>>, vector<1x16x8xbf16>
      %244 = vector.shape_cast %243 : vector<1x16x8xbf16> to vector<16x8xbf16>
      %245 = vector.shape_cast %242 : vector<16x8xbf16> to vector<1x16x8xbf16>
      tpu.vector_store %arg19[%c1_121, %c0_122, %c0_123], %245 {strides = array<i32>} : memref<4x16x8xbf16, #tpu.memory_space<vmem>>, vector<1x16x8xbf16>,
      %246 = vector.extract_strided_slice %233 {offsets = [0, 40], sizes = [16, 8], strides = [1, 1]} : vector<16x64xbf16> to vector<16x8xbf16>
      %c1_124 = arith.constant 1 : index
      %c0_125 = arith.constant 0 : index
      %c0_126 = arith.constant 0 : index
      %247 = vector.load %arg20[%c1_124, %c0_125, %c0_126] : memref<4x16x8xbf16, #tpu.memory_space<vmem>>, vector<1x16x8xbf16>
      %248 = vector.shape_cast %247 : vector<1x16x8xbf16> to vector<16x8xbf16>
      %249 = vector.shape_cast %246 : vector<16x8xbf16> to vector<1x16x8xbf16>
      tpu.vector_store %arg20[%c1_124, %c0_125, %c0_126], %249 {strides = array<i32>} : memref<4x16x8xbf16, #tpu.memory_space<vmem>>, vector<1x16x8xbf16>,
      %250 = vector.extract_strided_slice %233 {offsets = [0, 16], sizes = [16, 8], strides = [1, 1]} : vector<16x64xbf16> to vector<16x8xbf16>
      %c2_127 = arith.constant 2 : index
      %c0_128 = arith.constant 0 : index
      %c0_129 = arith.constant 0 : index
      %251 = vector.load %arg19[%c2_127, %c0_128, %c0_129] : memref<4x16x8xbf16, #tpu.memory_space<vmem>>, vector<1x16x8xbf16>
      %252 = vector.shape_cast %251 : vector<1x16x8xbf16> to vector<16x8xbf16>
      %253 = vector.shape_cast %250 : vector<16x8xbf16> to vector<1x16x8xbf16>
      tpu.vector_store %arg19[%c2_127, %c0_128, %c0_129], %253 {strides = array<i32>} : memref<4x16x8xbf16, #tpu.memory_space<vmem>>, vector<1x16x8xbf16>,
      %254 = vector.extract_strided_slice %233 {offsets = [0, 48], sizes = [16, 8], strides = [1, 1]} : vector<16x64xbf16> to vector<16x8xbf16>
      %c2_130 = arith.constant 2 : index
      %c0_131 = arith.constant 0 : index
      %c0_132 = arith.constant 0 : index
      %255 = vector.load %arg20[%c2_130, %c0_131, %c0_132] : memref<4x16x8xbf16, #tpu.memory_space<vmem>>, vector<1x16x8xbf16>
      %256 = vector.shape_cast %255 : vector<1x16x8xbf16> to vector<16x8xbf16>
      %257 = vector.shape_cast %254 : vector<16x8xbf16> to vector<1x16x8xbf16>
      tpu.vector_store %arg20[%c2_130, %c0_131, %c0_132], %257 {strides = array<i32>} : memref<4x16x8xbf16, #tpu.memory_space<vmem>>, vector<1x16x8xbf16>,
      %258 = vector.extract_strided_slice %233 {offsets = [0, 24], sizes = [16, 8], strides = [1, 1]} : vector<16x64xbf16> to vector<16x8xbf16>
      %c3_133 = arith.constant 3 : index
      %c0_134 = arith.constant 0 : index
      %c0_135 = arith.constant 0 : index
      %259 = vector.load %arg19[%c3_133, %c0_134, %c0_135] : memref<4x16x8xbf16, #tpu.memory_space<vmem>>, vector<1x16x8xbf16>
      %260 = vector.shape_cast %259 : vector<1x16x8xbf16> to vector<16x8xbf16>
      %261 = vector.shape_cast %258 : vector<16x8xbf16> to vector<1x16x8xbf16>
      tpu.vector_store %arg19[%c3_133, %c0_134, %c0_135], %261 {strides = array<i32>} : memref<4x16x8xbf16, #tpu.memory_space<vmem>>, vector<1x16x8xbf16>,
      %262 = vector.extract_strided_slice %233 {offsets = [0, 56], sizes = [16, 8], strides = [1, 1]} : vector<16x64xbf16> to vector<16x8xbf16>
      %c3_136 = arith.constant 3 : index
      %c0_137 = arith.constant 0 : index
      %c0_138 = arith.constant 0 : index
      %263 = vector.load %arg20[%c3_136, %c0_137, %c0_138] : memref<4x16x8xbf16, #tpu.memory_space<vmem>>, vector<1x16x8xbf16>
      %264 = vector.shape_cast %263 : vector<1x16x8xbf16> to vector<16x8xbf16>
      %265 = vector.shape_cast %262 : vector<16x8xbf16> to vector<1x16x8xbf16>
      tpu.vector_store %arg20[%c3_136, %c0_137, %c0_138], %265 {strides = array<i32>} : memref<4x16x8xbf16, #tpu.memory_space<vmem>>, vector<1x16x8xbf16>,
    } else {
    }
    %cst = arith.constant dense<0.000000e+00> : vector<8xf32>
    %7 = vector.multi_reduction <add>, %1, %cst [1] : vector<8x32xf32> to vector<8xf32>
    %8 = vector.shape_cast %7 : vector<8xf32> to vector<8x1xf32>
    %cst_7 = arith.constant 3.200000e+01 : f32
    %9 = vector.broadcast %cst_7 : f32 to vector<8x1xf32>
    %10 = arith.divf %8, %9 : vector<8x1xf32>
    %11 = vector.broadcast %10 : vector<8x1xf32> to vector<8x32xf32>
    %12 = arith.subf %1, %11 : vector<8x32xf32>
    %13 = arith.mulf %12, %12 : vector<8x32xf32>
    %cst_8 = arith.constant dense<0.000000e+00> : vector<8xf32>
    %14 = vector.multi_reduction <add>, %13, %cst_8 [1] : vector<8x32xf32> to vector<8xf32>
    %15 = vector.shape_cast %14 : vector<8xf32> to vector<8x1xf32>
    %cst_9 = arith.constant 3.200000e+01 : f32
    %16 = vector.broadcast %cst_9 : f32 to vector<8x1xf32>
    %17 = arith.divf %15, %16 : vector<8x1xf32>
    %18 = vector.broadcast %10 : vector<8x1xf32> to vector<8x32xf32>
    %19 = arith.subf %1, %18 : vector<8x32xf32>
    %cst_10 = arith.constant 9.99999974E-6 : f32
    %20 = vector.broadcast %cst_10 : f32 to vector<8x1xf32>
    %21 = arith.addf %17, %20 : vector<8x1xf32>
    %22 = math.rsqrt %21 : vector<8x1xf32>
    %23 = vector.broadcast %22 : vector<8x1xf32> to vector<8x32xf32>
    %24 = arith.mulf %19, %23 : vector<8x32xf32>
    %25 = vector.broadcast %2 : vector<1x32xf32> to vector<8x32xf32>
    %26 = arith.mulf %24, %25 : vector<8x32xf32>
    %27 = vector.broadcast %3 : vector<1x32xf32> to vector<8x32xf32>
    %28 = arith.addf %26, %27 : vector<8x32xf32>
    %29 = arith.truncf %28 : vector<8x32xf32> to vector<8x32xbf16>
    %c0_11 = arith.constant 0 : index
    %c0_12 = arith.constant 0 : index
    %30 = vector.load %arg6[%c0_11, %c0_12] : memref<32x32xbf16, #tpu.memory_space<vmem>>, vector<32x32xbf16>
    %cst_13 = arith.constant dense<0.000000e+00> : vector<8x32xf32>
    %31 = tpu.matmul %29, %30, %cst_13 {dimension_numbers = #tpu.dot_dimension_numbers<[1], [0], [0], [1], [0, 0, 1, 1], [], []>} : vector<8x32xbf16>, vector<32x32xbf16>, vector<8x32xf32> -> vector<8x32xf32>
    %c0_14 = arith.constant 0 : index
    %c0_15 = arith.constant 0 : index
    %32 = vector.load %arg7[%c0_14, %c0_15] : memref<1x32xf32, #tpu.memory_space<vmem>>, vector<1x32xf32>
    %33 = vector.broadcast %32 : vector<1x32xf32> to vector<8x32xf32>
    %34 = arith.addf %31, %33 : vector<8x32xf32>
    %35 = arith.truncf %34 : vector<8x32xf32> to vector<8x32xbf16>
    %36 = vector.extract_strided_slice %35 {offsets = [0, 0], sizes = [8, 8], strides = [1, 1]} : vector<8x32xbf16> to vector<8x8xbf16>
    %c0_16 = arith.constant 0 : index
    %c0_17 = arith.constant 0 : index
    %c0_18 = arith.constant 0 : index
    %37 = vector.load %arg19[%c0_16, %c0_17, %c0_18] : memref<4x16x8xbf16, #tpu.memory_space<vmem>>, vector<1x16x8xbf16>
    %38 = vector.shape_cast %37 : vector<1x16x8xbf16> to vector<16x8xbf16>
    %cst_19 = arith.constant dense<0.000000e+00> : vector<8x16xf32>
    %39 = tpu.matmul %36, %38, %cst_19 {dimension_numbers = #tpu.dot_dimension_numbers<[1], [1], [0], [0], [0, 0, 1, 0], [], []>} : vector<8x8xbf16>, vector<16x8xbf16>, vector<8x16xf32> -> vector<8x16xf32>
    %cst_20 = arith.constant dense<0xFF800000> : vector<8xf32>
    %40 = vector.multi_reduction <maximumf>, %39, %cst_20 [1] : vector<8x16xf32> to vector<8xf32>
    %41 = vector.shape_cast %40 : vector<8xf32> to vector<8x1xf32>
    %42 = vector.broadcast %41 : vector<8x1xf32> to vector<8x16xf32>
    %43 = arith.subf %39, %42 : vector<8x16xf32>
    %44 = math.exp %43 : vector<8x16xf32>
    %cst_21 = arith.constant dense<0.000000e+00> : vector<8xf32>
    %45 = vector.multi_reduction <add>, %44, %cst_21 [1] : vector<8x16xf32> to vector<8xf32>
    %46 = vector.shape_cast %45 : vector<8xf32> to vector<8x1xf32>
    %47 = tpu.reciprocal %46 {approx = true} : vector<8x1xf32> -> vector<8x1xf32>
    %48 = arith.truncf %44 : vector<8x16xf32> to vector<8x16xbf16>
    %c0_22 = arith.constant 0 : index
    %c0_23 = arith.constant 0 : index
    %c0_24 = arith.constant 0 : index
    %49 = vector.load %arg20[%c0_22, %c0_23, %c0_24] : memref<4x16x8xbf16, #tpu.memory_space<vmem>>, vector<1x16x8xbf16>
    %50 = vector.shape_cast %49 : vector<1x16x8xbf16> to vector<16x8xbf16>
    %cst_25 = arith.constant dense<0.000000e+00> : vector<8x8xf32>
    %51 = tpu.matmul %48, %50, %cst_25 {dimension_numbers = #tpu.dot_dimension_numbers<[1], [0], [0], [1], [0, 0, 1, 1], [], []>} : vector<8x16xbf16>, vector<16x8xbf16>, vector<8x8xf32> -> vector<8x8xf32>
    %52 = vector.broadcast %47 : vector<8x1xf32> to vector<8x8xf32>
    %53 = arith.mulf %51, %52 : vector<8x8xf32>
    %54 = arith.truncf %53 : vector<8x8xf32> to vector<8x8xbf16>
    %c0_26 = arith.constant 0 : index
    %c0_27 = arith.constant 0 : index
    %55 = vector.load %arg21[%c0_26, %c0_27] : memref<8x32xbf16, #tpu.memory_space<vmem>>, vector<8x8xbf16>
    tpu.vector_store %arg21[%c0_26, %c0_27], %54 {strides = array<i32>} : memref<8x32xbf16, #tpu.memory_space<vmem>>, vector<8x8xbf16>,
    %56 = vector.extract_strided_slice %35 {offsets = [0, 8], sizes = [8, 8], strides = [1, 1]} : vector<8x32xbf16> to vector<8x8xbf16>
    %c1 = arith.constant 1 : index
    %c0_28 = arith.constant 0 : index
    %c0_29 = arith.constant 0 : index
    %57 = vector.load %arg19[%c1, %c0_28, %c0_29] : memref<4x16x8xbf16, #tpu.memory_space<vmem>>, vector<1x16x8xbf16>
    %58 = vector.shape_cast %57 : vector<1x16x8xbf16> to vector<16x8xbf16>
    %cst_30 = arith.constant dense<0.000000e+00> : vector<8x16xf32>
    %59 = tpu.matmul %56, %58, %cst_30 {dimension_numbers = #tpu.dot_dimension_numbers<[1], [1], [0], [0], [0, 0, 1, 0], [], []>} : vector<8x8xbf16>, vector<16x8xbf16>, vector<8x16xf32> -> vector<8x16xf32>
    %cst_31 = arith.constant dense<0xFF800000> : vector<8xf32>
    %60 = vector.multi_reduction <maximumf>, %59, %cst_31 [1] : vector<8x16xf32> to vector<8xf32>
    %61 = vector.shape_cast %60 : vector<8xf32> to vector<8x1xf32>
    %62 = vector.broadcast %61 : vector<8x1xf32> to vector<8x16xf32>
    %63 = arith.subf %59, %62 : vector<8x16xf32>
    %64 = math.exp %63 : vector<8x16xf32>
    %cst_32 = arith.constant dense<0.000000e+00> : vector<8xf32>
    %65 = vector.multi_reduction <add>, %64, %cst_32 [1] : vector<8x16xf32> to vector<8xf32>
    %66 = vector.shape_cast %65 : vector<8xf32> to vector<8x1xf32>
    %67 = tpu.reciprocal %66 {approx = true} : vector<8x1xf32> -> vector<8x1xf32>
    %68 = arith.truncf %64 : vector<8x16xf32> to vector<8x16xbf16>
    %c1_33 = arith.constant 1 : index
    %c0_34 = arith.constant 0 : index
    %c0_35 = arith.constant 0 : index
    %69 = vector.load %arg20[%c1_33, %c0_34, %c0_35] : memref<4x16x8xbf16, #tpu.memory_space<vmem>>, vector<1x16x8xbf16>
    %70 = vector.shape_cast %69 : vector<1x16x8xbf16> to vector<16x8xbf16>
    %cst_36 = arith.constant dense<0.000000e+00> : vector<8x8xf32>
    %71 = tpu.matmul %68, %70, %cst_36 {dimension_numbers = #tpu.dot_dimension_numbers<[1], [0], [0], [1], [0, 0, 1, 1], [], []>} : vector<8x16xbf16>, vector<16x8xbf16>, vector<8x8xf32> -> vector<8x8xf32>
    %72 = vector.broadcast %67 : vector<8x1xf32> to vector<8x8xf32>
    %73 = arith.mulf %71, %72 : vector<8x8xf32>
    %74 = arith.truncf %73 : vector<8x8xf32> to vector<8x8xbf16>
    %c0_37 = arith.constant 0 : index
    %c8 = arith.constant 8 : index
    %75 = vector.load %arg21[%c0_37, %c8] : memref<8x32xbf16, #tpu.memory_space<vmem>>, vector<8x8xbf16>
    tpu.vector_store %arg21[%c0_37, %c8], %74 {strides = array<i32>} : memref<8x32xbf16, #tpu.memory_space<vmem>>, vector<8x8xbf16>,
    %76 = vector.extract_strided_slice %35 {offsets = [0, 16], sizes = [8, 8], strides = [1, 1]} : vector<8x32xbf16> to vector<8x8xbf16>
    %c2 = arith.constant 2 : index
    %c0_38 = arith.constant 0 : index
    %c0_39 = arith.constant 0 : index
    %77 = vector.load %arg19[%c2, %c0_38, %c0_39] : memref<4x16x8xbf16, #tpu.memory_space<vmem>>, vector<1x16x8xbf16>
    %78 = vector.shape_cast %77 : vector<1x16x8xbf16> to vector<16x8xbf16>
    %cst_40 = arith.constant dense<0.000000e+00> : vector<8x16xf32>
    %79 = tpu.matmul %76, %78, %cst_40 {dimension_numbers = #tpu.dot_dimension_numbers<[1], [1], [0], [0], [0, 0, 1, 0], [], []>} : vector<8x8xbf16>, vector<16x8xbf16>, vector<8x16xf32> -> vector<8x16xf32>
    %cst_41 = arith.constant dense<0xFF800000> : vector<8xf32>
    %80 = vector.multi_reduction <maximumf>, %79, %cst_41 [1] : vector<8x16xf32> to vector<8xf32>
    %81 = vector.shape_cast %80 : vector<8xf32> to vector<8x1xf32>
    %82 = vector.broadcast %81 : vector<8x1xf32> to vector<8x16xf32>
    %83 = arith.subf %79, %82 : vector<8x16xf32>
    %84 = math.exp %83 : vector<8x16xf32>
    %cst_42 = arith.constant dense<0.000000e+00> : vector<8xf32>
    %85 = vector.multi_reduction <add>, %84, %cst_42 [1] : vector<8x16xf32> to vector<8xf32>
    %86 = vector.shape_cast %85 : vector<8xf32> to vector<8x1xf32>
    %87 = tpu.reciprocal %86 {approx = true} : vector<8x1xf32> -> vector<8x1xf32>
    %88 = arith.truncf %84 : vector<8x16xf32> to vector<8x16xbf16>
    %c2_43 = arith.constant 2 : index
    %c0_44 = arith.constant 0 : index
    %c0_45 = arith.constant 0 : index
    %89 = vector.load %arg20[%c2_43, %c0_44, %c0_45] : memref<4x16x8xbf16, #tpu.memory_space<vmem>>, vector<1x16x8xbf16>
    %90 = vector.shape_cast %89 : vector<1x16x8xbf16> to vector<16x8xbf16>
    %cst_46 = arith.constant dense<0.000000e+00> : vector<8x8xf32>
    %91 = tpu.matmul %88, %90, %cst_46 {dimension_numbers = #tpu.dot_dimension_numbers<[1], [0], [0], [1], [0, 0, 1, 1], [], []>} : vector<8x16xbf16>, vector<16x8xbf16>, vector<8x8xf32> -> vector<8x8xf32>
    %92 = vector.broadcast %87 : vector<8x1xf32> to vector<8x8xf32>
    %93 = arith.mulf %91, %92 : vector<8x8xf32>
    %94 = arith.truncf %93 : vector<8x8xf32> to vector<8x8xbf16>
    %c0_47 = arith.constant 0 : index
    %c16 = arith.constant 16 : index
    %95 = vector.load %arg21[%c0_47, %c16] : memref<8x32xbf16, #tpu.memory_space<vmem>>, vector<8x8xbf16>
    tpu.vector_store %arg21[%c0_47, %c16], %94 {strides = array<i32>} : memref<8x32xbf16, #tpu.memory_space<vmem>>, vector<8x8xbf16>,
    %96 = vector.extract_strided_slice %35 {offsets = [0, 24], sizes = [8, 8], strides = [1, 1]} : vector<8x32xbf16> to vector<8x8xbf16>
    %c3 = arith.constant 3 : index
    %c0_48 = arith.constant 0 : index
    %c0_49 = arith.constant 0 : index
    %97 = vector.load %arg19[%c3, %c0_48, %c0_49] : memref<4x16x8xbf16, #tpu.memory_space<vmem>>, vector<1x16x8xbf16>
    %98 = vector.shape_cast %97 : vector<1x16x8xbf16> to vector<16x8xbf16>
    %cst_50 = arith.constant dense<0.000000e+00> : vector<8x16xf32>
    %99 = tpu.matmul %96, %98, %cst_50 {dimension_numbers = #tpu.dot_dimension_numbers<[1], [1], [0], [0], [0, 0, 1, 0], [], []>} : vector<8x8xbf16>, vector<16x8xbf16>, vector<8x16xf32> -> vector<8x16xf32>
    %cst_51 = arith.constant dense<0xFF800000> : vector<8xf32>
    %100 = vector.multi_reduction <maximumf>, %99, %cst_51 [1] : vector<8x16xf32> to vector<8xf32>
    %101 = vector.shape_cast %100 : vector<8xf32> to vector<8x1xf32>
    %102 = vector.broadcast %101 : vector<8x1xf32> to vector<8x16xf32>
    %103 = arith.subf %99, %102 : vector<8x16xf32>
    %104 = math.exp %103 : vector<8x16xf32>
    %cst_52 = arith.constant dense<0.000000e+00> : vector<8xf32>
    %105 = vector.multi_reduction <add>, %104, %cst_52 [1] : vector<8x16xf32> to vector<8xf32>
    %106 = vector.shape_cast %105 : vector<8xf32> to vector<8x1xf32>
    %107 = tpu.reciprocal %106 {approx = true} : vector<8x1xf32> -> vector<8x1xf32>
    %108 = arith.truncf %104 : vector<8x16xf32> to vector<8x16xbf16>
    %c3_53 = arith.constant 3 : index
    %c0_54 = arith.constant 0 : index
    %c0_55 = arith.constant 0 : index
    %109 = vector.load %arg20[%c3_53, %c0_54, %c0_55] : memref<4x16x8xbf16, #tpu.memory_space<vmem>>, vector<1x16x8xbf16>
    %110 = vector.shape_cast %109 : vector<1x16x8xbf16> to vector<16x8xbf16>
    %cst_56 = arith.constant dense<0.000000e+00> : vector<8x8xf32>
    %111 = tpu.matmul %108, %110, %cst_56 {dimension_numbers = #tpu.dot_dimension_numbers<[1], [0], [0], [1], [0, 0, 1, 1], [], []>} : vector<8x16xbf16>, vector<16x8xbf16>, vector<8x8xf32> -> vector<8x8xf32>
    %112 = vector.broadcast %107 : vector<8x1xf32> to vector<8x8xf32>
    %113 = arith.mulf %111, %112 : vector<8x8xf32>
    %114 = arith.truncf %113 : vector<8x8xf32> to vector<8x8xbf16>
    %c0_57 = arith.constant 0 : index
    %c24 = arith.constant 24 : index
    %115 = vector.load %arg21[%c0_57, %c24] : memref<8x32xbf16, #tpu.memory_space<vmem>>, vector<8x8xbf16>
    tpu.vector_store %arg21[%c0_57, %c24], %114 {strides = array<i32>} : memref<8x32xbf16, #tpu.memory_space<vmem>>, vector<8x8xbf16>,
    %c0_58 = arith.constant 0 : index
    %c0_59 = arith.constant 0 : index
    %116 = vector.load %arg21[%c0_58, %c0_59] : memref<8x32xbf16, #tpu.memory_space<vmem>>, vector<8x32xbf16>
    %c0_60 = arith.constant 0 : index
    %c0_61 = arith.constant 0 : index
    %117 = vector.load %arg10[%c0_60, %c0_61] : memref<32x32xbf16, #tpu.memory_space<vmem>>, vector<32x32xbf16>
    %cst_62 = arith.constant dense<0.000000e+00> : vector<8x32xf32>
    %118 = tpu.matmul %116, %117, %cst_62 {dimension_numbers = #tpu.dot_dimension_numbers<[1], [0], [0], [1], [0, 0, 1, 1], [], []>} : vector<8x32xbf16>, vector<32x32xbf16>, vector<8x32xf32> -> vector<8x32xf32>
    %c0_63 = arith.constant 0 : index
    %c0_64 = arith.constant 0 : index
    %119 = vector.load %arg11[%c0_63, %c0_64] : memref<1x32xf32, #tpu.memory_space<vmem>>, vector<1x32xf32>
    %120 = vector.broadcast %119 : vector<1x32xf32> to vector<8x32xf32>
    %121 = arith.addf %118, %120 : vector<8x32xf32>
    %122 = arith.addf %1, %121 : vector<8x32xf32>
    %c0_65 = arith.constant 0 : index
    %c0_66 = arith.constant 0 : index
    %123 = vector.load %arg12[%c0_65, %c0_66] : memref<1x32xf32, #tpu.memory_space<vmem>>, vector<1x32xf32>
    %c0_67 = arith.constant 0 : index
    %c0_68 = arith.constant 0 : index
    %124 = vector.load %arg13[%c0_67, %c0_68] : memref<1x32xf32, #tpu.memory_space<vmem>>, vector<1x32xf32>
    %cst_69 = arith.constant dense<0.000000e+00> : vector<8xf32>
    %125 = vector.multi_reduction <add>, %122, %cst_69 [1] : vector<8x32xf32> to vector<8xf32>
    %126 = vector.shape_cast %125 : vector<8xf32> to vector<8x1xf32>
    %cst_70 = arith.constant 3.200000e+01 : f32
    %127 = vector.broadcast %cst_70 : f32 to vector<8x1xf32>
    %128 = arith.divf %126, %127 : vector<8x1xf32>
    %129 = vector.broadcast %128 : vector<8x1xf32> to vector<8x32xf32>
    %130 = arith.subf %122, %129 : vector<8x32xf32>
    %131 = arith.mulf %130, %130 : vector<8x32xf32>
    %cst_71 = arith.constant dense<0.000000e+00> : vector<8xf32>
    %132 = vector.multi_reduction <add>, %131, %cst_71 [1] : vector<8x32xf32> to vector<8xf32>
    %133 = vector.shape_cast %132 : vector<8xf32> to vector<8x1xf32>
    %cst_72 = arith.constant 3.200000e+01 : f32
    %134 = vector.broadcast %cst_72 : f32 to vector<8x1xf32>
    %135 = arith.divf %133, %134 : vector<8x1xf32>
    %136 = vector.broadcast %128 : vector<8x1xf32> to vector<8x32xf32>
    %137 = arith.subf %122, %136 : vector<8x32xf32>
    %cst_73 = arith.constant 9.99999974E-6 : f32
    %138 = vector.broadcast %cst_73 : f32 to vector<8x1xf32>
    %139 = arith.addf %135, %138 : vector<8x1xf32>
    %140 = math.rsqrt %139 : vector<8x1xf32>
    %141 = vector.broadcast %140 : vector<8x1xf32> to vector<8x32xf32>
    %142 = arith.mulf %137, %141 : vector<8x32xf32>
    %143 = vector.broadcast %123 : vector<1x32xf32> to vector<8x32xf32>
    %144 = arith.mulf %142, %143 : vector<8x32xf32>
    %145 = vector.broadcast %124 : vector<1x32xf32> to vector<8x32xf32>
    %146 = arith.addf %144, %145 : vector<8x32xf32>
    %147 = arith.truncf %146 : vector<8x32xf32> to vector<8x32xbf16>
    %c0_74 = arith.constant 0 : index
    %c0_75 = arith.constant 0 : index
    %148 = vector.load %arg14[%c0_74, %c0_75] : memref<32x64xbf16, #tpu.memory_space<vmem>>, vector<32x64xbf16>
    %cst_76 = arith.constant dense<0.000000e+00> : vector<8x64xf32>
    %149 = tpu.matmul %147, %148, %cst_76 {dimension_numbers = #tpu.dot_dimension_numbers<[1], [0], [0], [1], [0, 0, 1, 1], [], []>} : vector<8x32xbf16>, vector<32x64xbf16>, vector<8x64xf32> -> vector<8x64xf32>
    %c0_77 = arith.constant 0 : index
    %c0_78 = arith.constant 0 : index
    %150 = vector.load %arg15[%c0_77, %c0_78] : memref<1x64xf32, #tpu.memory_space<vmem>>, vector<1x64xf32>
    %151 = vector.broadcast %150 : vector<1x64xf32> to vector<8x64xf32>
    %152 = arith.addf %149, %151 : vector<8x64xf32>
    %cst_79 = arith.constant 5.000000e-01 : f32
    %153 = vector.broadcast %cst_79 : f32 to vector<8x64xf32>
    %154 = arith.mulf %153, %152 : vector<8x64xf32>
    %cst_80 = arith.constant 0.707106769 : f32
    %155 = vector.broadcast %cst_80 : f32 to vector<8x64xf32>
    %156 = arith.mulf %152, %155 : vector<8x64xf32>
    %cst_81 = arith.constant 0.000000e+00 : f32
    %157 = vector.broadcast %cst_81 : f32 to vector<8x64xf32>
    %158 = arith.cmpf oge, %156, %157 : vector<8x64xf32>
    %cst_82 = arith.constant 1.000000e+00 : f32
    %cst_83 = arith.constant -1.000000e+00 : f32
    %159 = vector.broadcast %cst_82 : f32 to vector<8x64xf32>
    %160 = vector.broadcast %cst_83 : f32 to vector<8x64xf32>
    %161 = arith.select %158, %159, %160 : vector<8x64xi1>, vector<8x64xf32>
    %162 = math.absf %156 : vector<8x64xf32>
    %cst_84 = arith.constant 0.327591091 : f32
    %163 = vector.broadcast %cst_84 : f32 to vector<8x64xf32>
    %164 = arith.mulf %163, %162 : vector<8x64xf32>
    %cst_85 = arith.constant 1.000000e+00 : f32
    %165 = vector.broadcast %cst_85 : f32 to vector<8x64xf32>
    %166 = arith.addf %165, %164 : vector<8x64xf32>
    %167 = tpu.reciprocal %166 {approx = true} : vector<8x64xf32> -> vector<8x64xf32>
    %cst_86 = arith.constant 1.06140542 : f32
    %168 = vector.broadcast %cst_86 : f32 to vector<8x64xf32>
    %169 = arith.mulf %168, %167 : vector<8x64xf32>
    %cst_87 = arith.constant -1.45315206 : f32
    %170 = vector.broadcast %cst_87 : f32 to vector<8x64xf32>
    %171 = arith.addf %169, %170 : vector<8x64xf32>
    %172 = arith.mulf %171, %167 : vector<8x64xf32>
    %cst_88 = arith.constant 1.42141378 : f32
    %173 = vector.broadcast %cst_88 : f32 to vector<8x64xf32>
    %174 = arith.addf %172, %173 : vector<8x64xf32>
    %175 = arith.mulf %174, %167 : vector<8x64xf32>
    %cst_89 = arith.constant -0.284496725 : f32
    %176 = vector.broadcast %cst_89 : f32 to vector<8x64xf32>
    %177 = arith.addf %175, %176 : vector<8x64xf32>
    %178 = arith.mulf %177, %167 : vector<8x64xf32>
    %cst_90 = arith.constant 0.254829586 : f32
    %179 = vector.broadcast %cst_90 : f32 to vector<8x64xf32>
    %180 = arith.addf %178, %179 : vector<8x64xf32>
    %181 = arith.mulf %180, %167 : vector<8x64xf32>
    %cst_91 = arith.constant 0.000000e+00 : f32
    %182 = vector.broadcast %cst_91 : f32 to vector<8x64xf32>
    %183 = arith.subf %182, %162 : vector<8x64xf32>
    %184 = arith.mulf %183, %162 : vector<8x64xf32>
    %185 = math.exp %184 : vector<8x64xf32>
    %186 = arith.mulf %181, %185 : vector<8x64xf32>
    %cst_92 = arith.constant 1.000000e+00 : f32
    %187 = vector.broadcast %cst_92 : f32 to vector<8x64xf32>
    %188 = arith.subf %187, %186 : vector<8x64xf32>
    %189 = arith.mulf %161, %188 : vector<8x64xf32>
    %cst_93 = arith.constant 1.000000e+00 : f32
    %190 = vector.broadcast %cst_93 : f32 to vector<8x64xf32>
    %191 = arith.addf %190, %189 : vector<8x64xf32>
    %192 = arith.mulf %154, %191 : vector<8x64xf32>
    %193 = arith.truncf %192 : vector<8x64xf32> to vector<8x64xbf16>
    %c0_94 = arith.constant 0 : index
    %c0_95 = arith.constant 0 : index
    %194 = vector.load %arg16[%c0_94, %c0_95] : memref<64x32xbf16, #tpu.memory_space<vmem>>, vector<64x32xbf16>
    %cst_96 = arith.constant dense<0.000000e+00> : vector<8x32xf32>
    %195 = tpu.matmul %193, %194, %cst_96 {dimension_numbers = #tpu.dot_dimension_numbers<[1], [0], [0], [1], [0, 0, 1, 1], [], []>} : vector<8x64xbf16>, vector<64x32xbf16>, vector<8x32xf32> -> vector<8x32xf32>
    %c0_97 = arith.constant 0 : index
    %c0_98 = arith.constant 0 : index
    %196 = vector.load %arg17[%c0_97, %c0_98] : memref<1x32xf32, #tpu.memory_space<vmem>>, vector<1x32xf32>
    %197 = vector.broadcast %196 : vector<1x32xf32> to vector<8x32xf32>
    %198 = arith.addf %195, %197 : vector<8x32xf32>
    %199 = arith.addf %122, %198 : vector<8x32xf32>
    %c0_99 = arith.constant 0 : index
    %c0_100 = arith.constant 0 : index
    %c0_101 = arith.constant 0 : index
    %200 = vector.load %arg18[%c0_99, %c0_100, %c0_101] : memref<1x8x32xf32, #tpu.memory_space<vmem>>, vector<1x8x32xf32>
    %201 = vector.shape_cast %200 : vector<1x8x32xf32> to vector<8x32xf32>
    %202 = vector.shape_cast %199 : vector<8x32xf32> to vector<1x8x32xf32>
    tpu.vector_store %arg18[%c0_99, %c0_100, %c0_101], %202 {strides = array<i32>} : memref<1x8x32xf32, #tpu.memory_space<vmem>>, vector<1x8x32xf32>,
    return
  }
  func.func @transform_0(%arg0: i32, %arg1: i32) -> (i32, i32, i32) {
    %c0_i32 = arith.constant 0 : i32
    %c0_i32_0 = arith.constant 0 : i32
    return %arg0, %arg1, %c0_i32 : i32, i32, i32
  }
  func.func @transform_1(%arg0: i32, %arg1: i32) -> (i32, i32, i32) {
    %c0_i32 = arith.constant 0 : i32
    %c0_i32_0 = arith.constant 0 : i32
    %c0_i32_1 = arith.constant 0 : i32
    return %arg0, %c0_i32, %c0_i32_0 : i32, i32, i32
  }
  func.func @transform_2(%arg0: i32, %arg1: i32) -> (i32, i32) {
    %c0_i32 = arith.constant 0 : i32
    %c0_i32_0 = arith.constant 0 : i32
    %c0_i32_1 = arith.constant 0 : i32
    return %c0_i32, %c0_i32_0 : i32, i32
  }
  func.func @transform_3(%arg0: i32, %arg1: i32) -> (i32, i32) {
    %c0_i32 = arith.constant 0 : i32
    %c0_i32_0 = arith.constant 0 : i32
    %c0_i32_1 = arith.constant 0 : i32
    return %c0_i32, %c0_i32_0 : i32, i32
  }
  func.func @transform_4(%arg0: i32, %arg1: i32) -> (i32, i32) {
    %c0_i32 = arith.constant 0 : i32
    %c0_i32_0 = arith.constant 0 : i32
    %c0_i32_1 = arith.constant 0 : i32
    return %c0_i32, %c0_i32_0 : i32, i32
  }
  func.func @transform_5(%arg0: i32, %arg1: i32) -> (i32, i32) {
    %c0_i32 = arith.constant 0 : i32
    %c0_i32_0 = arith.constant 0 : i32
    %c0_i32_1 = arith.constant 0 : i32
    return %c0_i32, %c0_i32_0 : i32, i32
  }
  func.func @transform_6(%arg0: i32, %arg1: i32) -> (i32, i32) {
    %c0_i32 = arith.constant 0 : i32
    %c0_i32_0 = arith.constant 0 : i32
    %c0_i32_1 = arith.constant 0 : i32
    return %c0_i32, %c0_i32_0 : i32, i32
  }
  func.func @transform_7(%arg0: i32, %arg1: i32) -> (i32, i32) {
    %c0_i32 = arith.constant 0 : i32
    %c0_i32_0 = arith.constant 0 : i32
    %c0_i32_1 = arith.constant 0 : i32
    return %c0_i32, %c0_i32_0 : i32, i32
  }
  func.func @transform_8(%arg0: i32, %arg1: i32) -> (i32, i32) {
    %c0_i32 = arith.constant 0 : i32
    %c0_i32_0 = arith.constant 0 : i32
    %c0_i32_1 = arith.constant 0 : i32
    return %c0_i32, %c0_i32_0 : i32, i32
  }
  func.func @transform_9(%arg0: i32, %arg1: i32) -> (i32, i32) {
    %c0_i32 = arith.constant 0 : i32
    %c0_i32_0 = arith.constant 0 : i32
    %c0_i32_1 = arith.constant 0 : i32
    return %c0_i32, %c0_i32_0 : i32, i32
  }
  func.func @transform_10(%arg0: i32, %arg1: i32) -> (i32, i32) {
    %c0_i32 = arith.constant 0 : i32
    %c0_i32_0 = arith.constant 0 : i32
    %c0_i32_1 = arith.constant 0 : i32
    return %c0_i32, %c0_i32_0 : i32, i32
  }
  func.func @transform_11(%arg0: i32, %arg1: i32) -> (i32, i32) {
    %c0_i32 = arith.constant 0 : i32
    %c0_i32_0 = arith.constant 0 : i32
    %c0_i32_1 = arith.constant 0 : i32
    return %c0_i32, %c0_i32_0 : i32, i32
  }
  func.func @transform_12(%arg0: i32, %arg1: i32) -> (i32, i32) {
    %c0_i32 = arith.constant 0 : i32
    %c0_i32_0 = arith.constant 0 : i32
    %c0_i32_1 = arith.constant 0 : i32
    return %c0_i32, %c0_i32_0 : i32, i32
  }
  func.func @transform_13(%arg0: i32, %arg1: i32) -> (i32, i32) {
    %c0_i32 = arith.constant 0 : i32
    %c0_i32_0 = arith.constant 0 : i32
    %c0_i32_1 = arith.constant 0 : i32
    return %c0_i32, %c0_i32_0 : i32, i32
  }
  func.func @transform_14(%arg0: i32, %arg1: i32) -> (i32, i32) {
    %c0_i32 = arith.constant 0 : i32
    %c0_i32_0 = arith.constant 0 : i32
    %c0_i32_1 = arith.constant 0 : i32
    return %c0_i32, %c0_i32_0 : i32, i32
  }
  func.func @transform_15(%arg0: i32, %arg1: i32) -> (i32, i32) {
    %c0_i32 = arith.constant 0 : i32
    %c0_i32_0 = arith.constant 0 : i32
    %c0_i32_1 = arith.constant 0 : i32
    return %c0_i32, %c0_i32_0 : i32, i32
  }
  func.func @transform_16(%arg0: i32, %arg1: i32) -> (i32, i32, i32) {
    %c0_i32 = arith.constant 0 : i32
    %c0_i32_0 = arith.constant 0 : i32
    return %arg0, %arg1, %c0_i32 : i32, i32, i32
  }
}

module attributes {stable_mosaic.version = 11 : i64} {
  func.func @attention_block_kernel(%arg0: i32, %arg1: i32, %arg2: memref<1x8x32xf32, #tpu.memory_space<vmem>>, %arg3: memref<1x16x32xf32, #tpu.memory_space<vmem>>, %arg4: memref<1x32xf32, #tpu.memory_space<vmem>>, %arg5: memref<1x32xf32, #tpu.memory_space<vmem>>, %arg6: memref<32x32xbf16, #tpu.memory_space<vmem>>, %arg7: memref<1x32xf32, #tpu.memory_space<vmem>>, %arg8: memref<32x64xbf16, #tpu.memory_space<vmem>>, %arg9: memref<1x64xf32, #tpu.memory_space<vmem>>, %arg10: memref<32x32xbf16, #tpu.memory_space<vmem>>, %arg11: memref<1x32xf32, #tpu.memory_space<vmem>>, %arg12: memref<1x32xf32, #tpu.memory_space<vmem>>, %arg13: memref<1x32xf32, #tpu.memory_space<vmem>>, %arg14: memref<32x64xbf16, #tpu.memory_space<vmem>>, %arg15: memref<1x64xf32, #tpu.memory_space<vmem>>, %arg16: memref<64x32xbf16, #tpu.memory_space<vmem>>, %arg17: memref<1x32xf32, #tpu.memory_space<vmem>>, %arg18: memref<1x8x32xf32, #tpu.memory_space<vmem>>, %arg19: memref<4x16x8xbf16, #tpu.memory_space<vmem>>, %arg20: memref<4x16x8xbf16, #tpu.memory_space<vmem>>, %arg21: memref<8x32xbf16, #tpu.memory_space<vmem>>) attributes {dimension_semantics = [#tpu.dimension_semantics<parallel>, #tpu.dimension_semantics<arbitrary>], iteration_bounds = array<i64: 2, 2>, scalar_prefetch = 0 : i64, scratch_operands = 3 : i64, tpu.core_type = #tpu.core_type<tc>, window_params = [{transform_indices = @transform_0, window_bounds = array<i64: 1, 8, 32>}, {transform_indices = @transform_1, window_bounds = array<i64: 1, 16, 32>}, {pipeline_mode = #tpu.pipeline_mode<synchronous>, transform_indices = @transform_2, window_bounds = array<i64: 1, 32>}, {pipeline_mode = #tpu.pipeline_mode<synchronous>, transform_indices = @transform_3, window_bounds = array<i64: 1, 32>}, {pipeline_mode = #tpu.pipeline_mode<synchronous>, transform_indices = @transform_4, window_bounds = array<i64: 32, 32>}, {pipeline_mode = #tpu.pipeline_mode<synchronous>, transform_indices = @transform_5, window_bounds = array<i64: 1, 32>}, {pipeline_mode = #tpu.pipeline_mode<synchronous>, transform_indices = @transform_6, window_bounds = array<i64: 32, 64>}, {pipeline_mode = #tpu.pipeline_mode<synchronous>, transform_indices = @transform_7, window_bounds = array<i64: 1, 64>}, {pipeline_mode = #tpu.pipeline_mode<synchronous>, transform_indices = @transform_8, window_bounds = array<i64: 32, 32>}, {pipeline_mode = #tpu.pipeline_mode<synchronous>, transform_indices = @transform_9, window_bounds = array<i64: 1, 32>}, {pipeline_mode = #tpu.pipeline_mode<synchronous>, transform_indices = @transform_10, window_bounds = array<i64: 1, 32>}, {pipeline_mode = #tpu.pipeline_mode<synchronous>, transform_indices = @transform_11, window_bounds = array<i64: 1, 32>}, {pipeline_mode = #tpu.pipeline_mode<synchronous>, transform_indices = @transform_12, window_bounds = array<i64: 32, 64>}, {pipeline_mode = #tpu.pipeline_mode<synchronous>, transform_indices = @transform_13, window_bounds = array<i64: 1, 64>}, {pipeline_mode = #tpu.pipeline_mode<synchronous>, transform_indices = @transform_14, window_bounds = array<i64: 64, 32>}, {pipeline_mode = #tpu.pipeline_mode<synchronous>, transform_indices = @transform_15, window_bounds = array<i64: 1, 32>}, {transform_indices = @transform_16, window_bounds = array<i64: 1, 8, 32>}]} {
    %c0 = arith.constant 0 : index
    %c0_0 = arith.constant 0 : index
    %c0_1 = arith.constant 0 : index
    %0 = vector.load %arg2[%c0, %c0_0, %c0_1] : memref<1x8x32xf32, #tpu.memory_space<vmem>>, vector<1x8x32xf32>
    %1 = vector.shape_cast %0 : vector<1x8x32xf32> to vector<8x32xf32>
    %c0_2 = arith.constant 0 : index
    %c0_3 = arith.constant 0 : index
    %2 = vector.load %arg4[%c0_2, %c0_3] : memref<1x32xf32, #tpu.memory_space<vmem>>, vector<1x32xf32>
    %c0_4 = arith.constant 0 : index
    %c0_5 = arith.constant 0 : index
    %3 = vector.load %arg5[%c0_4, %c0_5] : memref<1x32xf32, #tpu.memory_space<vmem>>, vector<1x32xf32>
    %c0_i32 = arith.constant 0 : i32
    %4 = arith.cmpi eq, %arg1, %c0_i32 : i32
    %5 = arith.extui %4 : i1 to i32
    %c0_i32_6 = arith.constant 0 : i32
    %6 = arith.cmpi ne, %5, %c0_i32_6 : i32
    scf.if %6 {
      %c0_102 = arith.constant 0 : index
      %c0_103 = arith.constant 0 : index
      %c0_104 = arith.constant 0 : index
      %203 = vector.load %arg3[%c0_102, %c0_103, %c0_104] : memref<1x16x32xf32, #tpu.memory_space<vmem>>, vector<1x16x32xf32>
      %204 = vector.shape_cast %203 : vector<1x16x32xf32> to vector<16x32xf32>
      %cst_105 = arith.constant dense<0.000000e+00> : vector<16xf32>
      %205 = vector.multi_reduction <add>, %204, %cst_105 [1] : vector<16x32xf32> to vector<16xf32>
      %206 = vector.shape_cast %205 : vector<16xf32> to vector<16x1xf32>
      %cst_106 = arith.constant 3.200000e+01 : f32
      %207 = vector.broadcast %cst_106 : f32 to vector<16x1xf32>
      %208 = arith.divf %206, %207 : vector<16x1xf32>
      %209 = vector.broadcast %208 : vector<16x1xf32> to vector<16x32xf32>
      %210 = arith.subf %204, %209 : vector<16x32xf32>
      %211 = arith.mulf %210, %210 : vector<16x32xf32>
      %cst_107 = arith.constant dense<0.000000e+00> : vector<16xf32>
      %212 = vector.multi_reduction <add>, %211, %cst_107 [1] : vector<16x32xf32> to vector<16xf32>
      %213 = vector.shape_cast %212 : vector<16xf32> to vector<16x1xf32>
      %cst_108 = arith.constant 3.200000e+01 : f32
      %214 = vector.broadcast %cst_108 : f32 to vector<16x1xf32>
      %215 = arith.divf %213, %214 : vector<16x1xf32>
      %216 = vector.broadcast %208 : vector<16x1xf32> to vector<16x32xf32>
      %217 = arith.subf %204, %216 : vector<16x32xf32>
      %cst_109 = arith.constant 9.99999974E-6 : f32
      %218 = vector.broadcast %cst_109 : f32 to vector<16x1xf32>
      %219 = arith.addf %215, %218 : vector<16x1xf32>
      %220 = math.rsqrt %219 : vector<16x1xf32>
      %221 = vector.broadcast %220 : vector<16x1xf32> to vector<16x32xf32>
      %222 = arith.mulf %217, %221 : vector<16x32xf32>
      %223 = vector.broadcast %2 : vector<1x32xf32> to vector<16x32xf32>
      %224 = arith.mulf %222, %223 : vector<16x32xf32>
      %225 = vector.broadcast %3 : vector<1x32xf32> to vector<16x32xf32>
      %226 = arith.addf %224, %225 : vector<16x32xf32>
      %227 = arith.truncf %226 : vector<16x32xf32> to vector<16x32xbf16>
      %c0_110 = arith.constant 0 : index
      %c0_111 = arith.constant 0 : index
      %228 = vector.load %arg8[%c0_110, %c0_111] : memref<32x64xbf16, #tpu.memory_space<vmem>>, vector<32x64xbf16>
      %cst_112 = arith.constant dense<0.000000e+00> : vector<16x64xf32>
      %229 = tpu.matmul %227, %228, %cst_112 {dimension_numbers = #tpu.dot_dimension_numbers<[1], [0], [0], [1], [0, 0, 1, 1], [], []>} : vector<16x32xbf16>, vector<32x64xbf16>, vector<16x64xf32> -> vector<16x64xf32>
      %c0_113 = arith.constant 0 : index
      %c0_114 = arith.constant 0 : index
      %230 = vector.load %arg9[%c0_113, %c0_114] : memref<1x64xf32, #tpu.memory_space<vmem>>, vector<1x64xf32>
      %231 = vector.broadcast %230 : vector<1x64xf32> to vector<16x64xf32>
      %232 = arith.addf %229, %231 : vector<16x64xf32>
      %233 = arith.truncf %232 : vector<16x64xf32> to vector<16x64xbf16>
      %234 = vector.extract_strided_slice %233 {offsets = [0, 0], sizes = [16, 8], strides = [1, 1]} : vector<16x64xbf16> to vector<16x8xbf16>
      %c0_115 = arith.constant 0 : index
      %c0_116 = arith.constant 0 : index
      %c0_117 = arith.constant 0 : index
      %235 = vector.load %arg19[%c0_115, %c0_116, %c0_117] : memref<4x16x8xbf16, #tpu.memory_space<vmem>>, vector<1x16x8xbf16>
      %236 = vector.shape_cast %235 : vector<1x16x8xbf16> to vector<16x8xbf16>
      %237 = vector.shape_cast %234 : vector<16x8xbf16> to vector<1x16x8xbf16>
      tpu.vector_store %arg19[%c0_115, %c0_116, %c0_117], %237 {strides = array<i32>} : memref<4x16x8xbf16, #tpu.memory_space<vmem>>, vector<1x16x8xbf16>,
      %238 = vector.extract_strided_slice %233 {offsets = [0, 32], sizes = [16, 8], strides = [1, 1]} : vector<16x64xbf16> to vector<16x8xbf16>
      %c0_118 = arith.constant 0 : index
      %c0_119 = arith.constant 0 : index
      %c0_120 = arith.constant 0 : index
      %239 = vector.load %arg20[%c0_118, %c0_119, %c0_120] : memref<4x16x8xbf16, #tpu.memory_space<vmem>>, vector<1x16x8xbf16>
      %240 = vector.shape_cast %239 : vector<1x16x8xbf16> to vector<16x8xbf16>
      %241 = vector.shape_cast %238 : vector<16x8xbf16> to vector<1x16x8xbf16>
      tpu.vector_store %arg20[%c0_118, %c0_119, %c0_120], %241 {strides = array<i32>} : memref<4x16x8xbf16, #tpu.memory_space<vmem>>, vector<1x16x8xbf16>,
      %242 = vector.extract_strided_slice %233 {offsets = [0, 8], sizes = [16, 8], strides = [1, 1]} : vector<16x64xbf16> to vector<16x8xbf16>
      %c1_121 = arith.constant 1 : index
      %c0_122 = arith.constant 0 : index
      %c0_123 = arith.constant 0 : index
      %243 = vector.load %arg19[%c1_121, %c0_122, %c0_123] : memref<4x16x8xbf16, #tpu.memory_space<vmem>>, vector<1x16x8xbf16>
      %244 = vector.shape_cast %243 : vector<1x16x8xbf16> to vector<16x8xbf16>
      %245 = vector.shape_cast %242 : vector<16x8xbf16> to vector<1x16x8xbf16>
      tpu.vector_store %arg19[%c1_121, %c0_122, %c0_123], %245 {strides = array<i32>} : memref<4x16x8xbf16, #tpu.memory_space<vmem>>, vector<1x16x8xbf16>,
      %246 = vector.extract_strided_slice %233 {offsets = [0, 40], sizes = [16, 8], strides = [1, 1]} : vector<16x64xbf16> to vector<16x8xbf16>
      %c1_124 = arith.constant 1 : index
      %c0_125 = arith.constant 0 : index
      %c0_126 = arith.constant 0 : index
      %247 = vector.load %arg20[%c1_124, %c0_125, %c0_126] : memref<4x16x8xbf16, #tpu.memory_space<vmem>>, vector<1x16x8xbf16>
      %248 = vector.shape_cast %247 : vector<1x16x8xbf16> to vector<16x8xbf16>
      %249 = vector.shape_cast %246 : vector<16x8xbf16> to vector<1x16x8xbf16>
      tpu.vector_store %arg20[%c1_124, %c0_125, %c0_126], %249 {strides = array<i32>} : memref<4x16x8xbf16, #tpu.memory_space<vmem>>, vector<1x16x8xbf16>,
      %250 = vector.extract_strided_slice %233 {offsets = [0, 16], sizes = [16, 8], strides = [1, 1]} : vector<16x64xbf16> to vector<16x8xbf16>
      %c2_127 = arith.constant 2 : index
      %c0_128 = arith.constant 0 : index
      %c0_129 = arith.constant 0 : index
      %251 = vector.load %arg19[%c2_127, %c0_128, %c0_129] : memref<4x16x8xbf16, #tpu.memory_space<vmem>>, vector<1x16x8xbf16>
      %252 = vector.shape_cast %251 : vector<1x16x8xbf16> to vector<16x8xbf16>
      %253 = vector.shape_cast %250 : vector<16x8xbf16> to vector<1x16x8xbf16>
      tpu.vector_store %arg19[%c2_127, %c0_128, %c0_129], %253 {strides = array<i32>} : memref<4x16x8xbf16, #tpu.memory_space<vmem>>, vector<1x16x8xbf16>,
      %254 = vector.extract_strided_slice %233 {offsets = [0, 48], sizes = [16, 8], strides = [1, 1]} : vector<16x64xbf16> to vector<16x8xbf16>
      %c2_130 = arith.constant 2 : index
      %c0_131 = arith.constant 0 : index
      %c0_132 = arith.constant 0 : index
      %255 = vector.load %arg20[%c2_130, %c0_131, %c0_132] : memref<4x16x8xbf16, #tpu.memory_space<vmem>>, vector<1x16x8xbf16>
      %256 = vector.shape_cast %255 : vector<1x16x8xbf16> to vector<16x8xbf16>
      %257 = vector.shape_cast %254 : vector<16x8xbf16> to vector<1x16x8xbf16>
      tpu.vector_store %arg20[%c2_130, %c0_131, %c0_132], %257 {strides = array<i32>} : memref<4x16x8xbf16, #tpu.memory_space<vmem>>, vector<1x16x8xbf16>,
      %258 = vector.extract_strided_slice %233 {offsets = [0, 24], sizes = [16, 8], strides = [1, 1]} : vector<16x64xbf16> to vector<16x8xbf16>
      %c3_133 = arith.constant 3 : index
      %c0_134 = arith.constant 0 : index
      %c0_135 = arith.constant 0 : index
      %259 = vector.load %arg19[%c3_133, %c0_134, %c0_135] : memref<4x16x8xbf16, #tpu.memory_space<vmem>>, vector<1x16x8xbf16>
      %260 = vector.shape_cast %259 : vector<1x16x8xbf16> to vector<16x8xbf16>
      %261 = vector.shape_cast %258 : vector<16x8xbf16> to vector<1x16x8xbf16>
      tpu.vector_store %arg19[%c3_133, %c0_134, %c0_135], %261 {strides = array<i32>} : memref<4x16x8xbf16, #tpu.memory_space<vmem>>, vector<1x16x8xbf16>,
      %262 = vector.extract_strided_slice %233 {offsets = [0, 56], sizes = [16, 8], strides = [1, 1]} : vector<16x64xbf16> to vector<16x8xbf16>
      %c3_136 = arith.constant 3 : index
      %c0_137 = arith.constant 0 : index
      %c0_138 = arith.constant 0 : index
      %263 = vector.load %arg20[%c3_136, %c0_137, %c0_138] : memref<4x16x8xbf16, #tpu.memory_space<vmem>>, vector<1x16x8xbf16>
      %264 = vector.shape_cast %263 : vector<1x16x8xbf16> to vector<16x8xbf16>
      %265 = vector.shape_cast %262 : vector<16x8xbf16> to vector<1x16x8xbf16>
      tpu.vector_store %arg20[%c3_136, %c0_137, %c0_138], %265 {strides = array<i32>} : memref<4x16x8xbf16, #tpu.memory_space<vmem>>, vector<1x16x8xbf16>,
    } else {
    }
    %cst = arith.constant dense<0.000000e+00> : vector<8xf32>
    %7 = vector.multi_reduction <add>, %1, %cst [1] : vector<8x32xf32> to vector<8xf32>
    %8 = vector.shape_cast %7 : vector<8xf32> to vector<8x1xf32>
    %cst_7 = arith.constant 3.200000e+01 : f32
    %9 = vector.broadcast %cst_7 : f32 to vector<8x1xf32>
    %10 = arith.divf %8, %9 : vector<8x1xf32>
    %11 = vector.broadcast %10 : vector<8x1xf32> to vector<8x32xf32>
    %12 = arith.subf %1, %11 : vector<8x32xf32>
    %13 = arith.mulf %12, %12 : vector<8x32xf32>
    %cst_8 = arith.constant dense<0.000000e+00> : vector<8xf32>
    %14 = vector.multi_reduction <add>, %13, %cst_8 [1] : vector<8x32xf32> to vector<8xf32>
    %15 = vector.shape_cast %14 : vector<8xf32> to vector<8x1xf32>
    %cst_9 = arith.constant 3.200000e+01 : f32
    %16 = vector.broadcast %cst_9 : f32 to vector<8x1xf32>
    %17 = arith.divf %15, %16 : vector<8x1xf32>
    %18 = vector.broadcast %10 : vector<8x1xf32> to vector<8x32xf32>
    %19 = arith.subf %1, %18 : vector<8x32xf32>
    %cst_10 = arith.constant 9.99999974E-6 : f32
    %20 = vector.broadcast %cst_10 : f32 to vector<8x1xf32>
    %21 = arith.addf %17, %20 : vector<8x1xf32>
    %22 = math.rsqrt %21 : vector<8x1xf32>
    %23 = vector.broadcast %22 : vector<8x1xf32> to vector<8x32xf32>
    %24 = arith.mulf %19, %23 : vector<8x32xf32>
    %25 = vector.broadcast %2 : vector<1x32xf32> to vector<8x32xf32>
    %26 = arith.mulf %24, %25 : vector<8x32xf32>
    %27 = vector.broadcast %3 : vector<1x32xf32> to vector<8x32xf32>
    %28 = arith.addf %26, %27 : vector<8x32xf32>
    %29 = arith.truncf %28 : vector<8x32xf32> to vector<8x32xbf16>
    %c0_11 = arith.constant 0 : index
    %c0_12 = arith.constant 0 : index
    %30 = vector.load %arg6[%c0_11, %c0_12] : memref<32x32xbf16, #tpu.memory_space<vmem>>, vector<32x32xbf16>
    %cst_13 = arith.constant dense<0.000000e+00> : vector<8x32xf32>
    %31 = tpu.matmul %29, %30, %cst_13 {dimension_numbers = #tpu.dot_dimension_numbers<[1], [0], [0], [1], [0, 0, 1, 1], [], []>} : vector<8x32xbf16>, vector<32x32xbf16>, vector<8x32xf32> -> vector<8x32xf32>
    %c0_14 = arith.constant 0 : index
    %c0_15 = arith.constant 0 : index
    %32 = vector.load %arg7[%c0_14, %c0_15] : memref<1x32xf32, #tpu.memory_space<vmem>>, vector<1x32xf32>
    %33 = vector.broadcast %32 : vector<1x32xf32> to vector<8x32xf32>
    %34 = arith.addf %31, %33 : vector<8x32xf32>
    %35 = arith.truncf %34 : vector<8x32xf32> to vector<8x32xbf16>
    %36 = vector.extract_strided_slice %35 {offsets = [0, 0], sizes = [8, 8], strides = [1, 1]} : vector<8x32xbf16> to vector<8x8xbf16>
    %c0_16 = arith.constant 0 : index
    %c0_17 = arith.constant 0 : index
    %c0_18 = arith.constant 0 : index
    %37 = vector.load %arg19[%c0_16, %c0_17, %c0_18] : memref<4x16x8xbf16, #tpu.memory_space<vmem>>, vector<1x16x8xbf16>
    %38 = vector.shape_cast %37 : vector<1x16x8xbf16> to vector<16x8xbf16>
    %cst_19 = arith.constant dense<0.000000e+00> : vector<8x16xf32>
    %39 = tpu.matmul %36, %38, %cst_19 {dimension_numbers = #tpu.dot_dimension_numbers<[1], [1], [0], [0], [0, 0, 1, 0], [], []>} : vector<8x8xbf16>, vector<16x8xbf16>, vector<8x16xf32> -> vector<8x16xf32>
    %cst_20 = arith.constant dense<0xFF800000> : vector<8xf32>
    %40 = vector.multi_reduction <maximumf>, %39, %cst_20 [1] : vector<8x16xf32> to vector<8xf32>
    %41 = vector.shape_cast %40 : vector<8xf32> to vector<8x1xf32>
    %42 = vector.broadcast %41 : vector<8x1xf32> to vector<8x16xf32>
    %43 = arith.subf %39, %42 : vector<8x16xf32>
    %44 = math.exp %43 : vector<8x16xf32>
    %cst_21 = arith.constant dense<0.000000e+00> : vector<8xf32>
    %45 = vector.multi_reduction <add>, %44, %cst_21 [1] : vector<8x16xf32> to vector<8xf32>
    %46 = vector.shape_cast %45 : vector<8xf32> to vector<8x1xf32>
    %47 = tpu.reciprocal %46 {approx = true} : vector<8x1xf32> -> vector<8x1xf32>
    %48 = arith.truncf %44 : vector<8x16xf32> to vector<8x16xbf16>
    %c0_22 = arith.constant 0 : index
    %c0_23 = arith.constant 0 : index
    %c0_24 = arith.constant 0 : index
    %49 = vector.load %arg20[%c0_22, %c0_23, %c0_24] : memref<4x16x8xbf16, #tpu.memory_space<vmem>>, vector<1x16x8xbf16>
    %50 = vector.shape_cast %49 : vector<1x16x8xbf16> to vector<16x8xbf16>
    %cst_25 = arith.constant dense<0.000000e+00> : vector<8x8xf32>
    %51 = tpu.matmul %48, %50, %cst_25 {dimension_numbers = #tpu.dot_dimension_numbers<[1], [0], [0], [1], [0, 0, 1, 1], [], []>} : vector<8x16xbf16>, vector<16x8xbf16>, vector<8x8xf32> -> vector<8x8xf32>
    %52 = vector.broadcast %47 : vector<8x1xf32> to vector<8x8xf32>
    %53 = arith.mulf %51, %52 : vector<8x8xf32>
    %54 = arith.truncf %53 : vector<8x8xf32> to vector<8x8xbf16>
    %c0_26 = arith.constant 0 : index
    %c0_27 = arith.constant 0 : index
    %55 = vector.load %arg21[%c0_26, %c0_27] : memref<8x32xbf16, #tpu.memory_space<vmem>>, vector<8x8xbf16>
    tpu.vector_store %arg21[%c0_26, %c0_27], %54 {strides = array<i32>} : memref<8x32xbf16, #tpu.memory_space<vmem>>, vector<8x8xbf16>,
    %56 = vector.extract_strided_slice %35 {offsets = [0, 8], sizes = [8, 8], strides = [1, 1]} : vector<8x32xbf16> to vector<8x8xbf16>
    %c1 = arith.constant 1 : index
    %c0_28 = arith.constant 0 : index
    %c0_29 = arith.constant 0 : index
    %57 = vector.load %arg19[%c1, %c0_28, %c0_29] : memref<4x16x8xbf16, #tpu.memory_space<vmem>>, vector<1x16x8xbf16>
    %58 = vector.shape_cast %57 : vector<1x16x8xbf16> to vector<16x8xbf16>
    %cst_30 = arith.constant dense<0.000000e+00> : vector<8x16xf32>
    %59 = tpu.matmul %56, %58, %cst_30 {dimension_numbers = #tpu.dot_dimension_numbers<[1], [1], [0], [0], [0, 0, 1, 0], [], []>} : vector<8x8xbf16>, vector<16x8xbf16>, vector<8x16xf32> -> vector<8x16xf32>
    %cst_31 = arith.constant dense<0xFF800000> : vector<8xf32>
    %60 = vector.multi_reduction <maximumf>, %59, %cst_31 [1] : vector<8x16xf32> to vector<8xf32>
    %61 = vector.shape_cast %60 : vector<8xf32> to vector<8x1xf32>
    %62 = vector.broadcast %61 : vector<8x1xf32> to vector<8x16xf32>
    %63 = arith.subf %59, %62 : vector<8x16xf32>
    %64 = math.exp %63 : vector<8x16xf32>
    %cst_32 = arith.constant dense<0.000000e+00> : vector<8xf32>
    %65 = vector.multi_reduction <add>, %64, %cst_32 [1] : vector<8x16xf32> to vector<8xf32>
    %66 = vector.shape_cast %65 : vector<8xf32> to vector<8x1xf32>
    %67 = tpu.reciprocal %66 {approx = true} : vector<8x1xf32> -> vector<8x1xf32>
    %68 = arith.truncf %64 : vector<8x16xf32> to vector<8x16xbf16>
    %c1_33 = arith.constant 1 : index
    %c0_34 = arith.constant 0 : index
    %c0_35 = arith.constant 0 : index
    %69 = vector.load %arg20[%c1_33, %c0_34, %c0_35] : memref<4x16x8xbf16, #tpu.memory_space<vmem>>, vector<1x16x8xbf16>
    %70 = vector.shape_cast %69 : vector<1x16x8xbf16> to vector<16x8xbf16>
    %cst_36 = arith.constant dense<0.000000e+00> : vector<8x8xf32>
    %71 = tpu.matmul %68, %70, %cst_36 {dimension_numbers = #tpu.dot_dimension_numbers<[1], [0], [0], [1], [0, 0, 1, 1], [], []>} : vector<8x16xbf16>, vector<16x8xbf16>, vector<8x8xf32> -> vector<8x8xf32>
    %72 = vector.broadcast %67 : vector<8x1xf32> to vector<8x8xf32>
    %73 = arith.mulf %71, %72 : vector<8x8xf32>
    %74 = arith.truncf %73 : vector<8x8xf32> to vector<8x8xbf16>
    %c0_37 = arith.constant 0 : index
    %c8 = arith.constant 8 : index
    %75 = vector.load %arg21[%c0_37, %c8] : memref<8x32xbf16, #tpu.memory_space<vmem>>, vector<8x8xbf16>
    tpu.vector_store %arg21[%c0_37, %c8], %74 {strides = array<i32>} : memref<8x32xbf16, #tpu.memory_space<vmem>>, vector<8x8xbf16>,
    %76 = vector.extract_strided_slice %35 {offsets = [0, 16], sizes = [8, 8], strides = [1, 1]} : vector<8x32xbf16> to vector<8x8xbf16>
    %c2 = arith.constant 2 : index
    %c0_38 = arith.constant 0 : index
    %c0_39 = arith.constant 0 : index
    %77 = vector.load %arg19[%c2, %c0_38, %c0_39] : memref<4x16x8xbf16, #tpu.memory_space<vmem>>, vector<1x16x8xbf16>
    %78 = vector.shape_cast %77 : vector<1x16x8xbf16> to vector<16x8xbf16>
    %cst_40 = arith.constant dense<0.000000e+00> : vector<8x16xf32>
    %79 = tpu.matmul %76, %78, %cst_40 {dimension_numbers = #tpu.dot_dimension_numbers<[1], [1], [0], [0], [0, 0, 1, 0], [], []>} : vector<8x8xbf16>, vector<16x8xbf16>, vector<8x16xf32> -> vector<8x16xf32>
    %cst_41 = arith.constant dense<0xFF800000> : vector<8xf32>
    %80 = vector.multi_reduction <maximumf>, %79, %cst_41 [1] : vector<8x16xf32> to vector<8xf32>
    %81 = vector.shape_cast %80 : vector<8xf32> to vector<8x1xf32>
    %82 = vector.broadcast %81 : vector<8x1xf32> to vector<8x16xf32>
    %83 = arith.subf %79, %82 : vector<8x16xf32>
    %84 = math.exp %83 : vector<8x16xf32>
    %cst_42 = arith.constant dense<0.000000e+00> : vector<8xf32>
    %85 = vector.multi_reduction <add>, %84, %cst_42 [1] : vector<8x16xf32> to vector<8xf32>
    %86 = vector.shape_cast %85 : vector<8xf32> to vector<8x1xf32>
    %87 = tpu.reciprocal %86 {approx = true} : vector<8x1xf32> -> vector<8x1xf32>
    %88 = arith.truncf %84 : vector<8x16xf32> to vector<8x16xbf16>
    %c2_43 = arith.constant 2 : index
    %c0_44 = arith.constant 0 : index
    %c0_45 = arith.constant 0 : index
    %89 = vector.load %arg20[%c2_43, %c0_44, %c0_45] : memref<4x16x8xbf16, #tpu.memory_space<vmem>>, vector<1x16x8xbf16>
    %90 = vector.shape_cast %89 : vector<1x16x8xbf16> to vector<16x8xbf16>
    %cst_46 = arith.constant dense<0.000000e+00> : vector<8x8xf32>
    %91 = tpu.matmul %88, %90, %cst_46 {dimension_numbers = #tpu.dot_dimension_numbers<[1], [0], [0], [1], [0, 0, 1, 1], [], []>} : vector<8x16xbf16>, vector<16x8xbf16>, vector<8x8xf32> -> vector<8x8xf32>
    %92 = vector.broadcast %87 : vector<8x1xf32> to vector<8x8xf32>
    %93 = arith.mulf %91, %92 : vector<8x8xf32>
    %94 = arith.truncf %93 : vector<8x8xf32> to vector<8x8xbf16>
    %c0_47 = arith.constant 0 : index
    %c16 = arith.constant 16 : index
    %95 = vector.load %arg21[%c0_47, %c16] : memref<8x32xbf16, #tpu.memory_space<vmem>>, vector<8x8xbf16>
    tpu.vector_store %arg21[%c0_47, %c16], %94 {strides = array<i32>} : memref<8x32xbf16, #tpu.memory_space<vmem>>, vector<8x8xbf16>,
    %96 = vector.extract_strided_slice %35 {offsets = [0, 24], sizes = [8, 8], strides = [1, 1]} : vector<8x32xbf16> to vector<8x8xbf16>
    %c3 = arith.constant 3 : index
    %c0_48 = arith.constant 0 : index
    %c0_49 = arith.constant 0 : index
    %97 = vector.load %arg19[%c3, %c0_48, %c0_49] : memref<4x16x8xbf16, #tpu.memory_space<vmem>>, vector<1x16x8xbf16>
    %98 = vector.shape_cast %97 : vector<1x16x8xbf16> to vector<16x8xbf16>
    %cst_50 = arith.constant dense<0.000000e+00> : vector<8x16xf32>
    %99 = tpu.matmul %96, %98, %cst_50 {dimension_numbers = #tpu.dot_dimension_numbers<[1], [1], [0], [0], [0, 0, 1, 0], [], []>} : vector<8x8xbf16>, vector<16x8xbf16>, vector<8x16xf32> -> vector<8x16xf32>
    %cst_51 = arith.constant dense<0xFF800000> : vector<8xf32>
    %100 = vector.multi_reduction <maximumf>, %99, %cst_51 [1] : vector<8x16xf32> to vector<8xf32>
    %101 = vector.shape_cast %100 : vector<8xf32> to vector<8x1xf32>
    %102 = vector.broadcast %101 : vector<8x1xf32> to vector<8x16xf32>
    %103 = arith.subf %99, %102 : vector<8x16xf32>
    %104 = math.exp %103 : vector<8x16xf32>
    %cst_52 = arith.constant dense<0.000000e+00> : vector<8xf32>
    %105 = vector.multi_reduction <add>, %104, %cst_52 [1] : vector<8x16xf32> to vector<8xf32>
    %106 = vector.shape_cast %105 : vector<8xf32> to vector<8x1xf32>
    %107 = tpu.reciprocal %106 {approx = true} : vector<8x1xf32> -> vector<8x1xf32>
    %108 = arith.truncf %104 : vector<8x16xf32> to vector<8x16xbf16>
    %c3_53 = arith.constant 3 : index
    %c0_54 = arith.constant 0 : index
    %c0_55 = arith.constant 0 : index
    %109 = vector.load %arg20[%c3_53, %c0_54, %c0_55] : memref<4x16x8xbf16, #tpu.memory_space<vmem>>, vector<1x16x8xbf16>
    %110 = vector.shape_cast %109 : vector<1x16x8xbf16> to vector<16x8xbf16>
    %cst_56 = arith.constant dense<0.000000e+00> : vector<8x8xf32>
    %111 = tpu.matmul %108, %110, %cst_56 {dimension_numbers = #tpu.dot_dimension_numbers<[1], [0], [0], [1], [0, 0, 1, 1], [], []>} : vector<8x16xbf16>, vector<16x8xbf16>, vector<8x8xf32> -> vector<8x8xf32>
    %112 = vector.broadcast %107 : vector<8x1xf32> to vector<8x8xf32>
    %113 = arith.mulf %111, %112 : vector<8x8xf32>
    %114 = arith.truncf %113 : vector<8x8xf32> to vector<8x8xbf16>
    %c0_57 = arith.constant 0 : index
    %c24 = arith.constant 24 : index
    %115 = vector.load %arg21[%c0_57, %c24] : memref<8x32xbf16, #tpu.memory_space<vmem>>, vector<8x8xbf16>
    tpu.vector_store %arg21[%c0_57, %c24], %114 {strides = array<i32>} : memref<8x32xbf16, #tpu.memory_space<vmem>>, vector<8x8xbf16>,
    %c0_58 = arith.constant 0 : index
    %c0_59 = arith.constant 0 : index
    %116 = vector.load %arg21[%c0_58, %c0_59] : memref<8x32xbf16, #tpu.memory_space<vmem>>, vector<8x32xbf16>
    %c0_60 = arith.constant 0 : index
    %c0_61 = arith.constant 0 : index
    %117 = vector.load %arg10[%c0_60, %c0_61] : memref<32x32xbf16, #tpu.memory_space<vmem>>, vector<32x32xbf16>
    %cst_62 = arith.constant dense<0.000000e+00> : vector<8x32xf32>
    %118 = tpu.matmul %116, %117, %cst_62 {dimension_numbers = #tpu.dot_dimension_numbers<[1], [0], [0], [1], [0, 0, 1, 1], [], []>} : vector<8x32xbf16>, vector<32x32xbf16>, vector<8x32xf32> -> vector<8x32xf32>
    %c0_63 = arith.constant 0 : index
    %c0_64 = arith.constant 0 : index
    %119 = vector.load %arg11[%c0_63, %c0_64] : memref<1x32xf32, #tpu.memory_space<vmem>>, vector<1x32xf32>
    %120 = vector.broadcast %119 : vector<1x32xf32> to vector<8x32xf32>
    %121 = arith.addf %118, %120 : vector<8x32xf32>
    %122 = arith.addf %1, %121 : vector<8x32xf32>
    %c0_65 = arith.constant 0 : index
    %c0_66 = arith.constant 0 : index
    %123 = vector.load %arg12[%c0_65, %c0_66] : memref<1x32xf32, #tpu.memory_space<vmem>>, vector<1x32xf32>
    %c0_67 = arith.constant 0 : index
    %c0_68 = arith.constant 0 : index
    %124 = vector.load %arg13[%c0_67, %c0_68] : memref<1x32xf32, #tpu.memory_space<vmem>>, vector<1x32xf32>
    %cst_69 = arith.constant dense<0.000000e+00> : vector<8xf32>
    %125 = vector.multi_reduction <add>, %122, %cst_69 [1] : vector<8x32xf32> to vector<8xf32>
    %126 = vector.shape_cast %125 : vector<8xf32> to vector<8x1xf32>
    %cst_70 = arith.constant 3.200000e+01 : f32
    %127 = vector.broadcast %cst_70 : f32 to vector<8x1xf32>
    %128 = arith.divf %126, %127 : vector<8x1xf32>
    %129 = vector.broadcast %128 : vector<8x1xf32> to vector<8x32xf32>
    %130 = arith.subf %122, %129 : vector<8x32xf32>
    %131 = arith.mulf %130, %130 : vector<8x32xf32>
    %cst_71 = arith.constant dense<0.000000e+00> : vector<8xf32>
    %132 = vector.multi_reduction <add>, %131, %cst_71 [1] : vector<8x32xf32> to vector<8xf32>
    %133 = vector.shape_cast %132 : vector<8xf32> to vector<8x1xf32>
    %cst_72 = arith.constant 3.200000e+01 : f32
    %134 = vector.broadcast %cst_72 : f32 to vector<8x1xf32>
    %135 = arith.divf %133, %134 : vector<8x1xf32>
    %136 = vector.broadcast %128 : vector<8x1xf32> to vector<8x32xf32>
    %137 = arith.subf %122, %136 : vector<8x32xf32>
    %cst_73 = arith.constant 9.99999974E-6 : f32
    %138 = vector.broadcast %cst_73 : f32 to vector<8x1xf32>
    %139 = arith.addf %135, %138 : vector<8x1xf32>
    %140 = math.rsqrt %139 : vector<8x1xf32>
    %141 = vector.broadcast %140 : vector<8x1xf32> to vector<8x32xf32>
    %142 = arith.mulf %137, %141 : vector<8x32xf32>
    %143 = vector.broadcast %123 : vector<1x32xf32> to vector<8x32xf32>
    %144 = arith.mulf %142, %143 : vector<8x32xf32>
    %145 = vector.broadcast %124 : vector<1x32xf32> to vector<8x32xf32>
    %146 = arith.addf %144, %145 : vector<8x32xf32>
    %147 = arith.truncf %146 : vector<8x32xf32> to vector<8x32xbf16>
    %c0_74 = arith.constant 0 : index
    %c0_75 = arith.constant 0 : index
    %148 = vector.load %arg14[%c0_74, %c0_75] : memref<32x64xbf16, #tpu.memory_space<vmem>>, vector<32x64xbf16>
    %cst_76 = arith.constant dense<0.000000e+00> : vector<8x64xf32>
    %149 = tpu.matmul %147, %148, %cst_76 {dimension_numbers = #tpu.dot_dimension_numbers<[1], [0], [0], [1], [0, 0, 1, 1], [], []>} : vector<8x32xbf16>, vector<32x64xbf16>, vector<8x64xf32> -> vector<8x64xf32>
    %c0_77 = arith.constant 0 : index
    %c0_78 = arith.constant 0 : index
    %150 = vector.load %arg15[%c0_77, %c0_78] : memref<1x64xf32, #tpu.memory_space<vmem>>, vector<1x64xf32>
    %151 = vector.broadcast %150 : vector<1x64xf32> to vector<8x64xf32>
    %152 = arith.addf %149, %151 : vector<8x64xf32>
    %cst_79 = arith.constant 5.000000e-01 : f32
    %153 = vector.broadcast %cst_79 : f32 to vector<8x64xf32>
    %154 = arith.mulf %153, %152 : vector<8x64xf32>
    %cst_80 = arith.constant 0.707106769 : f32
    %155 = vector.broadcast %cst_80 : f32 to vector<8x64xf32>
    %156 = arith.mulf %152, %155 : vector<8x64xf32>
    %cst_81 = arith.constant 0.000000e+00 : f32
    %157 = vector.broadcast %cst_81 : f32 to vector<8x64xf32>
    %158 = arith.cmpf oge, %156, %157 : vector<8x64xf32>
    %cst_82 = arith.constant 1.000000e+00 : f32
    %cst_83 = arith.constant -1.000000e+00 : f32
    %159 = vector.broadcast %cst_82 : f32 to vector<8x64xf32>
    %160 = vector.broadcast %cst_83 : f32 to vector<8x64xf32>
    %161 = arith.select %158, %159, %160 : vector<8x64xi1>, vector<8x64xf32>
    %162 = math.absf %156 : vector<8x64xf32>
    %cst_84 = arith.constant 0.327591091 : f32
    %163 = vector.broadcast %cst_84 : f32 to vector<8x64xf32>
    %164 = arith.mulf %163, %162 : vector<8x64xf32>
    %cst_85 = arith.constant 1.000000e+00 : f32
    %165 = vector.broadcast %cst_85 : f32 to vector<8x64xf32>
    %166 = arith.addf %165, %164 : vector<8x64xf32>
    %167 = tpu.reciprocal %166 {approx = true} : vector<8x64xf32> -> vector<8x64xf32>
    %cst_86 = arith.constant 1.06140542 : f32
    %168 = vector.broadcast %cst_86 : f32 to vector<8x64xf32>
    %169 = arith.mulf %168, %167 : vector<8x64xf32>
    %cst_87 = arith.constant -1.45315206 : f32
    %170 = vector.broadcast %cst_87 : f32 to vector<8x64xf32>
    %171 = arith.addf %169, %170 : vector<8x64xf32>
    %172 = arith.mulf %171, %167 : vector<8x64xf32>
    %cst_88 = arith.constant 1.42141378 : f32
    %173 = vector.broadcast %cst_88 : f32 to vector<8x64xf32>
    %174 = arith.addf %172, %173 : vector<8x64xf32>
    %175 = arith.mulf %174, %167 : vector<8x64xf32>
    %cst_89 = arith.constant -0.284496725 : f32
    %176 = vector.broadcast %cst_89 : f32 to vector<8x64xf32>
    %177 = arith.addf %175, %176 : vector<8x64xf32>
    %178 = arith.mulf %177, %167 : vector<8x64xf32>
    %cst_90 = arith.constant 0.254829586 : f32
    %179 = vector.broadcast %cst_90 : f32 to vector<8x64xf32>
    %180 = arith.addf %178, %179 : vector<8x64xf32>
    %181 = arith.mulf %180, %167 : vector<8x64xf32>
    %cst_91 = arith.constant 0.000000e+00 : f32
    %182 = vector.broadcast %cst_91 : f32 to vector<8x64xf32>
    %183 = arith.subf %182, %162 : vector<8x64xf32>
    %184 = arith.mulf %183, %162 : vector<8x64xf32>
    %185 = math.exp %184 : vector<8x64xf32>
    %186 = arith.mulf %181, %185 : vector<8x64xf32>
    %cst_92 = arith.constant 1.000000e+00 : f32
    %187 = vector.broadcast %cst_92 : f32 to vector<8x64xf32>
    %188 = arith.subf %187, %186 : vector<8x64xf32>
    %189 = arith.mulf %161, %188 : vector<8x64xf32>
    %cst_93 = arith.constant 1.000000e+00 : f32
    %190 = vector.broadcast %cst_93 : f32 to vector<8x64xf32>
    %191 = arith.addf %190, %189 : vector<8x64xf32>
    %192 = arith.mulf %154, %191 : vector<8x64xf32>
    %193 = arith.truncf %192 : vector<8x64xf32> to vector<8x64xbf16>
    %c0_94 = arith.constant 0 : index
    %c0_95 = arith.constant 0 : index
    %194 = vector.load %arg16[%c0_94, %c0_95] : memref<64x32xbf16, #tpu.memory_space<vmem>>, vector<64x32xbf16>
    %cst_96 = arith.constant dense<0.000000e+00> : vector<8x32xf32>
    %195 = tpu.matmul %193, %194, %cst_96 {dimension_numbers = #tpu.dot_dimension_numbers<[1], [0], [0], [1], [0, 0, 1, 1], [], []>} : vector<8x64xbf16>, vector<64x32xbf16>, vector<8x32xf32> -> vector<8x32xf32>
    %c0_97 = arith.constant 0 : index
    %c0_98 = arith.constant 0 : index
    %196 = vector.load %arg17[%c0_97, %c0_98] : memref<1x32xf32, #tpu.memory_space<vmem>>, vector<1x32xf32>
    %197 = vector.broadcast %196 : vector<1x32xf32> to vector<8x32xf32>
    %198 = arith.addf %195, %197 : vector<8x32xf32>
    %199 = arith.addf %122, %198 : vector<8x32xf32>
    %c0_99 = arith.constant 0 : index
    %c0_100 = arith.constant 0 : index
    %c0_101 = arith.constant 0 : index
    %200 = vector.load %arg18[%c0_99, %c0_100, %c0_101] : memref<1x8x32xf32, #tpu.memory_space<vmem>>, vector<1x8x32xf32>
    %201 = vector.shape_cast %200 : vector<1x8x32xf32> to vector<8x32xf32>
    %202 = vector.shape_cast %199 : vector<8x32xf32> to vector<1x8x32xf32>
    tpu.vector_store %arg18[%c0_99, %c0_100, %c0_101], %202 {strides = array<i32>} : memref<1x8x32xf32, #tpu.memory_space<vmem>>, vector<1x8x32xf32>,
    return
  }
  func.func @transform_0(%arg0: i32, %arg1: i32) -> (i32, i32, i32) {
    %c0_i32 = arith.constant 0 : i32
    %c0_i32_0 = arith.constant 0 : i32
    return %arg0, %arg1, %c0_i32 : i32, i32, i32
  }
  func.func @transform_1(%arg0: i32, %arg1: i32) -> (i32, i32, i32) {
    %c0_i32 = arith.constant 0 : i32
    %c0_i32_0 = arith.constant 0 : i32
    %c0_i32_1 = arith.constant 0 : i32
    return %arg0, %c0_i32, %c0_i32_0 : i32, i32, i32
  }
  func.func @transform_2(%arg0: i32, %arg1: i32) -> (i32, i32) {
    %c0_i32 = arith.constant 0 : i32
    %c0_i32_0 = arith.constant 0 : i32
    %c0_i32_1 = arith.constant 0 : i32
    return %c0_i32, %c0_i32_0 : i32, i32
  }
  func.func @transform_3(%arg0: i32, %arg1: i32) -> (i32, i32) {
    %c0_i32 = arith.constant 0 : i32
    %c0_i32_0 = arith.constant 0 : i32
    %c0_i32_1 = arith.constant 0 : i32
    return %c0_i32, %c0_i32_0 : i32, i32
  }
  func.func @transform_4(%arg0: i32, %arg1: i32) -> (i32, i32) {
    %c0_i32 = arith.constant 0 : i32
    %c0_i32_0 = arith.constant 0 : i32
    %c0_i32_1 = arith.constant 0 : i32
    return %c0_i32, %c0_i32_0 : i32, i32
  }
  func.func @transform_5(%arg0: i32, %arg1: i32) -> (i32, i32) {
    %c0_i32 = arith.constant 0 : i32
    %c0_i32_0 = arith.constant 0 : i32
    %c0_i32_1 = arith.constant 0 : i32
    return %c0_i32, %c0_i32_0 : i32, i32
  }
  func.func @transform_6(%arg0: i32, %arg1: i32) -> (i32, i32) {
    %c0_i32 = arith.constant 0 : i32
    %c0_i32_0 = arith.constant 0 : i32
    %c0_i32_1 = arith.constant 0 : i32
    return %c0_i32, %c0_i32_0 : i32, i32
  }
  func.func @transform_7(%arg0: i32, %arg1: i32) -> (i32, i32) {
    %c0_i32 = arith.constant 0 : i32
    %c0_i32_0 = arith.constant 0 : i32
    %c0_i32_1 = arith.constant 0 : i32
    return %c0_i32, %c0_i32_0 : i32, i32
  }
  func.func @transform_8(%arg0: i32, %arg1: i32) -> (i32, i32) {
    %c0_i32 = arith.constant 0 : i32
    %c0_i32_0 = arith.constant 0 : i32
    %c0_i32_1 = arith.constant 0 : i32
    return %c0_i32, %c0_i32_0 : i32, i32
  }
  func.func @transform_9(%arg0: i32, %arg1: i32) -> (i32, i32) {
    %c0_i32 = arith.constant 0 : i32
    %c0_i32_0 = arith.constant 0 : i32
    %c0_i32_1 = arith.constant 0 : i32
    return %c0_i32, %c0_i32_0 : i32, i32
  }
  func.func @transform_10(%arg0: i32, %arg1: i32) -> (i32, i32) {
    %c0_i32 = arith.constant 0 : i32
    %c0_i32_0 = arith.constant 0 : i32
    %c0_i32_1 = arith.constant 0 : i32
    return %c0_i32, %c0_i32_0 : i32, i32
  }
  func.func @transform_11(%arg0: i32, %arg1: i32) -> (i32, i32) {
    %c0_i32 = arith.constant 0 : i32
    %c0_i32_0 = arith.constant 0 : i32
    %c0_i32_1 = arith.constant 0 : i32
    return %c0_i32, %c0_i32_0 : i32, i32
  }
  func.func @transform_12(%arg0: i32, %arg1: i32) -> (i32, i32) {
    %c0_i32 = arith.constant 0 : i32
    %c0_i32_0 = arith.constant 0 : i32
    %c0_i32_1 = arith.constant 0 : i32
    return %c0_i32, %c0_i32_0 : i32, i32
  }
  func.func @transform_13(%arg0: i32, %arg1: i32) -> (i32, i32) {
    %c0_i32 = arith.constant 0 : i32
    %c0_i32_0 = arith.constant 0 : i32
    %c0_i32_1 = arith.constant 0 : i32
    return %c0_i32, %c0_i32_0 : i32, i32
  }
  func.func @transform_14(%arg0: i32, %arg1: i32) -> (i32, i32) {
    %c0_i32 = arith.constant 0 : i32
    %c0_i32_0 = arith.constant 0 : i32
    %c0_i32_1 = arith.constant 0 : i32
    return %c0_i32, %c0_i32_0 : i32, i32
  }
  func.func @transform_15(%arg0: i32, %arg1: i32) -> (i32, i32) {
    %c0_i32 = arith.constant 0 : i32
    %c0_i32_0 = arith.constant 0 : i32
    %c0_i32_1 = arith.constant 0 : i32
    return %c0_i32, %c0_i32_0 : i32, i32
  }
  func.func @transform_16(%arg0: i32, %arg1: i32) -> (i32, i32, i32) {
    %c0_i32 = arith.constant 0 : i32
    %c0_i32_0 = arith.constant 0 : i32
    return %arg0, %arg1, %c0_i32 : i32, i32, i32
  }
}

</mosaic_0001>

<bundles_post_ra>
// kernel: tpu_custom_call.1
= control target key start
LH: loop header
LB: loop body
LE: loop exit
PB: predicated region body
PF: predicated region fallthrough
CT: control target
= control target key end

     0   :  { %s3022_s0 = inlined_call_operand.vmem [shape: f32[2,16,32], index: 0, kind: input, shape index: {}]   ;;  %s3023_s1 = inlined_call_operand.hbm [shape: f32[2,16,32], index: 1, kind: input, shape index: {}]   ;;  %s3024_s2 = inlined_call_operand.vmem [shape: f32[1,32], index: 2, kind: input, shape index: {}]   ;;  %s3025_s3 = inlined_call_operand.vmem [shape: f32[1,32], index: 3, kind: input, shape index: {}]   ;;  %s3026_s4 = inlined_call_operand.vmem [shape: bf16[32,32], index: 4, kind: input, shape index: {}]   ;;  %s3027_s5 = inlined_call_operand.vmem [shape: f32[1,32], index: 5, kind: input, shape index: {}]   ;;  %s3028_s6 = inlined_call_operand.hbm [shape: bf16[32,64], index: 6, kind: input, shape index: {}]   ;;  %s3029_s7 = inlined_call_operand.vmem [shape: f32[1,64], index: 7, kind: input, shape index: {}]   ;;  %s3030_s8 = inlined_call_operand.hbm [shape: bf16[32,32], index: 8, kind: input, shape index: {}]   ;;  %s3031_s9 = inlined_call_operand.vmem [shape: f32[1,32], index: 9, kind: input, shape index: {}]   ;;  %s3032_s10 = inlined_call_operand.vmem [shape: f32[1,32], index: 10, kind: input, shape index: {}]   ;;  %s3033_s11 = inlined_call_operand.vmem [shape: f32[1,32], index: 11, kind: input, shape index: {}]   ;;  %s3034_s12 = inlined_call_operand.hbm [shape: bf16[32,64], index: 12, kind: input, shape index: {}]   ;;  %s3035_s13 = inlined_call_operand.vmem [shape: f32[1,64], index: 13, kind: input, shape index: {}]   ;;  %s3036_s14 = inlined_call_operand.vmem [shape: bf16[64,32], index: 14, kind: input, shape index: {}]   ;;  %s3037_s15 = inlined_call_operand.vmem [shape: f32[1,32], index: 15, kind: input, shape index: {}]   ;;  %s3038_s16 = inlined_call_operand.hbm [shape: f32[2,16,32], index: 16, kind: output, shape index: {}]  }
   0x1   :  { %3053 = sst [smem:[#allocation24_spill]] %s3022_s0 }
   0x2   :  { %3054 = sst [smem:[#allocation25_spill]] %s3026_s4 }
   0x3   :  { %3055 = sst [smem:[#allocation26_spill]] %s3027_s5 }
   0x4   :  { %3056 = sst [smem:[#allocation27_spill]] %s3028_s6 }
   0x5   :  { %3057 = sst [smem:[#allocation28_spill]] %s3029_s7 }
   0x6   :  { %3058 = sst [smem:[#allocation29_spill]] %s3030_s8 }
   0x7   :  { %3059 = sst [smem:[#allocation30_spill]] %s3031_s9 }
   0x8   :  { %3060 = sst [smem:[#allocation31_spill]] %s3032_s10 }
   0x9   :  { %3061 = sst [smem:[#allocation32_spill]] %s3033_s11 }
   0xa   :  { %3062 = sst [smem:[#allocation33_spill]] %s3034_s12 }
   0xb   :  { %3063 = sst [smem:[#allocation34_spill]] %s3035_s13 }
   0xc   :  { %3064 = sst [smem:[#allocation35_spill]] %s3036_s14 }
   0xd   :  { %3065 = sst [smem:[#allocation36_spill]] %s3037_s15 }
   0xe   :  { %3066 = sst [smem:[#allocation37_spill]] %s3038_s16 }
   0xf   :  { %21 = vsyncpa [#allocation6], 0 }
  0x10   :  { %23 = vsyncpa [#allocation6 + $0x1], 0 }
  0x11   :  { %24 = vsyncpa [#allocation9], 0 }
  0x12   :  { %25 = vsyncpa [#allocation12], 0 }
  0x13   :  { %26 = vsyncpa [#allocation7], 0 }
  0x14   :  { %28 = vsyncpa [#allocation7 + $0x1], 0  ;;  %s2603_s21 = smov 0   ;;  %s2605_s22 = smov 0  }
  0x15   :  { %s2607_s23 = smov 0   ;;  %s2609_s24 = smov 0  }
  0x16   :  { %s2611_s25 = smov 0   ;;  %s2613_s26 = smov 0  }
  0x17   :  { %s2615_s27 = smov 0   ;;  %s2617_s28 = smov 0  }
  0x18   :  { %s2619_s29 = smov 0   ;;  %s2621_s30 = smov 0  }
  0x19   :  { %s2623_s0 = smov 0  }
  0x1a LB: > { %3067 = sst [smem:[#allocation18_spill]] %s2449_s21  ;;  %s1852_s17 = sadd.s32 4294967295, %s2489_s0   ;;  %s2489_s0 = sphi %s2623_s0, %s34_s0   ;;  %s2485_s30 = sphi %s2621_s30, %s3113_s30   ;;  %s2481_s29 = sphi %s2619_s29, %s3104_s29   ;;  %s2477_s28 = sphi %s2617_s28, %s3112_s28   ;;  %s2473_s27 = sphi %s2615_s27, %s3103_s27   ;;  %s2469_s26 = sphi %s2613_s26, %s3111_s26   ;;  %s2465_s25 = sphi %s2611_s25, %s3110_s25   ;;  %s2461_s24 = sphi %s2609_s24, %s3109_s24   ;;  %s2457_s23 = sphi %s2607_s23, %s3108_s23   ;;  %s2453_s22 = sphi %s2605_s22, %s3107_s22   ;;  %s2449_s21 = sphi %s2603_s21, %s3106_s21  }
  0x1b   : > { %3068 = sst [smem:[#allocation19_spill]] %s2481_s29  ;;  %s1853_s18 = sadd.s32 4294967294, %s2489_s0  }
  0x1c   : > { %p94_p0 = scmp.ne.s32.totalorder %s2465_s25, %s2461_s24  ;;  %p2659_p1 = scmp.eq.s32.totalorder %s1852_s17, 0 }
  0x1d   : > { %p413_p2 = scmp.ne.s32.totalorder %s2457_s23, %s2453_s22  ;;  %p414_p4 = scmp.eq.s32.totalorder %s1852_s17, 3 }
  0x1e   : > { %s3069_s19 = scalar_select %p2659_p1, 1, 0 }
  0x1f   : > { %p2668_p3 = por %p2659_p1, %p94_p0  ;;  %p419_p5 = scmp.ne.s32.totalorder %s2453_s22, %s2449_s21 }
  0x20   : > { %p420_p6 = scmp.eq.s32.totalorder %s1853_s18, 3  ;;  %p2674_p7 = por %p414_p4, %p413_p2 }
  0x21   : > { %s3070_s16 = scalar_select %p2668_p3, 1, 0 }
  0x22   : > { %s3071_s15 = scalar_select %p2674_p7, 1, 0 }
  0x23   : > { %p1854_p8 = scmp.ge.s32.totalorder %s2489_s0, 1  ;;  %p2679_p9 = por %p420_p6, %p419_p5 }
  0x24   : > { %3072 = sst [smem:[#allocation20_spill]] %s3071_s15  ;;  %p427_p10 = scmp.lt.s32.totalorder %s2489_s0, 5 }
  0x25   : > { %s3073_s24 = scalar_select %p2679_p9, 1, 0 }
  0x26   : > { %p2684_p11 = pnand %p1854_p8, %p427_p10  ;;  %s2491_s13 = smov [#allocation8]  }
  0x27   : > { %3074 = sst [smem:[#allocation21_spill]] %s3073_s24  ;;  %s451_s14 = sshll.u32 %s2491_s13, 4  ;;  %s452_s14 = int_to_ptr.vmem [resolvable:$true] %s451_s14 }
  0x28   : > { %p2068_p12 = pneg %p2684_p11  ;;  %s2492_s18 = smov [#allocation10]  }
  0x29   : > { %s467_s24 = sshll.u32 %s2492_s18, 4  ;;  %s2493_s21 = smov [#allocation11]   ;;  %s468_s24 = int_to_ptr.vmem [resolvable:$true] %s467_s24 }
  0x2a   : > { %p2692_p13 = pnand %p2068_p12, %p2659_p1  ;;  %s489_s15 = sshll.u32 %s2493_s21, 4  ;;  %s490_s15 = int_to_ptr.vmem [resolvable:$true] %s489_s15 }
  0x2b   : > { %s2266_s11 = scalar_lea.vmem %s452_s14, 256  ;;  %p2274_p6 = scmp.lt.s32.totalorder %s452_s14, %s452_s14 }
  0x2c   : > { %p2257_p0 = pneg %p2692_p13  ;;  %p2267_p2 = scmp.ne.s32.totalorder %s452_s14, %s2266_s11 }
  0x2d   : > { %p2275_p8 = scmp.lt.s32.totalorder %s2266_s11, %s2266_s11 }
  0x2e   : > { %p2269_p4 = pnand %p2267_p2, %p2257_p0 }
  0x2f   : > { %p2276_p10 = por %p2275_p8, %p2274_p6 }
  0x30   : > { %p2270_p5 = pneg %p2269_p4 }
  0x32   : > { %p2277_p12 = pnand %p2276_p10, %p2270_p5 }
  0x34   : > { %2280 = shalt.err (!%p2277_p12)
}
  0x35   : > { %s2494_s13 = smov 64   ;;  %s2495_s18 = smov 4  }
  0x36   : > { %s3077_s6 = sld [smem:[#allocation27_spill]]  ;;  %s2292_s9 = scalar_lea.vmem %s468_s24, 256 }
  0x37   : > { %p2293_p9 = scmp.ne.s32.totalorder %s468_s24, %s2292_s9  ;;  %p2300_p7 = scmp.lt.s32.totalorder %s468_s24, %s468_s24 }
  0x38   : > { %p2301_p1 = scmp.lt.s32.totalorder %s2292_s9, %s2292_s9 }
  0x39   : > { %p2295_p2 = pnand %p2293_p9, %p2257_p0 }
  0x3a   : > { %p2302_p6 = por %p2301_p1, %p2300_p7 }
  0x3b   : > { %p2296_p4 = pneg %p2295_p2 }
  0x3c   : > { %2071 = dma.hbm_to_vmem [thread:$0]  (!%p2692_p13), %s3077_s6, 256, %s452_s14, [#allocation9], %s2494_s13, %s2494_s13, %s2495_s18  }
  0x3d   : > { %p2303_p5 = pnand %p2302_p6, %p2296_p4 }
  0x3f   : > { %2306 = shalt.err (!%p2303_p5)
}
  0x40   : > { %s3078_s8 = sld [smem:[#allocation29_spill]]  ;;  %s2318_s10 = scalar_lea.vmem %s490_s15, 256 }
  0x41   : > { %p2319_p8 = scmp.ne.s32.totalorder %s490_s15, %s2318_s10  ;;  %p2326_p12 = scmp.lt.s32.totalorder %s490_s15, %s490_s15 }
  0x42   : > { %p2327_p2 = scmp.lt.s32.totalorder %s2318_s10, %s2318_s10 }
  0x43   : > { %p2321_p10 = pnand %p2319_p8, %p2257_p0 }
  0x44   : > { %p2328_p3 = por %p2327_p2, %p2326_p12 }
  0x45   : > { %p2322_p9 = pneg %p2321_p10 }
  0x46   : > { %2074 = dma.hbm_to_vmem [thread:$0]  (!%p2692_p13), %s3078_s8, 256, %s468_s24, [#allocation9], %s2494_s13, %s2494_s13, %s2495_s18  }
  0x47   : > { %p2329_p1 = pnand %p2328_p3, %p2322_p9 }
  0x49   : > { %2332 = shalt.err (!%p2329_p1)
}
  0x4a   : > { %s3079_s12 = sld [smem:[#allocation33_spill]]  ;;  %s43_s5 = sadd.s32 1, %s2481_s29 }
  0x4b   : > { %p44_p3 = scmp.ge.s32.totalorder %s43_s5, 2  ;;  %s46_s24 = sadd.s32 1, %s2485_s30 }
  0x4c   : > { %s81_s21 = sadd.s32 1, %s2469_s26  ;;  %p88_p7 = scmp.ne.s32.totalorder %s2469_s26, %s2465_s25 }
  0x4d   : > { %s3115_s5 = smov (%p44_p3, %s43_s5), 0  ;;  %s3117_s24 = smov (!%p44_p3, %s46_s24), %s2485_s30 }
  0x4e   : > { %3080 = sst [smem:[#allocation22_spill]] %s3115_s5  ;;  %p89_p0 = scmp.eq.s32.totalorder %s2489_s0, 0 }
  0x4f   : > { %s399_s17 = ssub.s32 %s2481_s29, %s3115_s5  ;;  %p48_p4 = scmp.ge.s32.totalorder %s3117_s24, 2 }
  0x50   : > { %2077 = dma.hbm_to_vmem [thread:$0]  (!%p2692_p13), %s3079_s12, 256, %s490_s15, [#allocation12], %s2494_s13, %s2494_s13, %s2495_s18  }
  0x51   : > { %p2089_p6 = scmp.lt.s32.totalorder %s2489_s0, 4  ;;  %p2734_p13 = por %p89_p0, %p88_p7 }
  0x52   : > { %s523_s13 = sand.u32 1, %s2469_s26   ;;  %s3119_s24 = smov (%p48_p4, %s3117_s24), 0 }
  0x53   : > { %3082 = sst [smem:[#allocation23_spill]] %s3119_s24  ;;  %s1859_s18 = sshll.u32 %s523_s13, 4 }
  0x54   : > { %s78_s11 = ssub.s32 %s2485_s30, %s3119_s24  ;;  %s1921_s9 = sshll.u32 %s2485_s30, 8 }
  0x55   : > { %p79_p5 = scmp.eq.s32.totalorder %s78_s11, 0  ;;  %s400_s10 = sor.u32 %s399_s17, %s78_s11 }
  0x56   : > { %p401_p8 = scmp.eq.s32.totalorder %s400_s10, 0  ;;  %s3083_s6 = sadd.s32 1, %s2457_s23 }
  0x57   : > { %s2745_s14 = scalar_select %p79_p5, %s2469_s26, %s81_s21  }
  0x58   : > { %s2750_s8 = scalar_select %p401_p8, %s2457_s23, %s3083_s6  }
  0x59   : > { %s533_s29 = scalar_lea.hbm %s3023_s1, %s1921_s9  ;;  %s527_s4 = scalar_lea.vmem [#allocation5], %s1859_s18 }
  0x5a   : > { %s534_s7 = sshll.u32 %s527_s4, 4  ;;  %p2759_p10 = pnand %p2089_p6, %p2734_p13  ;;  %s535_s7 = int_to_ptr.vmem [resolvable:$true] %s534_s7 }
  0x5b   : > { %s524_s17 = scalar_lea.sflag [#allocation6], %s523_s13  ;;  %s2346_s21 = scalar_lea.vmem %s535_s7, 256 }
  0x5c   : > { %p2335_p9 = pneg %p2759_p10  ;;  %p2347_p12 = scmp.ne.s32.totalorder %s535_s7, %s2346_s21 }
  0x5d   : > { %s2496_s6 = smov [#allocation5]  }
  0x5e   : > { %p2349_p2 = pnand %p2347_p12, %p2335_p9  ;;  %s2351_s12 = sshll.u32 %s2496_s6, 4  ;;  %s2352_s12 = int_to_ptr.vmem [resolvable:$false] %s2351_s12 }
  0x5f   : > { %s2353_s5 = scalar_lea.vmem %s2352_s12, 512  ;;  %p2354_p3 = scmp.lt.s32.totalorder %s535_s7, %s2352_s12 }
  0x60   : > { %p2350_p1 = pneg %p2349_p2  ;;  %p2355_p7 = scmp.lt.s32.totalorder %s2353_s5, %s2346_s21 }
  0x62   : > { %p2356_p0 = por %p2355_p7, %p2354_p3 }
  0x64   : > { %p2357_p4 = pnand %p2356_p0, %p2350_p1 }
  0x66   : > { %2360 = shalt.err (!%p2357_p4)
}
  0x67   : > { %s2497_s4 = smov 128   ;;  %s2498_s15 = smov 8  }
  0x68   : > { %2081 = dma.hbm_to_vmem [thread:$0]  (!%p2759_p10), %s533_s29, 256, %s535_s7, %s524_s17, %s2497_s4, %s2497_s4, %s2498_s15  }
  0x69   : > { %546 = sbr.rel (%p2684_p11) target bundleno = 3061 (0xbf5), region = 84  ;;  %s548_s13 = sand.u32 (!%p2684_p11), 1, %s2465_s25  }
  0x6a   : > { %s1863_s18 = sshll.u32 (!%p2684_p11), %s548_s13, 4  ;;  %s549_s11 = scalar_lea.sflag (!%p2684_p11), [#allocation6], %s548_s13 }
  0x6b   : > { %s552_s10 = scalar_lea.vmem (!%p2684_p11), [#allocation5], %s1863_s18  ;;  %p3085_p6 = scmp.ne.s32.totalorder (!%p2684_p11), %s3070_s16, 0 }
  0x6e   : > { %2432 = dma.done.wait (%p3085_p6), %s549_s11, 256  }
  0x6f   : > { %2434 = vsyncadd (%p3085_p6), %s549_s11, 4294967040  ;;  %p3086_p13 = scmp.ne.s32.totalorder %s3069_s19, 0 }
  0x71   : > { %2436 = dma.done.wait (%p3086_p13), [#allocation9], 512  }
  0x72   : > { %2438 = vsyncadd (%p3086_p13), [#allocation9], 4294966784 }
  0x73   : > { %2440 = dma.done.wait (%p3086_p13), [#allocation12], 256  }
  0x74   : > { %2442 = vsyncadd (%p3086_p13), [#allocation12], 4294967040  ;;  %p621_p11 = scmp.lt.s32.totalorder %s2477_s28, 1  ;;  %p623_p5 = scmp.lt.s32.totalorder %s2473_s27, 1  ;;  %v2797_v0 = vld [vmem:[%s3024_s2] sm:$0x1] }
  0x75   : > { %s618_s7 = sand.u32 1, %s2453_s22   ;;  %s3087_s6 = sld [smem:[#allocation24_spill]]  ;;  %v2802_v1 = vld [vmem:[%s3025_s3] sm:$0x1] }
  0x76   : > { %s622_s16 = scalar_select %p621_p11, %s2477_s28, 1 }
  0x77   : > { %s624_s29 = scalar_select %p623_p5, %s2473_s27, 1 }
  0x78   : > { %s1868_s20 = sshll.u32 %s622_s16, 1  ;;  %s2789_s24 = sshll.u32 %s618_s7, 3 }
  0x79   : > { %s626_s9 = sadd.s32 %s1868_s20, %s624_s29  ;;  %s620_s18 = scalar_lea.vmem [#allocation13], %s2789_s24 }
  0x7a   : > { %s1869_s17 = sshll.u32 %s626_s9, 3  ;;  %p1870_p8 = scmp.ne.s32.totalorder %s2473_s27, 0 }
  0x7b   : > { %s628_s12 = scalar_lea.vmem %s3087_s6, %s1869_s17  ;;  %s3088_s16 = sld [smem:[#allocation28_spill]] (!%p1870_p8) }
  0x7c   : > { %v2804_v2 = vld [vmem:[%s628_s12] sm:$0xff]  ;;  %636 = sbr.rel (%p1870_p8) target bundleno = 785 (0x311), region = 104  ;;  %s2501_s29 = smov (!%p1870_p8), 120  }
  0x7d   : > { %s2502_s20 = smov (!%p1870_p8), 96   ;;  %s2503_s9 = smov (!%p1870_p8), 88  }
  0x7e   : > { %s2504_s17 = smov (!%p1870_p8), 112   ;;  %s2505_s19 = smov (!%p1870_p8), 80  }
  0x7f   : > { %s2506_s21 = smov (!%p1870_p8), 104   ;;  %s2507_s6 = smov (!%p1870_p8), 72  }
  0x81   : > { %v637_v3 = vld [vmem:[%s552_s10] sm:$0xff]  ;;  %vm639_vm0 = vcmask 261120   ;;  %v638_v4 = vld [vmem:[%s552_s10 + $0x8] sm:$0xff]  ;;  %v2499_v18 = vmov 0.0   ;;  %vm2500_vm1 = vmmov 0   ;;  %v668_v26 = vlaneseq }
  0x82   : > { %v640_v5 = vsel %vm639_vm0, %v637_v3, 0.0  ;;  %v643_v6 = vsel %vm639_vm0, %v638_v4, 0.0  ;;  %v2207_v17 = vld [vmem:[#allocation8 + $0x8] sm:$0xff]   ;;  %1960 = vmatprep.subr.bf16.mxu0 %v2499_v18  ;;  %1964 = vmatprep.mubr.msk.bf16.mxu0 %vm2500_vm1, %v2499_v18  ;;  %v2208_v19 = vld [vmem:[#allocation8] sm:$0xff]   ;;  %v1871_v40 = vld [vmem:[%s3088_s16] ss:$0 sm:$0xff] }
  0x83   : > { %641 = vadd.xlane.f32.xlu0 %v640_v5  ;;  %1961 = vmatpush3.bf16.msra.mxu0 %v2207_v17  ;;  %v669_v27 = vshrl.u32 %v668_v26, 7  ;;  %vm759_vm2 = vcmask 60416  }
  0x84   : > { %1962 = vmatprep.subr.bf16.mxu0 %v2499_v18 }
  0x85   : > { %v670_v28 = vsub.s32 0, %v669_v27 }
  0x87   : > { %644 = vadd.xlane.f32.xlu0 %v643_v6  ;;  %1963 = vmatpush3.bf16.msra.mxu0 %v2208_v19  ;;  %v671_v31 = vrot.slane %v2797_v0, %v670_v28  ;;  %v679_v35 = vrot.slane %v2802_v1, %v670_v28 }
 0x10c   : > { %v642_v7 = vpop.xlane.xlu0 %641 }
 0x10d   : > { %v647_v8 = vmul.f32 0.03125, %v642_v7 }
 0x10f   : > { %v649_v9 = vsub.f32 %v637_v3, %v647_v8 }
 0x110   : > { %v645_v10 = vpop.xlane.xlu0 %644 }
 0x111   : > { %v648_v11 = vmul.f32 0.03125, %v645_v10  ;;  %v651_v12 = vmul.f32 %v649_v9, %v649_v9 }
 0x113   : > { %v650_v13 = vsub.f32 %v638_v4, %v648_v11  ;;  %v653_v14 = vsel %vm639_vm0, %v651_v12, 0.0 }
 0x114   : > { %654 = vadd.xlane.f32.xlu1 %v653_v14 }
 0x115   : > { %v652_v15 = vmul.f32 %v650_v13, %v650_v13 }
 0x117   : > { %v656_v16 = vsel %vm639_vm0, %v652_v15, 0.0 }
 0x118   : > { %657 = vadd.xlane.f32.xlu1 %v656_v16 }
 0x19d   : > { %v655_v20 = vpop.xlane.xlu1 %654 }
 0x19e   : > { %v659_v21 = vmul.f32 0.03125, %v655_v20 }
 0x1a0   : > { %v661_v22 = vadd.f32 1e-05, %v659_v21 }
 0x1a1   : > { %v658_v23 = vpop.xlane.xlu1 %657 }
 0x1a2   : > { %2209 = vrsqrt.f32 %v661_v22  ;;  %v660_v24 = vmul.f32 0.03125, %v658_v23 }
 0x1a4   : > { %v662_v25 = vadd.f32 1e-05, %v660_v24 }
 0x1a6   : > { %2211 = vrsqrt.f32 %v662_v25 }
 0x1af   : > { %v2210_v29 = vpop.eup %2209 }
 0x1b0   : > { %v665_v30 = vmul.f32 %v2210_v29, %v649_v9 }
 0x1b2   : > { %v673_v34 = vmul.f32 %v671_v31, %v665_v30 }
 0x1b3   : > { %v2212_v32 = vpop.eup %2211 }
 0x1b4   : > { %v666_v33 = vmul.f32 %v2212_v32, %v650_v13  ;;  %v681_v37 = vadd.f32 %v679_v35, %v673_v34 }
 0x1b6   : > { %v674_v36 = vmul.f32 %v671_v31, %v666_v33 }
 0x1b8   : > { %v682_v38 = vadd.f32 %v679_v35, %v674_v36 }
 0x1ba   : > { %v683_v39 = vpack.c.bf16 %v682_v38, %v681_v37 }
 0x1bc   : > { %1965 = vmatmul.mubr.msk.bf16.vlgmr.msra.gmra.mxu0 %vm639_vm0, %v683_v39 }
 0x27c   : > { %v744_v41 = vpop.f32.mrf.mxu0 }
 0x27d   : > { %v745_v42 = vadd.f32 %v1871_v40, %v744_v41 }
 0x27e   : > { %v1966_v43 = vpop.f32.mrf.mxu0 }
 0x27f   : > { %v1922_v44 = vpack.c.bf16 %v745_v42, %v745_v42 }
 0x280   : > { %v747_v45 = vpop.f32.mrf.mxu0 }
 0x281   : > { %760 = vst.msk [vmem:[#allocation2] sm:$0xf] %vm759_vm2, %v1922_v44  ;;  %v748_v46 = vadd.f32 %v1871_v40, %v747_v45  ;;  %770 = vrot.lane.b32.xlu1 %v1922_v44, %s2501_s29  ;;  %762 = vrot.lane.b32.xlu0 %v1922_v44, %s2502_s20 }
 0x282   : > { %v1967_v47 = vpop.f32.mrf.mxu0 }
 0x283   : > { %v1923_v48 = vpack.c.bf16 %v748_v46, %v748_v46 }
 0x285   : > { %761 = vst.msk [vmem:[#allocation2 + $0x4] sm:$0xf] %vm759_vm2, %v1923_v48  ;;  %779 = vrot.lane.b32.xlu0 %v1922_v44, %s2503_s9  ;;  %764 = vrot.lane.b32.xlu1 %v1923_v48, %s2502_s20 }
 0x289   : > { %788 = vrot.lane.b32.xlu0 %v1922_v44, %s2504_s17  ;;  %772 = vrot.lane.b32.xlu1 %v1923_v48, %s2501_s29 }
 0x28d   : > { %797 = vrot.lane.b32.xlu0 %v1922_v44, %s2505_s19  ;;  %781 = vrot.lane.b32.xlu1 %v1923_v48, %s2503_s9 }
 0x291   : > { %806 = vrot.lane.b32.xlu0 %v1922_v44, %s2506_s21  ;;  %790 = vrot.lane.b32.xlu1 %v1923_v48, %s2504_s17 }
 0x295   : > { %815 = vrot.lane.b32.xlu0 %v1922_v44, %s2507_s6  ;;  %799 = vrot.lane.b32.xlu1 %v1923_v48, %s2505_s19 }
 0x299   : > { %808 = vrot.lane.b32.xlu1 %v1923_v48, %s2506_s21 }
 0x29d   : > { %817 = vrot.lane.b32.xlu1 %v1923_v48, %s2507_s6 }
 0x2f3   : > { %v771_v49 = vpop.permute.xlu1 %770  ;;  %v763_v50 = vpop.permute.xlu0 %762 }
 0x2f4   : > { %777 = vst.msk [vmem:[#allocation2 + $0x8] sm:$0xf] %vm759_vm2, %v771_v49  ;;  %768 = vst.msk [vmem:[#allocation3] sm:$0xf] %vm759_vm2, %v763_v50 }
 0x2f7   : > { %v780_v51 = vpop.permute.xlu0 %779  ;;  %v765_v52 = vpop.permute.xlu1 %764 }
 0x2f8   : > { %786 = vst.msk [vmem:[#allocation3 + $0x8] sm:$0xf] %vm759_vm2, %v780_v51  ;;  %769 = vst.msk [vmem:[#allocation3 + $0x4] sm:$0xf] %vm759_vm2, %v765_v52 }
 0x2fb   : > { %v789_v53 = vpop.permute.xlu0 %788  ;;  %v773_v54 = vpop.permute.xlu1 %772 }
 0x2fc   : > { %795 = vst.msk [vmem:[#allocation2 + $0x10] sm:$0xf] %vm759_vm2, %v789_v53  ;;  %778 = vst.msk [vmem:[#allocation2 + $0xc] sm:$0xf] %vm759_vm2, %v773_v54 }
 0x2ff   : > { %v798_v55 = vpop.permute.xlu0 %797  ;;  %v782_v56 = vpop.permute.xlu1 %781 }
 0x300   : > { %804 = vst.msk [vmem:[#allocation3 + $0x10] sm:$0xf] %vm759_vm2, %v798_v55  ;;  %787 = vst.msk [vmem:[#allocation3 + $0xc] sm:$0xf] %vm759_vm2, %v782_v56 }
 0x303   : > { %v807_v57 = vpop.permute.xlu0 %806  ;;  %v791_v58 = vpop.permute.xlu1 %790 }
 0x304   : > { %813 = vst.msk [vmem:[#allocation2 + $0x18] sm:$0xf] %vm759_vm2, %v807_v57  ;;  %796 = vst.msk [vmem:[#allocation2 + $0x14] sm:$0xf] %vm759_vm2, %v791_v58 }
 0x307   : > { %v816_v59 = vpop.permute.xlu0 %815  ;;  %v800_v60 = vpop.permute.xlu1 %799 }
 0x308   : > { %822 = vst.msk [vmem:[#allocation3 + $0x18] sm:$0xf] %vm759_vm2, %v816_v59  ;;  %805 = vst.msk [vmem:[#allocation3 + $0x14] sm:$0xf] %vm759_vm2, %v800_v60 }
 0x30b   : > { %v809_v61 = vpop.permute.xlu1 %808 }
 0x30c   : > { %814 = vst.msk [vmem:[#allocation2 + $0x1c] sm:$0xf] %vm759_vm2, %v809_v61 }
 0x30f   : > { %v818_v62 = vpop.permute.xlu1 %817 }
 0x310   : > { %823 = vst.msk [vmem:[#allocation3 + $0x1c] sm:$0xf] %vm759_vm2, %v818_v62 }
 0x311 PF: > { %vm824_vm3 = vcmask 261120   ;;  %s3089_s4 = sld [smem:[#allocation25_spill]]  ;;  %v2508_v9 = vmov 0.0   ;;  %vm2509_vm4 = vmmov 0   ;;  %v2215_v11 = vld [vmem:[#allocation2] sm:$0xff]   ;;  %vm928_vm5 = vcmask 64512  }
 0x312   : > { %v825_v63 = vsel %vm824_vm3, %v2804_v2, 0.0  ;;  %1968 = vmatprep.subr.bf16.mxu0 %v2508_v9  ;;  %1972 = vmatprep.mubr.msk.bf16.mxu0 %vm2509_vm4, %v2508_v9  ;;  %v933_v12 = vsel %vm928_vm5, %v2215_v11, 0  ;;  %v840_v16 = vlaneseq  ;;  %s3090_s16 = sld [smem:[#allocation26_spill]]  ;;  %v2216_v28 = vld [vmem:[#allocation2 + $0x8] sm:$0xff]   ;;  %s2510_s29 = smov 104   ;;  %v2217_v33 = vld [vmem:[#allocation2 + $0x10] sm:$0xff]  }
 0x313   : > { %826 = vadd.xlane.f32.xlu0 %v825_v63  ;;  %1976 = vmatprep.subr.bf16.mxu1 %v2508_v9  ;;  %s2511_s20 = smov 120   ;;  %s2512_s9 = smov 112   ;;  %v1186_v34 = vsel %vm928_vm5, %v2217_v33, 0  ;;  %v2218_v36 = vld [vmem:[#allocation2 + $0x18] sm:$0xff]   ;;  %vm975_vm6 = vcmask 130048   ;;  %v2219_v45 = vld [vmem:[#allocation3] sm:$0xff]  }
 0x314   : > { %1978 = vmatprep.mubr.msk.bf16.mxu1 %vm2509_vm4, %v2508_v9  ;;  %1977 = vmatpush3.bf16.xpose.msra.mxu1 %v933_v12  ;;  %v841_v17 = vshrl.u32 %v840_v16, 7  ;;  %v1315_v37 = vsel %vm928_vm5, %v2218_v36, 0  ;;  %vm1040_vm7 = vcmask 60416   ;;  %s2513_s17 = smov 8   ;;  %s2514_s19 = smov 16   ;;  %vm1170_vm8 = vcmask 126016  }
 0x315   : > { %1988 = vmatprep.subr.bf16.mxu1 %v2508_v9  ;;  %s2515_s21 = smov 24   ;;  %vm1299_vm9 = vcmask 191616   ;;  %vm1428_vm10 = vcmask 257216   ;;  %s3091_s5 = sld [smem:[#allocation30_spill]]  ;;  %vm1660_vm12 = vcmask 523264  }
 0x316   : > { %v842_v18 = vsub.s32 0, %v841_v17  ;;  %v2221_v17 = vld [vmem:[#allocation3 + $0x10] sm:$0xff]   ;;  %s3092_s11 = sld [smem:[#allocation31_spill]]  ;;  %s1722_s12 = sshll.u32 %s620_s18, 4  ;;  %s2958_s12 = int_to_ptr.vmem [resolvable:$true] %s1722_s12 }
 0x317   : > { %v2213_v8 = vld [vmem:[%s3089_s4 + $0x8] sm:$0xff]   ;;  %v2214_v10 = vld [vmem:[%s3089_s4] sm:$0xff]   ;;  %s3095_s10 = sld [smem:[#allocation34_spill]] }
 0x318   : > { %1969 = vmatpush3.bf16.msra.mxu0 %v2213_v8  ;;  %v843_v19 = vrot.slane %v2797_v0, %v842_v18  ;;  %v850_v22 = vrot.slane %v2802_v1, %v842_v18  ;;  %v1877_v26 = vld [vmem:[%s3090_s16] ss:$0 sm:$0xff]  ;;  %v1057_v1 = vsel %vm928_vm5, %v2216_v28, 0  ;;  %s1917_s16 = sshll.u32 %s2477_s28, 1  ;;  %s3098_s13 = sld [smem:[#allocation37_spill]] }
 0x319   : > { %1970 = vmatprep.subr.bf16.mxu0 %v2508_v9  ;;  %s2361_s28 = scalar_lea.vmem %s2958_s12, 128 }
 0x31a   : > { %p2362_p10 = scmp.ne.s32.totalorder %s2958_s12, %s2361_s28 }
 0x31c   : > { %1971 = vmatpush3.bf16.msra.mxu0 %v2214_v10 }
 0x31d   : > { %1982 = vmatprep.subr.bf16.mxu0 %v2508_v9 }
 0x39c   : > { %v827_v3 = vpop.xlane.xlu0 %826 }
 0x39d   : > { %v829_v4 = vmul.f32 0.03125, %v827_v3 }
 0x39f   : > { %v830_v5 = vsub.f32 %v2804_v2, %v829_v4  ;;  %v2220_v4 = vld [vmem:[#allocation3 + $0x8] sm:$0xff]  }
 0x3a1   : > { %v831_v6 = vmul.f32 %v830_v5, %v830_v5 }
 0x3a3   : > { %v832_v7 = vsel %vm824_vm3, %v831_v6, 0.0 }
 0x3a4   : > { %833 = vadd.xlane.f32.xlu0 %v832_v7 }
 0x42d   : > { %v834_v13 = vpop.xlane.xlu0 %833 }
 0x42e   : > { %v835_v14 = vmul.f32 0.03125, %v834_v13 }
 0x430   : > { %v836_v15 = vadd.f32 1e-05, %v835_v14 }
 0x432   : > { %2231 = vrsqrt.f32 %v836_v15 }
 0x43f   : > { %v2232_v20 = vpop.eup %2231 }
 0x440   : > { %v838_v21 = vmul.f32 %v2232_v20, %v830_v5 }
 0x442   : > { %v845_v23 = vmul.f32 %v843_v19, %v838_v21 }
 0x444   : > { %v852_v24 = vadd.f32 %v850_v22, %v845_v23  ;;  %v2222_v22 = vld [vmem:[#allocation3 + $0x18] sm:$0xff]  }
 0x446   : > { %v853_v25 = vpack.c.bf16 %v852_v24, %v852_v24 }
 0x448   : > { %1973 = vmatmul.mubr.msk.bf16.vlgmr.msra.gmra.mxu0 %vm824_vm3, %v853_v25 }
 0x449   : > { %1984 = vmatprep.mubr.msk.bf16.mxu0 %vm2509_vm4, %v2508_v9  ;;  %1983 = vmatpush3.bf16.msra.mxu0 %v2219_v45 }
 0x44a   : > { %1994 = vmatprep.subr.bf16.mxu0 %v2508_v9 }
 0x508   : > { %v914_v27 = vpop.f32.mrf.mxu0 }
 0x509   : > { %v915_v29 = vadd.f32 %v1877_v26, %v914_v27 }
 0x50a   : > { %v1974_v0 = vpop.f32.mrf.mxu0 }
 0x50b   : > { %v920_v30 = vpack.c.bf16 %v915_v29, %v915_v29 }
 0x50c   : > { %v917_v31 = vpop.f32.mrf.mxu0 }
 0x50d   : > { %1304 = vrot.lane.b32.xlu0 %v920_v30, %s2510_s29  ;;  %1046 = vrot.lane.b32.xlu1 %v920_v30, %s2511_s20  ;;  %s3093_s29 = sld [smem:[#allocation32_spill]] }
 0x50e   : > { %1979 = vmatmul.mubr.msk.bf16.vlgmr.msra.gmra.mxu1 %vm928_vm5, %v920_v30  ;;  %v1975_v32 = vpop.f32.mrf.mxu0 }
 0x50f   : > { %1989 = vmatpush3.bf16.xpose.msra.mxu1 %v1057_v1  ;;  %1990 = vmatprep.mubr.msk.bf16.mxu1 %vm2509_vm4, %v2508_v9 }
 0x510   : > { %2000 = vmatprep.subr.bf16.mxu1 %v2508_v9 }
 0x511   : > { %1175 = vrot.lane.b32.xlu1 %v920_v30, %s2512_s9 }
 0x57f   : > { %v1047_v35 = vpop.permute.xlu1 %1046  ;;  %v1305_v39 = vpop.permute.xlu0 %1304 }
 0x580   : > { %1991 = vmatmul.mubr.msk.bf16.vlgmr.msra.gmra.mxu1 %vm928_vm5, %v1047_v35 }
 0x581   : > { %2001 = vmatpush3.bf16.xpose.msra.mxu1 %v1186_v34  ;;  %2002 = vmatprep.mubr.msk.bf16.mxu1 %vm2509_vm4, %v2508_v9 }
 0x582   : > { %2012 = vmatprep.subr.bf16.mxu1 %v2508_v9 }
 0x583   : > { %v1176_v38 = vpop.permute.xlu1 %1175 }
 0x588   : > { %2003 = vmatmul.mubr.msk.bf16.vlgmr.msra.gmra.mxu1 %vm928_vm5, %v1176_v38 }
 0x589   : > { %2013 = vmatpush3.bf16.xpose.msra.mxu1 %v1315_v37  ;;  %2014 = vmatprep.mubr.msk.bf16.mxu1 %vm2509_vm4, %v2508_v9 }
 0x58a   : > { %2024 = vmatprep.subr.bf16.mxu1 %v2508_v9 }
 0x590   : > { %2015 = vmatmul.mubr.msk.bf16.vlgmr.msra.gmra.mxu1 %vm928_vm5, %v1305_v39 }
 0x591   : > { %2028 = vmatprep.mubr.msk.bf16.mxu1 %vm2509_vm4, %v2508_v9 }
 0x5ce   : > { %v969_v40 = vpop.f32.mrf.mxu1 }
 0x5cf   : > { %v976_v41 = vsel %vm975_vm6, %v969_v40, -inf }
 0x5d0   : > { %977 = vmax.xlane.f32.xlu1 %v976_v41  ;;  %v1980_v42 = vpop.f32.mrf.mxu1 }
 0x5d2   : > { %v972_v43 = vpop.f32.mrf.mxu1 }
 0x5d4   : > { %v1981_v44 = vpop.f32.mrf.mxu1 }
 0x640   : > { %v1093_v46 = vpop.f32.mrf.mxu1 }
 0x641   : > { %v1099_v47 = vsel %vm975_vm6, %v1093_v46, -inf }
 0x642   : > { %1100 = vmax.xlane.f32.xlu0 %v1099_v47  ;;  %v1992_v48 = vpop.f32.mrf.mxu1 }
 0x644   : > { %v1096_v49 = vpop.f32.mrf.mxu1 }
 0x645   : > { %v2224_v49 = vld [vmem:[#allocation10] sm:$0xff]  }
 0x646   : > { %v1993_v50 = vpop.f32.mrf.mxu1 }
 0x648   : > { %v1222_v51 = vpop.f32.mrf.mxu1 }
 0x649   : > { %v1228_v52 = vsel %vm975_vm6, %v1222_v51, -inf }
 0x64a   : > { %1229 = vmax.xlane.f32.xlu1 %v1228_v52  ;;  %v2004_v53 = vpop.f32.mrf.mxu1 }
 0x64c   : > { %v1225_v54 = vpop.f32.mrf.mxu1 }
 0x64e   : > { %v2005_v55 = vpop.f32.mrf.mxu1 }
 0x650   : > { %v1351_v56 = vpop.f32.mrf.mxu1 }
 0x651   : > { %v1357_v57 = vsel %vm975_vm6, %v1351_v56, -inf }
 0x652   : > { %1358 = vmax.xlane.f32.xlu1 %v1357_v57  ;;  %v2016_v58 = vpop.f32.mrf.mxu1 }
 0x654   : > { %v1354_v59 = vpop.f32.mrf.mxu1 }
 0x656   : > { %v2017_v60 = vpop.f32.mrf.mxu1 }
 0x659   : > { %v978_v61 = vpop.xlane.xlu1 %977 }
 0x65a   : > { %v979_v62 = vsub.f32 %v969_v40, %v978_v61 }
 0x65c   : > { %v980_v63 = vmul.f32 1.442695, %v979_v62 }
 0x65e   : > { %2233 = vpow2.f32 %v980_v63 }
 0x66b   : > { %v2234_v3 = vpop.eup %2233 }
 0x66c   : > { %v982_v5 = vsel %vm975_vm6, %v2234_v3, 0.0  ;;  %v986_v6 = vpack.c.bf16 %v2234_v3, %v2234_v3  ;;  %v1900_v3 = vld [vmem:[%s3091_s5] ss:$0 sm:$0xff] }
 0x66d   : > { %983 = vadd.xlane.f32.xlu0 %v982_v5 }
 0x66e   : > { %1985 = vmatmul.mubr.msk.bf16.vlgmr.msra.gmra.mxu0 %vm975_vm6, %v986_v6 }
 0x66f   : > { %1995 = vmatpush3.bf16.msra.mxu0 %v2220_v4  ;;  %1996 = vmatprep.mubr.msk.bf16.mxu0 %vm2509_vm4, %v2508_v9 }
 0x670   : > { %2006 = vmatprep.subr.bf16.mxu0 %v2508_v9 }
 0x6cb   : > { %v1101_v7 = vpop.xlane.xlu0 %1100 }
 0x6cc   : > { %v1102_v8 = vsub.f32 %v1093_v46, %v1101_v7  ;;  %v2223_v46 = vld [vmem:[#allocation10 + $0x8] sm:$0xff]  }
 0x6cd   : > { %2025 = vmatpush3.bf16.msra.mxu1 %v2223_v46 }
 0x6ce   : > { %v1103_v10 = vmul.f32 1.442695, %v1102_v8  ;;  %2026 = vmatprep.subr.bf16.mxu1 %v2508_v9 }
 0x6d0   : > { %2235 = vpow2.f32 %v1103_v10 }
 0x6d1   : > { %2027 = vmatpush3.bf16.msra.mxu1 %v2224_v49 }
 0x6d2   : > { %2040 = vmatprep.subr.bf16.mxu1 %v2508_v9 }
 0x6d3   : > { %v1230_v11 = vpop.xlane.xlu1 %1229 }
 0x6d4   : > { %v1231_v12 = vsub.f32 %v1222_v51, %v1230_v11 }
 0x6d6   : > { %v1232_v13 = vmul.f32 1.442695, %v1231_v12 }
 0x6d8   : > { %2237 = vpow2.f32 %v1232_v13 }
 0x6db   : > { %v1359_v14 = vpop.xlane.xlu1 %1358 }
 0x6dc   : > { %v1360_v15 = vsub.f32 %v1351_v56, %v1359_v14 }
 0x6dd   : > { %v2236_v16 = vpop.eup %2235 }
 0x6de   : > { %v1361_v18 = vmul.f32 1.442695, %v1360_v15  ;;  %v1105_v19 = vsel %vm975_vm6, %v2236_v16, 0.0  ;;  %v1109_v20 = vpack.c.bf16 %v2236_v16, %v2236_v16 }
 0x6df   : > { %1106 = vadd.xlane.f32.xlu1 %v1105_v19 }
 0x6e0   : > { %2239 = vpow2.f32 %v1361_v18  ;;  %1997 = vmatmul.mubr.msk.bf16.vlgmr.msra.gmra.mxu0 %vm975_vm6, %v1109_v20  ;;  %v2226_v18 = vld [vmem:[#allocation11] sm:$0xff]  }
 0x6e1   : > { %2007 = vmatpush3.bf16.msra.mxu0 %v2221_v17  ;;  %2008 = vmatprep.mubr.msk.bf16.mxu0 %vm2509_vm4, %v2508_v9  ;;  %v2225_v17 = vld [vmem:[#allocation11 + $0x8] sm:$0xff]  }
 0x6e2   : > { %2018 = vmatprep.subr.bf16.mxu0 %v2508_v9 }
 0x6e5   : > { %v2238_v21 = vpop.eup %2237 }
 0x6e6   : > { %v1234_v23 = vsel %vm975_vm6, %v2238_v21, 0.0  ;;  %v1238_v24 = vpack.c.bf16 %v2238_v21, %v2238_v21 }
 0x6e7   : > { %1235 = vadd.xlane.f32.xlu1 %v1234_v23 }
 0x6e8   : > { %2009 = vmatmul.mubr.msk.bf16.vlgmr.msra.gmra.mxu0 %vm975_vm6, %v1238_v24  ;;  %v1905_v24 = vld [vmem:[%s3093_s29] ss:$0 sm:$0xff]  ;;  %s1718_s29 = sadd.s32 %s2473_s27, %s1917_s16  ;;  %s1707_s27 = scalar_lea.sflag [#allocation7], %s618_s7 }
 0x6e9   : > { %2019 = vmatpush3.bf16.msra.mxu0 %v2222_v22  ;;  %2020 = vmatprep.mubr.msk.bf16.mxu0 %vm2509_vm4, %v2508_v9  ;;  %v1904_v22 = vld [vmem:[%s3092_s11] ss:$0 sm:$0xff]  ;;  %s1918_s6 = sshll.u32 %s1718_s29, 7 }
 0x6ea   : > { %2032 = vmatprep.subr.bf16.mxu0 %v2508_v9  ;;  %s2956_s11 = scalar_lea.hbm %s3098_s13, %s1918_s6 }
 0x6ed   : > { %v2240_v25 = vpop.eup %2239 }
 0x6ee   : > { %v1363_v26 = vsel %vm975_vm6, %v2240_v25, 0.0  ;;  %v1367_v27 = vpack.c.bf16 %v2240_v25, %v2240_v25 }
 0x6ef   : > { %1364 = vadd.xlane.f32.xlu1 %v1363_v26 }
 0x6f0   : > { %2021 = vmatmul.mubr.msk.bf16.vlgmr.msra.gmra.mxu0 %vm975_vm6, %v1367_v27 }
 0x6f1   : > { %2036 = vmatprep.mubr.msk.bf16.mxu0 %vm2509_vm4, %v2508_v9  ;;  %2033 = vmatpush3.bf16.msra.mxu0 %v2225_v17 }
 0x6f2   : > { %2034 = vmatprep.subr.bf16.mxu0 %v2508_v9 }
 0x6f5   : > { %2035 = vmatpush3.bf16.msra.mxu0 %v2226_v18 }
 0x6f6   : > { %v984_v28 = vpop.xlane.xlu0 %983 }
 0x6f7   : > { %2241 = vrcp.f32 %v984_v28 }
 0x704   : > { %v2242_v29 = vpop.eup %2241 }
 0x72e   : > { %v1032_v0 = vpop.f32.mrf.mxu0 }
 0x72f   : > { %v1038_v30 = vmul.f32 %v2242_v29, %v1032_v0 }
 0x730   : > { %v1986_v31 = vpop.f32.mrf.mxu0 }
 0x731   : > { %v1039_v1 = vpack.c.bf16 %v1038_v30, %v1038_v30  ;;  %v1906_v31 = vld [vmem:[%s3095_s10] ss:$0 sm:$0xff]  ;;  %s2517_s10 = smov [#allocation13]  }
 0x732   : > { %v1035_v32 = vpop.f32.mrf.mxu0  ;;  %s2365_s16 = sshll.u32 %s2517_s10, 4  ;;  %s2366_s16 = int_to_ptr.vmem [resolvable:$false] %s2365_s16 }
 0x733   : > { %1041 = vst.msk [vmem:[#allocation4] sm:$0xf] %vm1040_vm7, %v1039_v1  ;;  %s2367_s29 = scalar_lea.vmem %s2366_s16, 256  ;;  %p2368_p1 = scmp.lt.s32.totalorder %s2958_s12, %s2366_s16 }
 0x734   : > { %v1987_v33 = vpop.f32.mrf.mxu0  ;;  %p2369_p3 = scmp.lt.s32.totalorder %s2367_s29, %s2361_s28 }
 0x736   : > { %p2370_p7 = por %p2369_p3, %p2368_p1 }
 0x768   : > { %v1107_v34 = vpop.xlane.xlu1 %1106 }
 0x769   : > { %2243 = vrcp.f32 %v1107_v34 }
 0x770   : > { %v1236_v35 = vpop.xlane.xlu1 %1235 }
 0x771   : > { %2245 = vrcp.f32 %v1236_v35 }
 0x776   : > { %v2244_v36 = vpop.eup %2243 }
 0x778   : > { %v1365_v37 = vpop.xlane.xlu1 %1364 }
 0x779   : > { %2247 = vrcp.f32 %v1365_v37 }
 0x77e   : > { %v2246_v44 = vpop.eup %2245 }
 0x786   : > { %v2248_v53 = vpop.eup %2247 }
 0x7a0   : > { %v1156_v38 = vpop.f32.mrf.mxu0 }
 0x7a1   : > { %v1162_v39 = vmul.f32 %v2244_v36, %v1156_v38 }
 0x7a2   : > { %v1998_v40 = vpop.f32.mrf.mxu0 }
 0x7a3   : > { %v1924_v41 = vpack.c.bf16 %v1162_v39, %v1162_v39 }
 0x7a4   : > { %v1159_v42 = vpop.f32.mrf.mxu0 }
 0x7a5   : > { %1167 = vrot.lane.b32.xlu1 %v1924_v41, %s2513_s17  ;;  %s3094_s17 = sld [smem:[#allocation35_spill]] }
 0x7a6   : > { %v1999_v43 = vpop.f32.mrf.mxu0 }
 0x7a8   : > { %v1285_v45 = vpop.f32.mrf.mxu0 }
 0x7a9   : > { %v1291_v47 = vmul.f32 %v2246_v44, %v1285_v45 }
 0x7aa   : > { %v2010_v48 = vpop.f32.mrf.mxu0 }
 0x7ab   : > { %v1925_v50 = vpack.c.bf16 %v1291_v47, %v1291_v47  ;;  %v2227_v28 = vld [vmem:[%s3094_s17 + $0x18] sm:$0xff]   ;;  %v2228_v29 = vld [vmem:[%s3094_s17 + $0x10] sm:$0xff]   ;;  %v2229_v0 = vld [vmem:[%s3094_s17 + $0x8] sm:$0xff]  }
 0x7ac   : > { %v1288_v51 = vpop.f32.mrf.mxu0  ;;  %v2230_v30 = vld [vmem:[%s3094_s17] sm:$0xff]  }
 0x7ad   : > { %1296 = vrot.lane.b32.xlu0 %v1925_v50, %s2514_s19  ;;  %s3096_s19 = sld [smem:[#allocation36_spill]] }
 0x7ae   : > { %v2011_v52 = vpop.f32.mrf.mxu0 }
 0x7b0   : > { %v1414_v54 = vpop.f32.mrf.mxu0 }
 0x7b1   : > { %v1420_v55 = vmul.f32 %v2248_v53, %v1414_v54 }
 0x7b2   : > { %v2022_v56 = vpop.f32.mrf.mxu0 }
 0x7b3   : > { %v1926_v57 = vpack.c.bf16 %v1420_v55, %v1420_v55  ;;  %v2516_v55 = vmov -1.0  }
 0x7b4   : > { %v1417_v58 = vpop.f32.mrf.mxu0 }
 0x7b5   : > { %1425 = vrot.lane.b32.xlu1 %v1926_v57, %s2515_s21  ;;  %s3097_s21 = sld [smem:[#allocation20_spill]] }
 0x7b6   : > { %v2023_v59 = vpop.f32.mrf.mxu0 }
 0x7bb   : > { %p3099_p9 = scmp.ne.s32.totalorder %s3097_s21, 0 }
 0x7bd   : > { %p2363_p12 = pnand %p2362_p10, %p3099_p9 }
 0x7bf   : > { %p2364_p2 = pneg %p2363_p12 }
 0x7c1   : > { %p2371_p0 = pnand %p2370_p7, %p2364_p2 }
 0x817   : > { %v1168_v60 = vpop.permute.xlu1 %1167 }
 0x818   : > { %1171 = vst.msk [vmem:[#allocation4] sm:$0xf] %vm1170_vm8, %v1168_v60 }
 0x81f   : > { %v1297_v61 = vpop.permute.xlu0 %1296 }
 0x820   : > { %1300 = vst.msk [vmem:[#allocation4] sm:$0xf] %vm1299_vm9, %v1297_v61 }
 0x827   : > { %v1426_v62 = vpop.permute.xlu1 %1425 }
 0x828   : > { %1429 = vst.msk [vmem:[#allocation4] sm:$0xf] %vm1428_vm10, %v1426_v62  ;;  %v1910_v62 = vld [vmem:[%s3096_s19] ss:$0 sm:$0xff] }
 0x82f   : > { %v1430_v63 = vld [vmem:[#allocation4] sm:$0xf] }
 0x830   : > { %2029 = vmatmul.mubr.msk.bf16.vlgmr.msra.gmra.mxu1 %vm824_vm3, %v1430_v63 }
 0x831   : > { %2048 = vmatprep.mubr.msk.bf16.mxu1 %vm2509_vm4, %v2508_v9  ;;  %2041 = vmatpush3.bf16.msra.mxu1 %v2227_v28 }
 0x832   : > { %2042 = vmatprep.subr.bf16.mxu1 %v2508_v9 }
 0x835   : > { %2043 = vmatpush3.bf16.msra.mxu1 %v2228_v29 }
 0x836   : > { %2044 = vmatprep.subr.bf16.mxu1 %v2508_v9 }
 0x839   : > { %2045 = vmatpush3.bf16.msra.mxu1 %v2229_v0 }
 0x83a   : > { %2046 = vmatprep.subr.bf16.mxu1 %v2508_v9 }
 0x83d   : > { %2047 = vmatpush3.bf16.msra.mxu1 %v2230_v30 }
 0x8f0   : > { %v1491_v4 = vpop.f32.mrf.mxu1 }
 0x8f1   : > { %v1492_v5 = vadd.f32 %v1900_v3, %v1491_v4 }
 0x8f2   : > { %v2030_v6 = vpop.f32.mrf.mxu1 }
 0x8f3   : > { %v2913_v7 = vadd.f32 %v1492_v5, %v2804_v2 }
 0x8f4   : > { %v1494_v8 = vpop.f32.mrf.mxu1 }
 0x8f5   : > { %v1500_v10 = vsel %vm824_vm3, %v2913_v7, 0.0 }
 0x8f6   : > { %1501 = vadd.xlane.f32.xlu1 %v1500_v10  ;;  %v2031_v11 = vpop.f32.mrf.mxu1 }
 0x97f   : > { %v1502_v12 = vpop.xlane.xlu1 %1501 }
 0x980   : > { %v1503_v13 = vmul.f32 0.03125, %v1502_v12 }
 0x982   : > { %v1504_v14 = vsub.f32 %v2913_v7, %v1503_v13 }
 0x984   : > { %v1505_v15 = vmul.f32 %v1504_v14, %v1504_v14 }
 0x986   : > { %v1506_v16 = vsel %vm824_vm3, %v1505_v15, 0.0 }
 0x987   : > { %1507 = vadd.xlane.f32.xlu0 %v1506_v16 }
 0xa10   : > { %v1508_v2 = vpop.xlane.xlu0 %1507 }
 0xa11   : > { %v1509_v19 = vmul.f32 0.03125, %v1508_v2 }
 0xa13   : > { %v1510_v20 = vadd.f32 1e-05, %v1509_v19 }
 0xa15   : > { %2249 = vrsqrt.f32 %v1510_v20 }
 0xa22   : > { %v2250_v21 = vpop.eup %2249 }
 0xa23   : > { %v1512_v23 = vmul.f32 %v2250_v21, %v1504_v14 }
 0xa25   : > { %v1519_v25 = vmul.f32 %v1904_v22, %v1512_v23 }
 0xa27   : > { %v1526_v26 = vadd.f32 %v1905_v24, %v1519_v25 }
 0xa29   : > { %v1527_v27 = vpack.c.bf16 %v1526_v26, %v1526_v26 }
 0xa2b   : > { %2037 = vmatmul.mubr.msk.bf16.vlgmr.msra.gmra.mxu0 %vm824_vm3, %v1527_v27 }
 0xaeb   : > { %v1588_v1 = vpop.f32.mrf.mxu0 }
 0xaec   : > { %v1589_v32 = vadd.f32 %v1906_v31, %v1588_v1 }
 0xaed   : > { %v2038_v33 = vpop.f32.mrf.mxu0 }
 0xaee   : > { %v1595_v34 = vmul.f32 0.70710677, %v1589_v32  ;;  %v1594_v58 = vmul.f32 0.5, %v1589_v32 }
 0xaef   : > { %v1591_v35 = vpop.f32.mrf.mxu0 }
 0xaf0   : > { %v1598_v36 = vand.u32 2147483647, %v1595_v34  ;;  %vm1596_vm11 = vcmp.ge.f32.partialorder %v1595_v34, 0.0 }
 0xaf1   : > { %v2039_v37 = vpop.f32.mrf.mxu0  ;;  %v1597_v56 = vsel %vm1596_vm11, 1.0, %v2516_v55 }
 0xaf2   : > { %v1599_v38 = vmul.f32 0.3275911, %v1598_v36  ;;  %v1611_v9 = vsub.f32 0.0, %v1598_v36 }
 0xaf4   : > { %v1600_v39 = vadd.f32 1.0, %v1599_v38  ;;  %v1612_v40 = vmul.f32 %v1611_v9, %v1598_v36 }
 0xaf6   : > { %2251 = vrcp.f32 %v1600_v39  ;;  %v1613_v43 = vmul.f32 1.442695, %v1612_v40 }
 0xaf8   : > { %2253 = vpow2.f32 %v1613_v43 }
 0xb03   : > { %v2252_v41 = vpop.eup %2251 }
 0xb04   : > { %v1602_v42 = vmul.f32 1.0614054, %v2252_v41 }
 0xb05   : > { %v2254_v52 = vpop.eup %2253 }
 0xb06   : > { %v1603_v44 = vadd.f32 -1.4531521, %v1602_v42 }
 0xb08   : > { %v1604_v45 = vmul.f32 %v2252_v41, %v1603_v44 }
 0xb0a   : > { %v1605_v46 = vadd.f32 1.4214138, %v1604_v45 }
 0xb0c   : > { %v1606_v47 = vmul.f32 %v2252_v41, %v1605_v46 }
 0xb0e   : > { %v1607_v48 = vadd.f32 -0.28449672, %v1606_v47 }
 0xb10   : > { %v1608_v49 = vmul.f32 %v2252_v41, %v1607_v48 }
 0xb12   : > { %v1609_v50 = vadd.f32 0.2548296, %v1608_v49 }
 0xb14   : > { %v1610_v51 = vmul.f32 %v2252_v41, %v1609_v50 }
 0xb16   : > { %v1615_v53 = vmul.f32 %v2254_v52, %v1610_v51 }
 0xb18   : > { %v1616_v54 = vsub.f32 1.0, %v1615_v53 }
 0xb1a   : > { %v1617_v57 = vmul.f32 %v1616_v54, %v1597_v56 }
 0xb1c   : > { %v1618_v59 = vadd.f32 1.0, %v1617_v57 }
 0xb1e   : > { %v1619_v60 = vmul.f32 %v1618_v59, %v1594_v58 }
 0xb20   : > { %v1620_v61 = vpack.c.bf16 %v1619_v60, %v1619_v60 }
 0xb22   : > { %2049 = vmatmul.mubr.msk.bf16.vlgmr.msra.gmra.mxu1 %vm1660_vm12, %v1620_v61 }
 0xbe2   : > { %v1698_v63 = vpop.f32.mrf.mxu1 }
 0xbe3   : > { %v1699_v3 = vadd.f32 %v1910_v62, %v1698_v63 }
 0xbe4   : > { %v2050_v4 = vpop.f32.mrf.mxu1 }
 0xbe5   : > { %v1704_v5 = vadd.f32 %v1699_v3, %v2913_v7 }
 0xbe6   : > { %v1701_v6 = vpop.f32.mrf.mxu1 }
 0xbe7   : > { %1705 = vst.msk [vmem:[%s620_s18] sm:$0xff] %vm824_vm3, %v1704_v5 }
 0xbe8   : > { %v2051_v8 = vpop.f32.mrf.mxu1 }
 0xbe9   : > { %2374 = shalt.err (!%p2371_p0)
}
 0xbea   : > { %s2375_s24 = scalar_lea.hbm %s2956_s11, 128  ;;  %s2379_s20 = scalar_lea.hbm %s3098_s13, 512 }
 0xbeb   : > { %p2376_p4 = scmp.ne.s32.totalorder %s2956_s11, %s2375_s24  ;;  %p2380_p11 = scmp.lt.s32.totalorder %s2956_s11, %s3098_s13 }
 0xbec   : > { %p2381_p5 = scmp.lt.s32.totalorder %s2379_s20, %s2375_s24 }
 0xbed   : > { %p2377_p6 = pnand %p2376_p4, %p3099_p9 }
 0xbee   : > { %p2382_p8 = por %p2381_p5, %p2380_p11 }
 0xbef   : > { %p2378_p13 = pneg %p2377_p6 }
 0xbf1   : > { %p2383_p10 = pnand %p2382_p8, %p2378_p13 }
 0xbf3   : > { %2386 = shalt.err (!%p2383_p10)
}
 0xbf4   : > { %2066 = dma.vmem_to_hbm [thread:$0]  (%p3099_p9), %s2958_s12, 128, %s2956_s11, %s1707_s27  }
 0xbf5 PF: > { %s3100_s6 = sld [smem:[#allocation18_spill]]  ;;  %p2093_p12 = scmp.ge.s32.totalorder %s2489_s0, 2 }
 0xbf6   : > { %s3101_s5 = sld [smem:[#allocation21_spill]] }
 0xbfb   : > { %s1734_s15 = sand.u32 1, %s3100_s6  }
 0xbfc   : > { %p3102_p2 = scmp.ne.s32.totalorder %s3101_s5, 0  ;;  %s1735_s28 = scalar_lea.sflag [#allocation7], %s1734_s15 }
 0xbfe   : > { %p2083_p1 = pnand %p2093_p12, %p3102_p2 }
 0xc00   : > { %p2084_p3 = pneg %p2083_p1 }
 0xc02   : > { %2444 = dma.done.wait (%p2084_p3), %s1735_s28, 128  }
 0xc03   : > { %2446 = vsyncadd (%p2084_p3), %s1735_s28, 4294967168  ;;  %s34_s0 = sadd.s32 1, %s2489_s0   ;;  %s3103_s27 = sld [smem:[#allocation19_spill]] }
 0xc04   : > { %p31_p7 = scmp.ge.s32.totalorder %s34_s0, 6   ;;  %s3104_s29 = sld [smem:[#allocation22_spill]] }
 0xc05   : > { %s3105_s12 = sld [smem:[#allocation23_spill]]  ;;  %s3106_s21 = smov %s2453_s22 }
 0xc06   : > { %s3107_s22 = smov %s2457_s23  ;;  %s3108_s23 = smov %s2750_s8 }
 0xc07   : > { %s3109_s24 = smov %s2465_s25  ;;  %s3110_s25 = smov %s2469_s26 }
 0xc08   : > { %s3111_s26 = smov %s2745_s14  ;;  %s3112_s28 = smov %s2485_s30 }
 0xc09   :  { %33 = sbr.rel (!%p31_p7) target bundleno = 26 (0x1a), region = 160 }
 0xc0b   : > { %s3113_s30 = smov %s3105_s12 }
 0xc0e   :  { %1740 = vsyncpa [#allocation6], 1 }
 0xc0f   :  { %1742 = vsyncpa [#allocation6 + $0x1], 1 }
 0xc10   :  { %1743 = vsyncpa [#allocation9], 1 }
 0xc11   :  { %1744 = vsyncpa [#allocation12], 1 }
 0xc12   :  { %1745 = vsyncpa [#allocation7], 1 }
 0xc13   :  { %1747 = vsyncpa [#allocation7 + $0x1], 1 }

// kernel: tpu_custom_call.1
= control target key start
LH: loop header
LB: loop body
LE: loop exit
PB: predicated region body
PF: predicated region fallthrough
CT: control target
= control target key end

     0   :  { %s3022_s0 = inlined_call_operand.vmem [shape: f32[2,16,32], index: 0, kind: input, shape index: {}]   ;;  %s3023_s1 = inlined_call_operand.hbm [shape: f32[2,16,32], index: 1, kind: input, shape index: {}]   ;;  %s3024_s2 = inlined_call_operand.vmem [shape: f32[1,32], index: 2, kind: input, shape index: {}]   ;;  %s3025_s3 = inlined_call_operand.vmem [shape: f32[1,32], index: 3, kind: input, shape index: {}]   ;;  %s3026_s4 = inlined_call_operand.vmem [shape: bf16[32,32], index: 4, kind: input, shape index: {}]   ;;  %s3027_s5 = inlined_call_operand.vmem [shape: f32[1,32], index: 5, kind: input, shape index: {}]   ;;  %s3028_s6 = inlined_call_operand.hbm [shape: bf16[32,64], index: 6, kind: input, shape index: {}]   ;;  %s3029_s7 = inlined_call_operand.vmem [shape: f32[1,64], index: 7, kind: input, shape index: {}]   ;;  %s3030_s8 = inlined_call_operand.hbm [shape: bf16[32,32], index: 8, kind: input, shape index: {}]   ;;  %s3031_s9 = inlined_call_operand.vmem [shape: f32[1,32], index: 9, kind: input, shape index: {}]   ;;  %s3032_s10 = inlined_call_operand.vmem [shape: f32[1,32], index: 10, kind: input, shape index: {}]   ;;  %s3033_s11 = inlined_call_operand.vmem [shape: f32[1,32], index: 11, kind: input, shape index: {}]   ;;  %s3034_s12 = inlined_call_operand.hbm [shape: bf16[32,64], index: 12, kind: input, shape index: {}]   ;;  %s3035_s13 = inlined_call_operand.vmem [shape: f32[1,64], index: 13, kind: input, shape index: {}]   ;;  %s3036_s14 = inlined_call_operand.vmem [shape: bf16[64,32], index: 14, kind: input, shape index: {}]   ;;  %s3037_s15 = inlined_call_operand.vmem [shape: f32[1,32], index: 15, kind: input, shape index: {}]   ;;  %s3038_s16 = inlined_call_operand.hbm [shape: f32[2,16,32], index: 16, kind: output, shape index: {}]  }
   0x1   :  { %3053 = sst [smem:[#allocation24_spill]] %s3022_s0 }
   0x2   :  { %3054 = sst [smem:[#allocation25_spill]] %s3026_s4 }
   0x3   :  { %3055 = sst [smem:[#allocation26_spill]] %s3027_s5 }
   0x4   :  { %3056 = sst [smem:[#allocation27_spill]] %s3028_s6 }
   0x5   :  { %3057 = sst [smem:[#allocation28_spill]] %s3029_s7 }
   0x6   :  { %3058 = sst [smem:[#allocation29_spill]] %s3030_s8 }
   0x7   :  { %3059 = sst [smem:[#allocation30_spill]] %s3031_s9 }
   0x8   :  { %3060 = sst [smem:[#allocation31_spill]] %s3032_s10 }
   0x9   :  { %3061 = sst [smem:[#allocation32_spill]] %s3033_s11 }
   0xa   :  { %3062 = sst [smem:[#allocation33_spill]] %s3034_s12 }
   0xb   :  { %3063 = sst [smem:[#allocation34_spill]] %s3035_s13 }
   0xc   :  { %3064 = sst [smem:[#allocation35_spill]] %s3036_s14 }
   0xd   :  { %3065 = sst [smem:[#allocation36_spill]] %s3037_s15 }
   0xe   :  { %3066 = sst [smem:[#allocation37_spill]] %s3038_s16 }
   0xf   :  { %21 = vsyncpa [#allocation6], 0 }
  0x10   :  { %23 = vsyncpa [#allocation6 + $0x1], 0 }
  0x11   :  { %24 = vsyncpa [#allocation9], 0 }
  0x12   :  { %25 = vsyncpa [#allocation12], 0 }
  0x13   :  { %26 = vsyncpa [#allocation7], 0 }
  0x14   :  { %28 = vsyncpa [#allocation7 + $0x1], 0  ;;  %s2603_s21 = smov 0   ;;  %s2605_s22 = smov 0  }
  0x15   :  { %s2607_s23 = smov 0   ;;  %s2609_s24 = smov 0  }
  0x16   :  { %s2611_s25 = smov 0   ;;  %s2613_s26 = smov 0  }
  0x17   :  { %s2615_s27 = smov 0   ;;  %s2617_s28 = smov 0  }
  0x18   :  { %s2619_s29 = smov 0   ;;  %s2621_s30 = smov 0  }
  0x19   :  { %s2623_s0 = smov 0  }
  0x1a LB: > { %3067 = sst [smem:[#allocation18_spill]] %s2449_s21  ;;  %s1852_s17 = sadd.s32 4294967295, %s2489_s0   ;;  %s2489_s0 = sphi %s2623_s0, %s34_s0   ;;  %s2485_s30 = sphi %s2621_s30, %s3113_s30   ;;  %s2481_s29 = sphi %s2619_s29, %s3104_s29   ;;  %s2477_s28 = sphi %s2617_s28, %s3112_s28   ;;  %s2473_s27 = sphi %s2615_s27, %s3103_s27   ;;  %s2469_s26 = sphi %s2613_s26, %s3111_s26   ;;  %s2465_s25 = sphi %s2611_s25, %s3110_s25   ;;  %s2461_s24 = sphi %s2609_s24, %s3109_s24   ;;  %s2457_s23 = sphi %s2607_s23, %s3108_s23   ;;  %s2453_s22 = sphi %s2605_s22, %s3107_s22   ;;  %s2449_s21 = sphi %s2603_s21, %s3106_s21  }
  0x1b   : > { %3068 = sst [smem:[#allocation19_spill]] %s2481_s29  ;;  %s1853_s18 = sadd.s32 4294967294, %s2489_s0  }
  0x1c   : > { %p94_p0 = scmp.ne.s32.totalorder %s2465_s25, %s2461_s24  ;;  %p2659_p1 = scmp.eq.s32.totalorder %s1852_s17, 0 }
  0x1d   : > { %p413_p2 = scmp.ne.s32.totalorder %s2457_s23, %s2453_s22  ;;  %p414_p4 = scmp.eq.s32.totalorder %s1852_s17, 3 }
  0x1e   : > { %s3069_s19 = scalar_select %p2659_p1, 1, 0 }
  0x1f   : > { %p2668_p3 = por %p2659_p1, %p94_p0  ;;  %p419_p5 = scmp.ne.s32.totalorder %s2453_s22, %s2449_s21 }
  0x20   : > { %p420_p6 = scmp.eq.s32.totalorder %s1853_s18, 3  ;;  %p2674_p7 = por %p414_p4, %p413_p2 }
  0x21   : > { %s3070_s16 = scalar_select %p2668_p3, 1, 0 }
  0x22   : > { %s3071_s15 = scalar_select %p2674_p7, 1, 0 }
  0x23   : > { %p1854_p8 = scmp.ge.s32.totalorder %s2489_s0, 1  ;;  %p2679_p9 = por %p420_p6, %p419_p5 }
  0x24   : > { %3072 = sst [smem:[#allocation20_spill]] %s3071_s15  ;;  %p427_p10 = scmp.lt.s32.totalorder %s2489_s0, 5 }
  0x25   : > { %s3073_s24 = scalar_select %p2679_p9, 1, 0 }
  0x26   : > { %p2684_p11 = pnand %p1854_p8, %p427_p10  ;;  %s2491_s13 = smov [#allocation8]  }
  0x27   : > { %3074 = sst [smem:[#allocation21_spill]] %s3073_s24  ;;  %s451_s14 = sshll.u32 %s2491_s13, 4  ;;  %s452_s14 = int_to_ptr.vmem [resolvable:$true] %s451_s14 }
  0x28   : > { %p2068_p12 = pneg %p2684_p11  ;;  %s2492_s18 = smov [#allocation10]  }
  0x29   : > { %s467_s24 = sshll.u32 %s2492_s18, 4  ;;  %s2493_s21 = smov [#allocation11]   ;;  %s468_s24 = int_to_ptr.vmem [resolvable:$true] %s467_s24 }
  0x2a   : > { %p2692_p13 = pnand %p2068_p12, %p2659_p1  ;;  %s489_s15 = sshll.u32 %s2493_s21, 4  ;;  %s490_s15 = int_to_ptr.vmem [resolvable:$true] %s489_s15 }
  0x2b   : > { %s2266_s11 = scalar_lea.vmem %s452_s14, 256  ;;  %p2274_p6 = scmp.lt.s32.totalorder %s452_s14, %s452_s14 }
  0x2c   : > { %p2257_p0 = pneg %p2692_p13  ;;  %p2267_p2 = scmp.ne.s32.totalorder %s452_s14, %s2266_s11 }
  0x2d   : > { %p2275_p8 = scmp.lt.s32.totalorder %s2266_s11, %s2266_s11 }
  0x2e   : > { %p2269_p4 = pnand %p2267_p2, %p2257_p0 }
  0x2f   : > { %p2276_p10 = por %p2275_p8, %p2274_p6 }
  0x30   : > { %p2270_p5 = pneg %p2269_p4 }
  0x32   : > { %p2277_p12 = pnand %p2276_p10, %p2270_p5 }
  0x34   : > { %2280 = shalt.err (!%p2277_p12)
}
  0x35   : > { %s2494_s13 = smov 64   ;;  %s2495_s18 = smov 4  }
  0x36   : > { %s3077_s6 = sld [smem:[#allocation27_spill]]  ;;  %s2292_s9 = scalar_lea.vmem %s468_s24, 256 }
  0x37   : > { %p2293_p9 = scmp.ne.s32.totalorder %s468_s24, %s2292_s9  ;;  %p2300_p7 = scmp.lt.s32.totalorder %s468_s24, %s468_s24 }
  0x38   : > { %p2301_p1 = scmp.lt.s32.totalorder %s2292_s9, %s2292_s9 }
  0x39   : > { %p2295_p2 = pnand %p2293_p9, %p2257_p0 }
  0x3a   : > { %p2302_p6 = por %p2301_p1, %p2300_p7 }
  0x3b   : > { %p2296_p4 = pneg %p2295_p2 }
  0x3c   : > { %2071 = dma.hbm_to_vmem [thread:$0]  (!%p2692_p13), %s3077_s6, 256, %s452_s14, [#allocation9], %s2494_s13, %s2494_s13, %s2495_s18  }
  0x3d   : > { %p2303_p5 = pnand %p2302_p6, %p2296_p4 }
  0x3f   : > { %2306 = shalt.err (!%p2303_p5)
}
  0x40   : > { %s3078_s8 = sld [smem:[#allocation29_spill]]  ;;  %s2318_s10 = scalar_lea.vmem %s490_s15, 256 }
  0x41   : > { %p2319_p8 = scmp.ne.s32.totalorder %s490_s15, %s2318_s10  ;;  %p2326_p12 = scmp.lt.s32.totalorder %s490_s15, %s490_s15 }
  0x42   : > { %p2327_p2 = scmp.lt.s32.totalorder %s2318_s10, %s2318_s10 }
  0x43   : > { %p2321_p10 = pnand %p2319_p8, %p2257_p0 }
  0x44   : > { %p2328_p3 = por %p2327_p2, %p2326_p12 }
  0x45   : > { %p2322_p9 = pneg %p2321_p10 }
  0x46   : > { %2074 = dma.hbm_to_vmem [thread:$0]  (!%p2692_p13), %s3078_s8, 256, %s468_s24, [#allocation9], %s2494_s13, %s2494_s13, %s2495_s18  }
  0x47   : > { %p2329_p1 = pnand %p2328_p3, %p2322_p9 }
  0x49   : > { %2332 = shalt.err (!%p2329_p1)
}
  0x4a   : > { %s3079_s12 = sld [smem:[#allocation33_spill]]  ;;  %s43_s5 = sadd.s32 1, %s2481_s29 }
  0x4b   : > { %p44_p3 = scmp.ge.s32.totalorder %s43_s5, 2  ;;  %s46_s24 = sadd.s32 1, %s2485_s30 }
  0x4c   : > { %s81_s21 = sadd.s32 1, %s2469_s26  ;;  %p88_p7 = scmp.ne.s32.totalorder %s2469_s26, %s2465_s25 }
  0x4d   : > { %s3115_s5 = smov (%p44_p3, %s43_s5), 0  ;;  %s3117_s24 = smov (!%p44_p3, %s46_s24), %s2485_s30 }
  0x4e   : > { %3080 = sst [smem:[#allocation22_spill]] %s3115_s5  ;;  %p89_p0 = scmp.eq.s32.totalorder %s2489_s0, 0 }
  0x4f   : > { %s399_s17 = ssub.s32 %s2481_s29, %s3115_s5  ;;  %p48_p4 = scmp.ge.s32.totalorder %s3117_s24, 2 }
  0x50   : > { %2077 = dma.hbm_to_vmem [thread:$0]  (!%p2692_p13), %s3079_s12, 256, %s490_s15, [#allocation12], %s2494_s13, %s2494_s13, %s2495_s18  }
  0x51   : > { %p2089_p6 = scmp.lt.s32.totalorder %s2489_s0, 4  ;;  %p2734_p13 = por %p89_p0, %p88_p7 }
  0x52   : > { %s523_s13 = sand.u32 1, %s2469_s26   ;;  %s3119_s24 = smov (%p48_p4, %s3117_s24), 0 }
  0x53   : > { %3082 = sst [smem:[#allocation23_spill]] %s3119_s24  ;;  %s1859_s18 = sshll.u32 %s523_s13, 4 }
  0x54   : > { %s78_s11 = ssub.s32 %s2485_s30, %s3119_s24  ;;  %s1921_s9 = sshll.u32 %s2485_s30, 8 }
  0x55   : > { %p79_p5 = scmp.eq.s32.totalorder %s78_s11, 0  ;;  %s400_s10 = sor.u32 %s399_s17, %s78_s11 }
  0x56   : > { %p401_p8 = scmp.eq.s32.totalorder %s400_s10, 0  ;;  %s3083_s6 = sadd.s32 1, %s2457_s23 }
  0x57   : > { %s2745_s14 = scalar_select %p79_p5, %s2469_s26, %s81_s21  }
  0x58   : > { %s2750_s8 = scalar_select %p401_p8, %s2457_s23, %s3083_s6  }
  0x59   : > { %s533_s29 = scalar_lea.hbm %s3023_s1, %s1921_s9  ;;  %s527_s4 = scalar_lea.vmem [#allocation5], %s1859_s18 }
  0x5a   : > { %s534_s7 = sshll.u32 %s527_s4, 4  ;;  %p2759_p10 = pnand %p2089_p6, %p2734_p13  ;;  %s535_s7 = int_to_ptr.vmem [resolvable:$true] %s534_s7 }
  0x5b   : > { %s524_s17 = scalar_lea.sflag [#allocation6], %s523_s13  ;;  %s2346_s21 = scalar_lea.vmem %s535_s7, 256 }
  0x5c   : > { %p2335_p9 = pneg %p2759_p10  ;;  %p2347_p12 = scmp.ne.s32.totalorder %s535_s7, %s2346_s21 }
  0x5d   : > { %s2496_s6 = smov [#allocation5]  }
  0x5e   : > { %p2349_p2 = pnand %p2347_p12, %p2335_p9  ;;  %s2351_s12 = sshll.u32 %s2496_s6, 4  ;;  %s2352_s12 = int_to_ptr.vmem [resolvable:$false] %s2351_s12 }
  0x5f   : > { %s2353_s5 = scalar_lea.vmem %s2352_s12, 512  ;;  %p2354_p3 = scmp.lt.s32.totalorder %s535_s7, %s2352_s12 }
  0x60   : > { %p2350_p1 = pneg %p2349_p2  ;;  %p2355_p7 = scmp.lt.s32.totalorder %s2353_s5, %s2346_s21 }
  0x62   : > { %p2356_p0 = por %p2355_p7, %p2354_p3 }
  0x64   : > { %p2357_p4 = pnand %p2356_p0, %p2350_p1 }
  0x66   : > { %2360 = shalt.err (!%p2357_p4)
}
  0x67   : > { %s2497_s4 = smov 128   ;;  %s2498_s15 = smov 8  }
  0x68   : > { %2081 = dma.hbm_to_vmem [thread:$0]  (!%p2759_p10), %s533_s29, 256, %s535_s7, %s524_s17, %s2497_s4, %s2497_s4, %s2498_s15  }
  0x69   : > { %546 = sbr.rel (%p2684_p11) target bundleno = 3061 (0xbf5), region = 84  ;;  %s548_s13 = sand.u32 (!%p2684_p11), 1, %s2465_s25  }
  0x6a   : > { %s1863_s18 = sshll.u32 (!%p2684_p11), %s548_s13, 4  ;;  %s549_s11 = scalar_lea.sflag (!%p2684_p11), [#allocation6], %s548_s13 }
  0x6b   : > { %s552_s10 = scalar_lea.vmem (!%p2684_p11), [#allocation5], %s1863_s18  ;;  %p3085_p6 = scmp.ne.s32.totalorder (!%p2684_p11), %s3070_s16, 0 }
  0x6e   : > { %2432 = dma.done.wait (%p3085_p6), %s549_s11, 256  }
  0x6f   : > { %2434 = vsyncadd (%p3085_p6), %s549_s11, 4294967040  ;;  %p3086_p13 = scmp.ne.s32.totalorder %s3069_s19, 0 }
  0x71   : > { %2436 = dma.done.wait (%p3086_p13), [#allocation9], 512  }
  0x72   : > { %2438 = vsyncadd (%p3086_p13), [#allocation9], 4294966784 }
  0x73   : > { %2440 = dma.done.wait (%p3086_p13), [#allocation12], 256  }
  0x74   : > { %2442 = vsyncadd (%p3086_p13), [#allocation12], 4294967040  ;;  %p621_p11 = scmp.lt.s32.totalorder %s2477_s28, 1  ;;  %p623_p5 = scmp.lt.s32.totalorder %s2473_s27, 1  ;;  %v2797_v0 = vld [vmem:[%s3024_s2] sm:$0x1] }
  0x75   : > { %s618_s7 = sand.u32 1, %s2453_s22   ;;  %s3087_s6 = sld [smem:[#allocation24_spill]]  ;;  %v2802_v1 = vld [vmem:[%s3025_s3] sm:$0x1] }
  0x76   : > { %s622_s16 = scalar_select %p621_p11, %s2477_s28, 1 }
  0x77   : > { %s624_s29 = scalar_select %p623_p5, %s2473_s27, 1 }
  0x78   : > { %s1868_s20 = sshll.u32 %s622_s16, 1  ;;  %s2789_s24 = sshll.u32 %s618_s7, 3 }
  0x79   : > { %s626_s9 = sadd.s32 %s1868_s20, %s624_s29  ;;  %s620_s18 = scalar_lea.vmem [#allocation13], %s2789_s24 }
  0x7a   : > { %s1869_s17 = sshll.u32 %s626_s9, 3  ;;  %p1870_p8 = scmp.ne.s32.totalorder %s2473_s27, 0 }
  0x7b   : > { %s628_s12 = scalar_lea.vmem %s3087_s6, %s1869_s17  ;;  %s3088_s16 = sld [smem:[#allocation28_spill]] (!%p1870_p8) }
  0x7c   : > { %v2804_v2 = vld [vmem:[%s628_s12] sm:$0xff]  ;;  %636 = sbr.rel (%p1870_p8) target bundleno = 785 (0x311), region = 104  ;;  %s2501_s29 = smov (!%p1870_p8), 120  }
  0x7d   : > { %s2502_s20 = smov (!%p1870_p8), 96   ;;  %s2503_s9 = smov (!%p1870_p8), 88  }
  0x7e   : > { %s2504_s17 = smov (!%p1870_p8), 112   ;;  %s2505_s19 = smov (!%p1870_p8), 80  }
  0x7f   : > { %s2506_s21 = smov (!%p1870_p8), 104   ;;  %s2507_s6 = smov (!%p1870_p8), 72  }
  0x81   : > { %v637_v3 = vld [vmem:[%s552_s10] sm:$0xff]  ;;  %vm639_vm0 = vcmask 261120   ;;  %v638_v4 = vld [vmem:[%s552_s10 + $0x8] sm:$0xff]  ;;  %v2499_v18 = vmov 0.0   ;;  %vm2500_vm1 = vmmov 0   ;;  %v668_v26 = vlaneseq }
  0x82   : > { %v640_v5 = vsel %vm639_vm0, %v637_v3, 0.0  ;;  %v643_v6 = vsel %vm639_vm0, %v638_v4, 0.0  ;;  %v2207_v17 = vld [vmem:[#allocation8 + $0x8] sm:$0xff]   ;;  %1960 = vmatprep.subr.bf16.mxu0 %v2499_v18  ;;  %1964 = vmatprep.mubr.msk.bf16.mxu0 %vm2500_vm1, %v2499_v18  ;;  %v2208_v19 = vld [vmem:[#allocation8] sm:$0xff]   ;;  %v1871_v40 = vld [vmem:[%s3088_s16] ss:$0 sm:$0xff] }
  0x83   : > { %641 = vadd.xlane.f32.xlu0 %v640_v5  ;;  %1961 = vmatpush3.bf16.msra.mxu0 %v2207_v17  ;;  %v669_v27 = vshrl.u32 %v668_v26, 7  ;;  %vm759_vm2 = vcmask 60416  }
  0x84   : > { %1962 = vmatprep.subr.bf16.mxu0 %v2499_v18 }
  0x85   : > { %v670_v28 = vsub.s32 0, %v669_v27 }
  0x87   : > { %644 = vadd.xlane.f32.xlu0 %v643_v6  ;;  %1963 = vmatpush3.bf16.msra.mxu0 %v2208_v19  ;;  %v671_v31 = vrot.slane %v2797_v0, %v670_v28  ;;  %v679_v35 = vrot.slane %v2802_v1, %v670_v28 }
 0x10c   : > { %v642_v7 = vpop.xlane.xlu0 %641 }
 0x10d   : > { %v647_v8 = vmul.f32 0.03125, %v642_v7 }
 0x10f   : > { %v649_v9 = vsub.f32 %v637_v3, %v647_v8 }
 0x110   : > { %v645_v10 = vpop.xlane.xlu0 %644 }
 0x111   : > { %v648_v11 = vmul.f32 0.03125, %v645_v10  ;;  %v651_v12 = vmul.f32 %v649_v9, %v649_v9 }
 0x113   : > { %v650_v13 = vsub.f32 %v638_v4, %v648_v11  ;;  %v653_v14 = vsel %vm639_vm0, %v651_v12, 0.0 }
 0x114   : > { %654 = vadd.xlane.f32.xlu1 %v653_v14 }
 0x115   : > { %v652_v15 = vmul.f32 %v650_v13, %v650_v13 }
 0x117   : > { %v656_v16 = vsel %vm639_vm0, %v652_v15, 0.0 }
 0x118   : > { %657 = vadd.xlane.f32.xlu1 %v656_v16 }
 0x19d   : > { %v655_v20 = vpop.xlane.xlu1 %654 }
 0x19e   : > { %v659_v21 = vmul.f32 0.03125, %v655_v20 }
 0x1a0   : > { %v661_v22 = vadd.f32 1e-05, %v659_v21 }
 0x1a1   : > { %v658_v23 = vpop.xlane.xlu1 %657 }
 0x1a2   : > { %2209 = vrsqrt.f32 %v661_v22  ;;  %v660_v24 = vmul.f32 0.03125, %v658_v23 }
 0x1a4   : > { %v662_v25 = vadd.f32 1e-05, %v660_v24 }
 0x1a6   : > { %2211 = vrsqrt.f32 %v662_v25 }
 0x1af   : > { %v2210_v29 = vpop.eup %2209 }
 0x1b0   : > { %v665_v30 = vmul.f32 %v2210_v29, %v649_v9 }
 0x1b2   : > { %v673_v34 = vmul.f32 %v671_v31, %v665_v30 }
 0x1b3   : > { %v2212_v32 = vpop.eup %2211 }
 0x1b4   : > { %v666_v33 = vmul.f32 %v2212_v32, %v650_v13  ;;  %v681_v37 = vadd.f32 %v679_v35, %v673_v34 }
 0x1b6   : > { %v674_v36 = vmul.f32 %v671_v31, %v666_v33 }
 0x1b8   : > { %v682_v38 = vadd.f32 %v679_v35, %v674_v36 }
 0x1ba   : > { %v683_v39 = vpack.c.bf16 %v682_v38, %v681_v37 }
 0x1bc   : > { %1965 = vmatmul.mubr.msk.bf16.vlgmr.msra.gmra.mxu0 %vm639_vm0, %v683_v39 }
 0x27c   : > { %v744_v41 = vpop.f32.mrf.mxu0 }
 0x27d   : > { %v745_v42 = vadd.f32 %v1871_v40, %v744_v41 }
 0x27e   : > { %v1966_v43 = vpop.f32.mrf.mxu0 }
 0x27f   : > { %v1922_v44 = vpack.c.bf16 %v745_v42, %v745_v42 }
 0x280   : > { %v747_v45 = vpop.f32.mrf.mxu0 }
 0x281   : > { %760 = vst.msk [vmem:[#allocation2] sm:$0xf] %vm759_vm2, %v1922_v44  ;;  %v748_v46 = vadd.f32 %v1871_v40, %v747_v45  ;;  %770 = vrot.lane.b32.xlu1 %v1922_v44, %s2501_s29  ;;  %762 = vrot.lane.b32.xlu0 %v1922_v44, %s2502_s20 }
 0x282   : > { %v1967_v47 = vpop.f32.mrf.mxu0 }
 0x283   : > { %v1923_v48 = vpack.c.bf16 %v748_v46, %v748_v46 }
 0x285   : > { %761 = vst.msk [vmem:[#allocation2 + $0x4] sm:$0xf] %vm759_vm2, %v1923_v48  ;;  %779 = vrot.lane.b32.xlu0 %v1922_v44, %s2503_s9  ;;  %764 = vrot.lane.b32.xlu1 %v1923_v48, %s2502_s20 }
 0x289   : > { %788 = vrot.lane.b32.xlu0 %v1922_v44, %s2504_s17  ;;  %772 = vrot.lane.b32.xlu1 %v1923_v48, %s2501_s29 }
 0x28d   : > { %797 = vrot.lane.b32.xlu0 %v1922_v44, %s2505_s19  ;;  %781 = vrot.lane.b32.xlu1 %v1923_v48, %s2503_s9 }
 0x291   : > { %806 = vrot.lane.b32.xlu0 %v1922_v44, %s2506_s21  ;;  %790 = vrot.lane.b32.xlu1 %v1923_v48, %s2504_s17 }
 0x295   : > { %815 = vrot.lane.b32.xlu0 %v1922_v44, %s2507_s6  ;;  %799 = vrot.lane.b32.xlu1 %v1923_v48, %s2505_s19 }
 0x299   : > { %808 = vrot.lane.b32.xlu1 %v1923_v48, %s2506_s21 }
 0x29d   : > { %817 = vrot.lane.b32.xlu1 %v1923_v48, %s2507_s6 }
 0x2f3   : > { %v771_v49 = vpop.permute.xlu1 %770  ;;  %v763_v50 = vpop.permute.xlu0 %762 }
 0x2f4   : > { %777 = vst.msk [vmem:[#allocation2 + $0x8] sm:$0xf] %vm759_vm2, %v771_v49  ;;  %768 = vst.msk [vmem:[#allocation3] sm:$0xf] %vm759_vm2, %v763_v50 }
 0x2f7   : > { %v780_v51 = vpop.permute.xlu0 %779  ;;  %v765_v52 = vpop.permute.xlu1 %764 }
 0x2f8   : > { %786 = vst.msk [vmem:[#allocation3 + $0x8] sm:$0xf] %vm759_vm2, %v780_v51  ;;  %769 = vst.msk [vmem:[#allocation3 + $0x4] sm:$0xf] %vm759_vm2, %v765_v52 }
 0x2fb   : > { %v789_v53 = vpop.permute.xlu0 %788  ;;  %v773_v54 = vpop.permute.xlu1 %772 }
 0x2fc   : > { %795 = vst.msk [vmem:[#allocation2 + $0x10] sm:$0xf] %vm759_vm2, %v789_v53  ;;  %778 = vst.msk [vmem:[#allocation2 + $0xc] sm:$0xf] %vm759_vm2, %v773_v54 }
 0x2ff   : > { %v798_v55 = vpop.permute.xlu0 %797  ;;  %v782_v56 = vpop.permute.xlu1 %781 }
 0x300   : > { %804 = vst.msk [vmem:[#allocation3 + $0x10] sm:$0xf] %vm759_vm2, %v798_v55  ;;  %787 = vst.msk [vmem:[#allocation3 + $0xc] sm:$0xf] %vm759_vm2, %v782_v56 }
 0x303   : > { %v807_v57 = vpop.permute.xlu0 %806  ;;  %v791_v58 = vpop.permute.xlu1 %790 }
 0x304   : > { %813 = vst.msk [vmem:[#allocation2 + $0x18] sm:$0xf] %vm759_vm2, %v807_v57  ;;  %796 = vst.msk [vmem:[#allocation2 + $0x14] sm:$0xf] %vm759_vm2, %v791_v58 }
 0x307   : > { %v816_v59 = vpop.permute.xlu0 %815  ;;  %v800_v60 = vpop.permute.xlu1 %799 }
 0x308   : > { %822 = vst.msk [vmem:[#allocation3 + $0x18] sm:$0xf] %vm759_vm2, %v816_v59  ;;  %805 = vst.msk [vmem:[#allocation3 + $0x14] sm:$0xf] %vm759_vm2, %v800_v60 }
 0x30b   : > { %v809_v61 = vpop.permute.xlu1 %808 }
 0x30c   : > { %814 = vst.msk [vmem:[#allocation2 + $0x1c] sm:$0xf] %vm759_vm2, %v809_v61 }
 0x30f   : > { %v818_v62 = vpop.permute.xlu1 %817 }
 0x310   : > { %823 = vst.msk [vmem:[#allocation3 + $0x1c] sm:$0xf] %vm759_vm2, %v818_v62 }
 0x311 PF: > { %vm824_vm3 = vcmask 261120   ;;  %s3089_s4 = sld [smem:[#allocation25_spill]]  ;;  %v2508_v9 = vmov 0.0   ;;  %vm2509_vm4 = vmmov 0   ;;  %v2215_v11 = vld [vmem:[#allocation2] sm:$0xff]   ;;  %vm928_vm5 = vcmask 64512  }
 0x312   : > { %v825_v63 = vsel %vm824_vm3, %v2804_v2, 0.0  ;;  %1968 = vmatprep.subr.bf16.mxu0 %v2508_v9  ;;  %1972 = vmatprep.mubr.msk.bf16.mxu0 %vm2509_vm4, %v2508_v9  ;;  %v933_v12 = vsel %vm928_vm5, %v2215_v11, 0  ;;  %v840_v16 = vlaneseq  ;;  %s3090_s16 = sld [smem:[#allocation26_spill]]  ;;  %v2216_v28 = vld [vmem:[#allocation2 + $0x8] sm:$0xff]   ;;  %s2510_s29 = smov 104   ;;  %v2217_v33 = vld [vmem:[#allocation2 + $0x10] sm:$0xff]  }
 0x313   : > { %826 = vadd.xlane.f32.xlu0 %v825_v63  ;;  %1976 = vmatprep.subr.bf16.mxu1 %v2508_v9  ;;  %s2511_s20 = smov 120   ;;  %s2512_s9 = smov 112   ;;  %v1186_v34 = vsel %vm928_vm5, %v2217_v33, 0  ;;  %v2218_v36 = vld [vmem:[#allocation2 + $0x18] sm:$0xff]   ;;  %vm975_vm6 = vcmask 130048   ;;  %v2219_v45 = vld [vmem:[#allocation3] sm:$0xff]  }
 0x314   : > { %1978 = vmatprep.mubr.msk.bf16.mxu1 %vm2509_vm4, %v2508_v9  ;;  %1977 = vmatpush3.bf16.xpose.msra.mxu1 %v933_v12  ;;  %v841_v17 = vshrl.u32 %v840_v16, 7  ;;  %v1315_v37 = vsel %vm928_vm5, %v2218_v36, 0  ;;  %vm1040_vm7 = vcmask 60416   ;;  %s2513_s17 = smov 8   ;;  %s2514_s19 = smov 16   ;;  %vm1170_vm8 = vcmask 126016  }
 0x315   : > { %1988 = vmatprep.subr.bf16.mxu1 %v2508_v9  ;;  %s2515_s21 = smov 24   ;;  %vm1299_vm9 = vcmask 191616   ;;  %vm1428_vm10 = vcmask 257216   ;;  %s3091_s5 = sld [smem:[#allocation30_spill]]  ;;  %vm1660_vm12 = vcmask 523264  }
 0x316   : > { %v842_v18 = vsub.s32 0, %v841_v17  ;;  %v2221_v17 = vld [vmem:[#allocation3 + $0x10] sm:$0xff]   ;;  %s3092_s11 = sld [smem:[#allocation31_spill]]  ;;  %s1722_s12 = sshll.u32 %s620_s18, 4  ;;  %s2958_s12 = int_to_ptr.vmem [resolvable:$true] %s1722_s12 }
 0x317   : > { %v2213_v8 = vld [vmem:[%s3089_s4 + $0x8] sm:$0xff]   ;;  %v2214_v10 = vld [vmem:[%s3089_s4] sm:$0xff]   ;;  %s3095_s10 = sld [smem:[#allocation34_spill]] }
 0x318   : > { %1969 = vmatpush3.bf16.msra.mxu0 %v2213_v8  ;;  %v843_v19 = vrot.slane %v2797_v0, %v842_v18  ;;  %v850_v22 = vrot.slane %v2802_v1, %v842_v18  ;;  %v1877_v26 = vld [vmem:[%s3090_s16] ss:$0 sm:$0xff]  ;;  %v1057_v1 = vsel %vm928_vm5, %v2216_v28, 0  ;;  %s1917_s16 = sshll.u32 %s2477_s28, 1  ;;  %s3098_s13 = sld [smem:[#allocation37_spill]] }
 0x319   : > { %1970 = vmatprep.subr.bf16.mxu0 %v2508_v9  ;;  %s2361_s28 = scalar_lea.vmem %s2958_s12, 128 }
 0x31a   : > { %p2362_p10 = scmp.ne.s32.totalorder %s2958_s12, %s2361_s28 }
 0x31c   : > { %1971 = vmatpush3.bf16.msra.mxu0 %v2214_v10 }
 0x31d   : > { %1982 = vmatprep.subr.bf16.mxu0 %v2508_v9 }
 0x39c   : > { %v827_v3 = vpop.xlane.xlu0 %826 }
 0x39d   : > { %v829_v4 = vmul.f32 0.03125, %v827_v3 }
 0x39f   : > { %v830_v5 = vsub.f32 %v2804_v2, %v829_v4  ;;  %v2220_v4 = vld [vmem:[#allocation3 + $0x8] sm:$0xff]  }
 0x3a1   : > { %v831_v6 = vmul.f32 %v830_v5, %v830_v5 }
 0x3a3   : > { %v832_v7 = vsel %vm824_vm3, %v831_v6, 0.0 }
 0x3a4   : > { %833 = vadd.xlane.f32.xlu0 %v832_v7 }
 0x42d   : > { %v834_v13 = vpop.xlane.xlu0 %833 }
 0x42e   : > { %v835_v14 = vmul.f32 0.03125, %v834_v13 }
 0x430   : > { %v836_v15 = vadd.f32 1e-05, %v835_v14 }
 0x432   : > { %2231 = vrsqrt.f32 %v836_v15 }
 0x43f   : > { %v2232_v20 = vpop.eup %2231 }
 0x440   : > { %v838_v21 = vmul.f32 %v2232_v20, %v830_v5 }
 0x442   : > { %v845_v23 = vmul.f32 %v843_v19, %v838_v21 }
 0x444   : > { %v852_v24 = vadd.f32 %v850_v22, %v845_v23  ;;  %v2222_v22 = vld [vmem:[#allocation3 + $0x18] sm:$0xff]  }
 0x446   : > { %v853_v25 = vpack.c.bf16 %v852_v24, %v852_v24 }
 0x448   : > { %1973 = vmatmul.mubr.msk.bf16.vlgmr.msra.gmra.mxu0 %vm824_vm3, %v853_v25 }
 0x449   : > { %1984 = vmatprep.mubr.msk.bf16.mxu0 %vm2509_vm4, %v2508_v9  ;;  %1983 = vmatpush3.bf16.msra.mxu0 %v2219_v45 }
 0x44a   : > { %1994 = vmatprep.subr.bf16.mxu0 %v2508_v9 }
 0x508   : > { %v914_v27 = vpop.f32.mrf.mxu0 }
 0x509   : > { %v915_v29 = vadd.f32 %v1877_v26, %v914_v27 }
 0x50a   : > { %v1974_v0 = vpop.f32.mrf.mxu0 }
 0x50b   : > { %v920_v30 = vpack.c.bf16 %v915_v29, %v915_v29 }
 0x50c   : > { %v917_v31 = vpop.f32.mrf.mxu0 }
 0x50d   : > { %1304 = vrot.lane.b32.xlu0 %v920_v30, %s2510_s29  ;;  %1046 = vrot.lane.b32.xlu1 %v920_v30, %s2511_s20  ;;  %s3093_s29 = sld [smem:[#allocation32_spill]] }
 0x50e   : > { %1979 = vmatmul.mubr.msk.bf16.vlgmr.msra.gmra.mxu1 %vm928_vm5, %v920_v30  ;;  %v1975_v32 = vpop.f32.mrf.mxu0 }
 0x50f   : > { %1989 = vmatpush3.bf16.xpose.msra.mxu1 %v1057_v1  ;;  %1990 = vmatprep.mubr.msk.bf16.mxu1 %vm2509_vm4, %v2508_v9 }
 0x510   : > { %2000 = vmatprep.subr.bf16.mxu1 %v2508_v9 }
 0x511   : > { %1175 = vrot.lane.b32.xlu1 %v920_v30, %s2512_s9 }
 0x57f   : > { %v1047_v35 = vpop.permute.xlu1 %1046  ;;  %v1305_v39 = vpop.permute.xlu0 %1304 }
 0x580   : > { %1991 = vmatmul.mubr.msk.bf16.vlgmr.msra.gmra.mxu1 %vm928_vm5, %v1047_v35 }
 0x581   : > { %2001 = vmatpush3.bf16.xpose.msra.mxu1 %v1186_v34  ;;  %2002 = vmatprep.mubr.msk.bf16.mxu1 %vm2509_vm4, %v2508_v9 }
 0x582   : > { %2012 = vmatprep.subr.bf16.mxu1 %v2508_v9 }
 0x583   : > { %v1176_v38 = vpop.permute.xlu1 %1175 }
 0x588   : > { %2003 = vmatmul.mubr.msk.bf16.vlgmr.msra.gmra.mxu1 %vm928_vm5, %v1176_v38 }
 0x589   : > { %2013 = vmatpush3.bf16.xpose.msra.mxu1 %v1315_v37  ;;  %2014 = vmatprep.mubr.msk.bf16.mxu1 %vm2509_vm4, %v2508_v9 }
 0x58a   : > { %2024 = vmatprep.subr.bf16.mxu1 %v2508_v9 }
 0x590   : > { %2015 = vmatmul.mubr.msk.bf16.vlgmr.msra.gmra.mxu1 %vm928_vm5, %v1305_v39 }
 0x591   : > { %2028 = vmatprep.mubr.msk.bf16.mxu1 %vm2509_vm4, %v2508_v9 }
 0x5ce   : > { %v969_v40 = vpop.f32.mrf.mxu1 }
 0x5cf   : > { %v976_v41 = vsel %vm975_vm6, %v969_v40, -inf }
 0x5d0   : > { %977 = vmax.xlane.f32.xlu1 %v976_v41  ;;  %v1980_v42 = vpop.f32.mrf.mxu1 }
 0x5d2   : > { %v972_v43 = vpop.f32.mrf.mxu1 }
 0x5d4   : > { %v1981_v44 = vpop.f32.mrf.mxu1 }
 0x640   : > { %v1093_v46 = vpop.f32.mrf.mxu1 }
 0x641   : > { %v1099_v47 = vsel %vm975_vm6, %v1093_v46, -inf }
 0x642   : > { %1100 = vmax.xlane.f32.xlu0 %v1099_v47  ;;  %v1992_v48 = vpop.f32.mrf.mxu1 }
 0x644   : > { %v1096_v49 = vpop.f32.mrf.mxu1 }
 0x645   : > { %v2224_v49 = vld [vmem:[#allocation10] sm:$0xff]  }
 0x646   : > { %v1993_v50 = vpop.f32.mrf.mxu1 }
 0x648   : > { %v1222_v51 = vpop.f32.mrf.mxu1 }
 0x649   : > { %v1228_v52 = vsel %vm975_vm6, %v1222_v51, -inf }
 0x64a   : > { %1229 = vmax.xlane.f32.xlu1 %v1228_v52  ;;  %v2004_v53 = vpop.f32.mrf.mxu1 }
 0x64c   : > { %v1225_v54 = vpop.f32.mrf.mxu1 }
 0x64e   : > { %v2005_v55 = vpop.f32.mrf.mxu1 }
 0x650   : > { %v1351_v56 = vpop.f32.mrf.mxu1 }
 0x651   : > { %v1357_v57 = vsel %vm975_vm6, %v1351_v56, -inf }
 0x652   : > { %1358 = vmax.xlane.f32.xlu1 %v1357_v57  ;;  %v2016_v58 = vpop.f32.mrf.mxu1 }
 0x654   : > { %v1354_v59 = vpop.f32.mrf.mxu1 }
 0x656   : > { %v2017_v60 = vpop.f32.mrf.mxu1 }
 0x659   : > { %v978_v61 = vpop.xlane.xlu1 %977 }
 0x65a   : > { %v979_v62 = vsub.f32 %v969_v40, %v978_v61 }
 0x65c   : > { %v980_v63 = vmul.f32 1.442695, %v979_v62 }
 0x65e   : > { %2233 = vpow2.f32 %v980_v63 }
 0x66b   : > { %v2234_v3 = vpop.eup %2233 }
 0x66c   : > { %v982_v5 = vsel %vm975_vm6, %v2234_v3, 0.0  ;;  %v986_v6 = vpack.c.bf16 %v2234_v3, %v2234_v3  ;;  %v1900_v3 = vld [vmem:[%s3091_s5] ss:$0 sm:$0xff] }
 0x66d   : > { %983 = vadd.xlane.f32.xlu0 %v982_v5 }
 0x66e   : > { %1985 = vmatmul.mubr.msk.bf16.vlgmr.msra.gmra.mxu0 %vm975_vm6, %v986_v6 }
 0x66f   : > { %1995 = vmatpush3.bf16.msra.mxu0 %v2220_v4  ;;  %1996 = vmatprep.mubr.msk.bf16.mxu0 %vm2509_vm4, %v2508_v9 }
 0x670   : > { %2006 = vmatprep.subr.bf16.mxu0 %v2508_v9 }
 0x6cb   : > { %v1101_v7 = vpop.xlane.xlu0 %1100 }
 0x6cc   : > { %v1102_v8 = vsub.f32 %v1093_v46, %v1101_v7  ;;  %v2223_v46 = vld [vmem:[#allocation10 + $0x8] sm:$0xff]  }
 0x6cd   : > { %2025 = vmatpush3.bf16.msra.mxu1 %v2223_v46 }
 0x6ce   : > { %v1103_v10 = vmul.f32 1.442695, %v1102_v8  ;;  %2026 = vmatprep.subr.bf16.mxu1 %v2508_v9 }
 0x6d0   : > { %2235 = vpow2.f32 %v1103_v10 }
 0x6d1   : > { %2027 = vmatpush3.bf16.msra.mxu1 %v2224_v49 }
 0x6d2   : > { %2040 = vmatprep.subr.bf16.mxu1 %v2508_v9 }
 0x6d3   : > { %v1230_v11 = vpop.xlane.xlu1 %1229 }
 0x6d4   : > { %v1231_v12 = vsub.f32 %v1222_v51, %v1230_v11 }
 0x6d6   : > { %v1232_v13 = vmul.f32 1.442695, %v1231_v12 }
 0x6d8   : > { %2237 = vpow2.f32 %v1232_v13 }
 0x6db   : > { %v1359_v14 = vpop.xlane.xlu1 %1358 }
 0x6dc   : > { %v1360_v15 = vsub.f32 %v1351_v56, %v1359_v14 }
 0x6dd   : > { %v2236_v16 = vpop.eup %2235 }
 0x6de   : > { %v1361_v18 = vmul.f32 1.442695, %v1360_v15  ;;  %v1105_v19 = vsel %vm975_vm6, %v2236_v16, 0.0  ;;  %v1109_v20 = vpack.c.bf16 %v2236_v16, %v2236_v16 }
 0x6df   : > { %1106 = vadd.xlane.f32.xlu1 %v1105_v19 }
 0x6e0   : > { %2239 = vpow2.f32 %v1361_v18  ;;  %1997 = vmatmul.mubr.msk.bf16.vlgmr.msra.gmra.mxu0 %vm975_vm6, %v1109_v20  ;;  %v2226_v18 = vld [vmem:[#allocation11] sm:$0xff]  }
 0x6e1   : > { %2007 = vmatpush3.bf16.msra.mxu0 %v2221_v17  ;;  %2008 = vmatprep.mubr.msk.bf16.mxu0 %vm2509_vm4, %v2508_v9  ;;  %v2225_v17 = vld [vmem:[#allocation11 + $0x8] sm:$0xff]  }
 0x6e2   : > { %2018 = vmatprep.subr.bf16.mxu0 %v2508_v9 }
 0x6e5   : > { %v2238_v21 = vpop.eup %2237 }
 0x6e6   : > { %v1234_v23 = vsel %vm975_vm6, %v2238_v21, 0.0  ;;  %v1238_v24 = vpack.c.bf16 %v2238_v21, %v2238_v21 }
 0x6e7   : > { %1235 = vadd.xlane.f32.xlu1 %v1234_v23 }
 0x6e8   : > { %2009 = vmatmul.mubr.msk.bf16.vlgmr.msra.gmra.mxu0 %vm975_vm6, %v1238_v24  ;;  %v1905_v24 = vld [vmem:[%s3093_s29] ss:$0 sm:$0xff]  ;;  %s1718_s29 = sadd.s32 %s2473_s27, %s1917_s16  ;;  %s1707_s27 = scalar_lea.sflag [#allocation7], %s618_s7 }
 0x6e9   : > { %2019 = vmatpush3.bf16.msra.mxu0 %v2222_v22  ;;  %2020 = vmatprep.mubr.msk.bf16.mxu0 %vm2509_vm4, %v2508_v9  ;;  %v1904_v22 = vld [vmem:[%s3092_s11] ss:$0 sm:$0xff]  ;;  %s1918_s6 = sshll.u32 %s1718_s29, 7 }
 0x6ea   : > { %2032 = vmatprep.subr.bf16.mxu0 %v2508_v9  ;;  %s2956_s11 = scalar_lea.hbm %s3098_s13, %s1918_s6 }
 0x6ed   : > { %v2240_v25 = vpop.eup %2239 }
 0x6ee   : > { %v1363_v26 = vsel %vm975_vm6, %v2240_v25, 0.0  ;;  %v1367_v27 = vpack.c.bf16 %v2240_v25, %v2240_v25 }
 0x6ef   : > { %1364 = vadd.xlane.f32.xlu1 %v1363_v26 }
 0x6f0   : > { %2021 = vmatmul.mubr.msk.bf16.vlgmr.msra.gmra.mxu0 %vm975_vm6, %v1367_v27 }
 0x6f1   : > { %2036 = vmatprep.mubr.msk.bf16.mxu0 %vm2509_vm4, %v2508_v9  ;;  %2033 = vmatpush3.bf16.msra.mxu0 %v2225_v17 }
 0x6f2   : > { %2034 = vmatprep.subr.bf16.mxu0 %v2508_v9 }
 0x6f5   : > { %2035 = vmatpush3.bf16.msra.mxu0 %v2226_v18 }
 0x6f6   : > { %v984_v28 = vpop.xlane.xlu0 %983 }
 0x6f7   : > { %2241 = vrcp.f32 %v984_v28 }
 0x704   : > { %v2242_v29 = vpop.eup %2241 }
 0x72e   : > { %v1032_v0 = vpop.f32.mrf.mxu0 }
 0x72f   : > { %v1038_v30 = vmul.f32 %v2242_v29, %v1032_v0 }
 0x730   : > { %v1986_v31 = vpop.f32.mrf.mxu0 }
 0x731   : > { %v1039_v1 = vpack.c.bf16 %v1038_v30, %v1038_v30  ;;  %v1906_v31 = vld [vmem:[%s3095_s10] ss:$0 sm:$0xff]  ;;  %s2517_s10 = smov [#allocation13]  }
 0x732   : > { %v1035_v32 = vpop.f32.mrf.mxu0  ;;  %s2365_s16 = sshll.u32 %s2517_s10, 4  ;;  %s2366_s16 = int_to_ptr.vmem [resolvable:$false] %s2365_s16 }
 0x733   : > { %1041 = vst.msk [vmem:[#allocation4] sm:$0xf] %vm1040_vm7, %v1039_v1  ;;  %s2367_s29 = scalar_lea.vmem %s2366_s16, 256  ;;  %p2368_p1 = scmp.lt.s32.totalorder %s2958_s12, %s2366_s16 }
 0x734   : > { %v1987_v33 = vpop.f32.mrf.mxu0  ;;  %p2369_p3 = scmp.lt.s32.totalorder %s2367_s29, %s2361_s28 }
 0x736   : > { %p2370_p7 = por %p2369_p3, %p2368_p1 }
 0x768   : > { %v1107_v34 = vpop.xlane.xlu1 %1106 }
 0x769   : > { %2243 = vrcp.f32 %v1107_v34 }
 0x770   : > { %v1236_v35 = vpop.xlane.xlu1 %1235 }
 0x771   : > { %2245 = vrcp.f32 %v1236_v35 }
 0x776   : > { %v2244_v36 = vpop.eup %2243 }
 0x778   : > { %v1365_v37 = vpop.xlane.xlu1 %1364 }
 0x779   : > { %2247 = vrcp.f32 %v1365_v37 }
 0x77e   : > { %v2246_v44 = vpop.eup %2245 }
 0x786   : > { %v2248_v53 = vpop.eup %2247 }
 0x7a0   : > { %v1156_v38 = vpop.f32.mrf.mxu0 }
 0x7a1   : > { %v1162_v39 = vmul.f32 %v2244_v36, %v1156_v38 }
 0x7a2   : > { %v1998_v40 = vpop.f32.mrf.mxu0 }
 0x7a3   : > { %v1924_v41 = vpack.c.bf16 %v1162_v39, %v1162_v39 }
 0x7a4   : > { %v1159_v42 = vpop.f32.mrf.mxu0 }
 0x7a5   : > { %1167 = vrot.lane.b32.xlu1 %v1924_v41, %s2513_s17  ;;  %s3094_s17 = sld [smem:[#allocation35_spill]] }
 0x7a6   : > { %v1999_v43 = vpop.f32.mrf.mxu0 }
 0x7a8   : > { %v1285_v45 = vpop.f32.mrf.mxu0 }
 0x7a9   : > { %v1291_v47 = vmul.f32 %v2246_v44, %v1285_v45 }
 0x7aa   : > { %v2010_v48 = vpop.f32.mrf.mxu0 }
 0x7ab   : > { %v1925_v50 = vpack.c.bf16 %v1291_v47, %v1291_v47  ;;  %v2227_v28 = vld [vmem:[%s3094_s17 + $0x18] sm:$0xff]   ;;  %v2228_v29 = vld [vmem:[%s3094_s17 + $0x10] sm:$0xff]   ;;  %v2229_v0 = vld [vmem:[%s3094_s17 + $0x8] sm:$0xff]  }
 0x7ac   : > { %v1288_v51 = vpop.f32.mrf.mxu0  ;;  %v2230_v30 = vld [vmem:[%s3094_s17] sm:$0xff]  }
 0x7ad   : > { %1296 = vrot.lane.b32.xlu0 %v1925_v50, %s2514_s19  ;;  %s3096_s19 = sld [smem:[#allocation36_spill]] }
 0x7ae   : > { %v2011_v52 = vpop.f32.mrf.mxu0 }
 0x7b0   : > { %v1414_v54 = vpop.f32.mrf.mxu0 }
 0x7b1   : > { %v1420_v55 = vmul.f32 %v2248_v53, %v1414_v54 }
 0x7b2   : > { %v2022_v56 = vpop.f32.mrf.mxu0 }
 0x7b3   : > { %v1926_v57 = vpack.c.bf16 %v1420_v55, %v1420_v55  ;;  %v2516_v55 = vmov -1.0  }
 0x7b4   : > { %v1417_v58 = vpop.f32.mrf.mxu0 }
 0x7b5   : > { %1425 = vrot.lane.b32.xlu1 %v1926_v57, %s2515_s21  ;;  %s3097_s21 = sld [smem:[#allocation20_spill]] }
 0x7b6   : > { %v2023_v59 = vpop.f32.mrf.mxu0 }
 0x7bb   : > { %p3099_p9 = scmp.ne.s32.totalorder %s3097_s21, 0 }
 0x7bd   : > { %p2363_p12 = pnand %p2362_p10, %p3099_p9 }
 0x7bf   : > { %p2364_p2 = pneg %p2363_p12 }
 0x7c1   : > { %p2371_p0 = pnand %p2370_p7, %p2364_p2 }
 0x817   : > { %v1168_v60 = vpop.permute.xlu1 %1167 }
 0x818   : > { %1171 = vst.msk [vmem:[#allocation4] sm:$0xf] %vm1170_vm8, %v1168_v60 }
 0x81f   : > { %v1297_v61 = vpop.permute.xlu0 %1296 }
 0x820   : > { %1300 = vst.msk [vmem:[#allocation4] sm:$0xf] %vm1299_vm9, %v1297_v61 }
 0x827   : > { %v1426_v62 = vpop.permute.xlu1 %1425 }
 0x828   : > { %1429 = vst.msk [vmem:[#allocation4] sm:$0xf] %vm1428_vm10, %v1426_v62  ;;  %v1910_v62 = vld [vmem:[%s3096_s19] ss:$0 sm:$0xff] }
 0x82f   : > { %v1430_v63 = vld [vmem:[#allocation4] sm:$0xf] }
 0x830   : > { %2029 = vmatmul.mubr.msk.bf16.vlgmr.msra.gmra.mxu1 %vm824_vm3, %v1430_v63 }
 0x831   : > { %2048 = vmatprep.mubr.msk.bf16.mxu1 %vm2509_vm4, %v2508_v9  ;;  %2041 = vmatpush3.bf16.msra.mxu1 %v2227_v28 }
 0x832   : > { %2042 = vmatprep.subr.bf16.mxu1 %v2508_v9 }
 0x835   : > { %2043 = vmatpush3.bf16.msra.mxu1 %v2228_v29 }
 0x836   : > { %2044 = vmatprep.subr.bf16.mxu1 %v2508_v9 }
 0x839   : > { %2045 = vmatpush3.bf16.msra.mxu1 %v2229_v0 }
 0x83a   : > { %2046 = vmatprep.subr.bf16.mxu1 %v2508_v9 }
 0x83d   : > { %2047 = vmatpush3.bf16.msra.mxu1 %v2230_v30 }
 0x8f0   : > { %v1491_v4 = vpop.f32.mrf.mxu1 }
 0x8f1   : > { %v1492_v5 = vadd.f32 %v1900_v3, %v1491_v4 }
 0x8f2   : > { %v2030_v6 = vpop.f32.mrf.mxu1 }
 0x8f3   : > { %v2913_v7 = vadd.f32 %v1492_v5, %v2804_v2 }
 0x8f4   : > { %v1494_v8 = vpop.f32.mrf.mxu1 }
 0x8f5   : > { %v1500_v10 = vsel %vm824_vm3, %v2913_v7, 0.0 }
 0x8f6   : > { %1501 = vadd.xlane.f32.xlu1 %v1500_v10  ;;  %v2031_v11 = vpop.f32.mrf.mxu1 }
 0x97f   : > { %v1502_v12 = vpop.xlane.xlu1 %1501 }
 0x980   : > { %v1503_v13 = vmul.f32 0.03125, %v1502_v12 }
 0x982   : > { %v1504_v14 = vsub.f32 %v2913_v7, %v1503_v13 }
 0x984   : > { %v1505_v15 = vmul.f32 %v1504_v14, %v1504_v14 }
 0x986   : > { %v1506_v16 = vsel %vm824_vm3, %v1505_v15, 0.0 }
 0x987   : > { %1507 = vadd.xlane.f32.xlu0 %v1506_v16 }
 0xa10   : > { %v1508_v2 = vpop.xlane.xlu0 %1507 }
 0xa11   : > { %v1509_v19 = vmul.f32 0.03125, %v1508_v2 }
 0xa13   : > { %v1510_v20 = vadd.f32 1e-05, %v1509_v19 }
 0xa15   : > { %2249 = vrsqrt.f32 %v1510_v20 }
 0xa22   : > { %v2250_v21 = vpop.eup %2249 }
 0xa23   : > { %v1512_v23 = vmul.f32 %v2250_v21, %v1504_v14 }
 0xa25   : > { %v1519_v25 = vmul.f32 %v1904_v22, %v1512_v23 }
 0xa27   : > { %v1526_v26 = vadd.f32 %v1905_v24, %v1519_v25 }
 0xa29   : > { %v1527_v27 = vpack.c.bf16 %v1526_v26, %v1526_v26 }
 0xa2b   : > { %2037 = vmatmul.mubr.msk.bf16.vlgmr.msra.gmra.mxu0 %vm824_vm3, %v1527_v27 }
 0xaeb   : > { %v1588_v1 = vpop.f32.mrf.mxu0 }
 0xaec   : > { %v1589_v32 = vadd.f32 %v1906_v31, %v1588_v1 }
 0xaed   : > { %v2038_v33 = vpop.f32.mrf.mxu0 }
 0xaee   : > { %v1595_v34 = vmul.f32 0.70710677, %v1589_v32  ;;  %v1594_v58 = vmul.f32 0.5, %v1589_v32 }
 0xaef   : > { %v1591_v35 = vpop.f32.mrf.mxu0 }
 0xaf0   : > { %v1598_v36 = vand.u32 2147483647, %v1595_v34  ;;  %vm1596_vm11 = vcmp.ge.f32.partialorder %v1595_v34, 0.0 }
 0xaf1   : > { %v2039_v37 = vpop.f32.mrf.mxu0  ;;  %v1597_v56 = vsel %vm1596_vm11, 1.0, %v2516_v55 }
 0xaf2   : > { %v1599_v38 = vmul.f32 0.3275911, %v1598_v36  ;;  %v1611_v9 = vsub.f32 0.0, %v1598_v36 }
 0xaf4   : > { %v1600_v39 = vadd.f32 1.0, %v1599_v38  ;;  %v1612_v40 = vmul.f32 %v1611_v9, %v1598_v36 }
 0xaf6   : > { %2251 = vrcp.f32 %v1600_v39  ;;  %v1613_v43 = vmul.f32 1.442695, %v1612_v40 }
 0xaf8   : > { %2253 = vpow2.f32 %v1613_v43 }
 0xb03   : > { %v2252_v41 = vpop.eup %2251 }
 0xb04   : > { %v1602_v42 = vmul.f32 1.0614054, %v2252_v41 }
 0xb05   : > { %v2254_v52 = vpop.eup %2253 }
 0xb06   : > { %v1603_v44 = vadd.f32 -1.4531521, %v1602_v42 }
 0xb08   : > { %v1604_v45 = vmul.f32 %v2252_v41, %v1603_v44 }
 0xb0a   : > { %v1605_v46 = vadd.f32 1.4214138, %v1604_v45 }
 0xb0c   : > { %v1606_v47 = vmul.f32 %v2252_v41, %v1605_v46 }
 0xb0e   : > { %v1607_v48 = vadd.f32 -0.28449672, %v1606_v47 }
 0xb10   : > { %v1608_v49 = vmul.f32 %v2252_v41, %v1607_v48 }
 0xb12   : > { %v1609_v50 = vadd.f32 0.2548296, %v1608_v49 }
 0xb14   : > { %v1610_v51 = vmul.f32 %v2252_v41, %v1609_v50 }
 0xb16   : > { %v1615_v53 = vmul.f32 %v2254_v52, %v1610_v51 }
 0xb18   : > { %v1616_v54 = vsub.f32 1.0, %v1615_v53 }
 0xb1a   : > { %v1617_v57 = vmul.f32 %v1616_v54, %v1597_v56 }
 0xb1c   : > { %v1618_v59 = vadd.f32 1.0, %v1617_v57 }
 0xb1e   : > { %v1619_v60 = vmul.f32 %v1618_v59, %v1594_v58 }
 0xb20   : > { %v1620_v61 = vpack.c.bf16 %v1619_v60, %v1619_v60 }
 0xb22   : > { %2049 = vmatmul.mubr.msk.bf16.vlgmr.msra.gmra.mxu1 %vm1660_vm12, %v1620_v61 }
 0xbe2   : > { %v1698_v63 = vpop.f32.mrf.mxu1 }
 0xbe3   : > { %v1699_v3 = vadd.f32 %v1910_v62, %v1698_v63 }
 0xbe4   : > { %v2050_v4 = vpop.f32.mrf.mxu1 }
 0xbe5   : > { %v1704_v5 = vadd.f32 %v1699_v3, %v2913_v7 }
 0xbe6   : > { %v1701_v6 = vpop.f32.mrf.mxu1 }
 0xbe7   : > { %1705 = vst.msk [vmem:[%s620_s18] sm:$0xff] %vm824_vm3, %v1704_v5 }
 0xbe8   : > { %v2051_v8 = vpop.f32.mrf.mxu1 }
 0xbe9   : > { %2374 = shalt.err (!%p2371_p0)
}
 0xbea   : > { %s2375_s24 = scalar_lea.hbm %s2956_s11, 128  ;;  %s2379_s20 = scalar_lea.hbm %s3098_s13, 512 }
 0xbeb   : > { %p2376_p4 = scmp.ne.s32.totalorder %s2956_s11, %s2375_s24  ;;  %p2380_p11 = scmp.lt.s32.totalorder %s2956_s11, %s3098_s13 }
 0xbec   : > { %p2381_p5 = scmp.lt.s32.totalorder %s2379_s20, %s2375_s24 }
 0xbed   : > { %p2377_p6 = pnand %p2376_p4, %p3099_p9 }
 0xbee   : > { %p2382_p8 = por %p2381_p5, %p2380_p11 }
 0xbef   : > { %p2378_p13 = pneg %p2377_p6 }
 0xbf1   : > { %p2383_p10 = pnand %p2382_p8, %p2378_p13 }
 0xbf3   : > { %2386 = shalt.err (!%p2383_p10)
}
 0xbf4   : > { %2066 = dma.vmem_to_hbm [thread:$0]  (%p3099_p9), %s2958_s12, 128, %s2956_s11, %s1707_s27  }
 0xbf5 PF: > { %s3100_s6 = sld [smem:[#allocation18_spill]]  ;;  %p2093_p12 = scmp.ge.s32.totalorder %s2489_s0, 2 }
 0xbf6   : > { %s3101_s5 = sld [smem:[#allocation21_spill]] }
 0xbfb   : > { %s1734_s15 = sand.u32 1, %s3100_s6  }
 0xbfc   : > { %p3102_p2 = scmp.ne.s32.totalorder %s3101_s5, 0  ;;  %s1735_s28 = scalar_lea.sflag [#allocation7], %s1734_s15 }
 0xbfe   : > { %p2083_p1 = pnand %p2093_p12, %p3102_p2 }
 0xc00   : > { %p2084_p3 = pneg %p2083_p1 }
 0xc02   : > { %2444 = dma.done.wait (%p2084_p3), %s1735_s28, 128  }
 0xc03   : > { %2446 = vsyncadd (%p2084_p3), %s1735_s28, 4294967168  ;;  %s34_s0 = sadd.s32 1, %s2489_s0   ;;  %s3103_s27 = sld [smem:[#allocation19_spill]] }
 0xc04   : > { %p31_p7 = scmp.ge.s32.totalorder %s34_s0, 6   ;;  %s3104_s29 = sld [smem:[#allocation22_spill]] }
 0xc05   : > { %s3105_s12 = sld [smem:[#allocation23_spill]]  ;;  %s3106_s21 = smov %s2453_s22 }
 0xc06   : > { %s3107_s22 = smov %s2457_s23  ;;  %s3108_s23 = smov %s2750_s8 }
 0xc07   : > { %s3109_s24 = smov %s2465_s25  ;;  %s3110_s25 = smov %s2469_s26 }
 0xc08   : > { %s3111_s26 = smov %s2745_s14  ;;  %s3112_s28 = smov %s2485_s30 }
 0xc09   :  { %33 = sbr.rel (!%p31_p7) target bundleno = 26 (0x1a), region = 160 }
 0xc0b   : > { %s3113_s30 = smov %s3105_s12 }
 0xc0e   :  { %1740 = vsyncpa [#allocation6], 1 }
 0xc0f   :  { %1742 = vsyncpa [#allocation6 + $0x1], 1 }
 0xc10   :  { %1743 = vsyncpa [#allocation9], 1 }
 0xc11   :  { %1744 = vsyncpa [#allocation12], 1 }
 0xc12   :  { %1745 = vsyncpa [#allocation7], 1 }
 0xc13   :  { %1747 = vsyncpa [#allocation7 + $0x1], 1 }

</bundles_post_ra>
